<compile_context>
chip_gen: v6e
topology: v6e:2x2x1
jax: 0.10.0
libtpu: 0.0.40
codegen_flags: <defaults>
</compile_context>

<pallas_src>
import functools

import numpy as np
import jax
import jax.numpy as jnp
from jax import lax
from jax.experimental import pallas as pl
from jax.experimental.pallas import tpu as pltpu

EPS = 1e-5          # InstanceNorm2d default eps
NEG_SLOPE = 0.01    # LeakyReLU default negative_slope
# MXU operand dtype for the conv matmuls.  f32 keeps exact parity with the
# reference at these tiny sizes; flip to jnp.bfloat16 at realistic nnU-Net
# sizes (statistics, affine and activations stay f32 either way).
MATMUL_DTYPE = jnp.float32


# ----------------------------- Pallas kernel ------------------------------ #
def _fused_encoder_kernel(cols1_ref, w1t_ref, w2t_ref, w3t_ref, w4t_ref,
                          gam_ref, bet_ref, mask2_ref, mask3_ref, mask4_ref,
                          imap1_ref, imap1t_ref, imap2_ref, imap2t_ref,
                          out_ref, a2_ref, a3_ref, a4_ref,
                          *, B, H, W, F1, F2):
    """Whole 2-stage / 4-conv encoder, both branches merged, in one call.

    Stage-0 lane ordering (phase-split, quadrant-major):
        n1 = q*QB + bb*P2 + i*W2 + j   with  q = ph*2+pw, h = 2i+ph, w = 2j+pw,
        bb = branch*B + batch.
    Stage-1 lane ordering: n2 = bb*P2 + i*W2 + j.
    In this ordering every 3x3 tap (stride 1 or 2) is a uniform lane shift per
    destination quadrant, i.e. a static slice, with image borders handled by
    precomputed 0/1 masks.
    """
    H2, W2 = H // 2, W // 2
    P2 = H2 * W2                 # pixels per image at stage-1 resolution
    B2 = 2 * B                   # branch * batch images
    QB = B2 * P2                 # lanes per phase quadrant at stage-0
    N1 = 4 * QB                  # stage-0 lanes (= B2 * H * W)
    N2 = QB                      # stage-1 lanes
    f32 = jnp.float32

    def conv_dot(a, b):          # conv matmuls on the MXU
        return jnp.dot(a.astype(MATMUL_DTYPE), b.astype(MATMUL_DTYPE),
                       preferred_element_type=f32)

    def stat_dot(a, b):          # norm statistics / broadcasts stay f32
        return jnp.dot(a, b, preferred_element_type=f32)

    def inorm_lrelu(y, layer, cout, imap, imapt, pix):
        # y: (cout, N) channel-major, lane-dense.  Per-(image, channel) stats
        # via one MXU matmul against the 0/1 image-indicator map, then the
        # per-branch affine ("separate norm") and LeakyReLU.
        s1 = stat_dot(y, imapt)                       # (cout, B2p) sums
        s2 = stat_dot(y * y, imapt)                   # (cout, B2p) sums of sq.
        mean = s1 * (1.0 / pix)
        var = jnp.maximum(s2 * (1.0 / pix) - mean * mean, 0.0)
        g = gam_ref[layer, :cout, :]                  # (cout, B2p)
        b = bet_ref[layer, :cout, :]
        scale = g * lax.rsqrt(var + EPS)
        bias = b - mean * scale
        yn = y * stat_dot(scale, imap) + stat_dot(bias, imap)
        return jnp.where(yn >= 0.0, yn, NEG_SLOPE * yn)

    def src_start(hs, ws):
        # A shift to fine pixel (2i+hs, 2j+ws) lands in quadrant (hs%2, ws%2)
        # at coarse offset ((hs-hs%2)//2, (ws-ws%2)//2).
        ph, pw = hs % 2, ws % 2
        si, sj = (hs - ph) // 2, (ws - pw) // 2
        return (ph * 2 + pw) * QB + si * W2 + sj

    imap1, imap1t = imap1_ref[...], imap1t_ref[...]
    imap2, imap2t = imap2_ref[...], imap2t_ref[...]

    # ---------------- stage 0, conv 1: 1 -> F1, stride 1 ------------------- #
    y1 = inorm_lrelu(conv_dot(w1t_ref[...], cols1_ref[...]), 0, F1,
                     imap1, imap1t, H * W)                     # (F1, N1)

    # ---------------- stage 0, conv 2: F1 -> F1, stride 1 ------------------ #
    # Taps = static lane slices of y1 (uniform shift per destination quadrant),
    # masked at image borders, stacked along K -> ONE matmul.
    for kh in range(3):
        for kw in range(3):
            t, dh, dw = kh * 3 + kw, kh - 1, kw - 1
            for q in range(4):
                ph_d, pw_d = q // 2, q % 2
                s = src_start(ph_d + dh, pw_d + dw)
                a2_ref[t * F1:(t + 1) * F1, q * QB:(q + 1) * QB] = (
                    y1[:, s:s + QB] * mask2_ref[t:t + 1, q * QB:(q + 1) * QB])
    y2 = inorm_lrelu(conv_dot(w2t_ref[...], a2_ref[...]), 1, F1,
                     imap1, imap1t, H * W)                     # (F1, N1)

    # ---------------- stage 1, conv 1: F1 -> F2, stride 2 ------------------ #
    # Thanks to the phase-split ordering every stride-2 tap is a single static
    # in-bounds slice of y2 (no gather matrix, no strided loads).
    for kh in range(3):
        for kw in range(3):
            t, dh, dw = kh * 3 + kw, kh - 1, kw - 1
            s = src_start(dh, dw)
            a3_ref[t * F1:(t + 1) * F1, :] = (
                y2[:, s:s + N2] * mask3_ref[t:t + 1, :])
    y3 = inorm_lrelu(conv_dot(w3t_ref[...], a3_ref[...]), 2, F2,
                     imap2, imap2t, H2 * W2)                   # (F2, N2)

    # ---------------- stage 1, conv 2: F2 -> F2, stride 1 ------------------ #
    # Circular lane shift (two slices + concat); wrapped / cross-image lanes
    # are exactly the masked border destinations.
    for kh in range(3):
        for kw in range(3):
            t, dh, dw = kh * 3 + kw, kh - 1, kw - 1
            off = dh * W2 + dw
            if off == 0:
                src = y3
            else:
                k = off % N2
                src = jnp.concatenate([y3[:, k:], y3[:, :k]], axis=1)
            a4_ref[t * F2:(t + 1) * F2, :] = src * mask4_ref[t:t + 1, :]
    y4 = inorm_lrelu(conv_dot(w4t_ref[...], a4_ref[...]), 3, F2,
                     imap2, imap2t, H2 * W2)                   # (F2, N2)

    # Sum the two separate-norm branches in-kernel (branch 0 = lanes [0, B*P2)).
    out_ref[...] = y4[:, :B * P2] + y4[:, B * P2:]


# ------------------------------ JAX wrapper -------------------------------- #
def encoder_forward(x_nchw, params):
    """Forward of PlainConvEncoderSeparateNormV2 (return_skips=False)."""
    Bn, Cin, H, W = x_nchw.shape
    assert Cin == 2, "two separate-norm branches (input_channels=2)"
    assert H % 2 == 0 and W % 2 == 0
    assert len(params) == 2 and all(len(s) == 2 for s in params)
    assert params[0][0]['stride'] == 1 and params[0][1]['stride'] == 1
    assert params[1][0]['stride'] == 2 and params[1][1]['stride'] == 1
    for s in params:
        for cp in s:
            assert cp['k'] == 3
    F1 = params[0][0]['w'].shape[1]
    F2 = params[1][0]['w'].shape[1]
    Cmax = max(F1, F2)
    H2, W2 = H // 2, W // 2
    P2 = H2 * W2
    B2 = 2 * Bn
    B2p = ((B2 + 7) // 8) * 8          # padded image count for the stat matmuls
    QB = B2 * P2
    N1 = 4 * QB
    N2 = QB

    # --- branch-merged input, quadrant-major phase-split lane ordering ------ #
    xb = jnp.concatenate([x_nchw[:, 0], x_nchw[:, 1]], axis=0)     # (B2, H, W)
    xp = jnp.pad(xb, ((0, 0), (1, 1), (1, 1)))
    taps = jnp.stack([xp[:, kh:kh + H, kw:kw + W]
                      for kh in range(3) for kw in range(3)], axis=0)
    cols1 = taps.reshape(9, B2, H2, 2, W2, 2)
    cols1 = cols1.transpose(0, 3, 5, 1, 2, 4).reshape(9, N1)       # (9, N1)
    cols1 = jnp.pad(cols1, ((0, 16 - 9), (0, 0)))                  # K -> 16

    # --- transposed (channel-major) weights --------------------------------- #
    w1t = jnp.pad(params[0][0]['w'].T, ((0, 0), (0, 16 - 9)))      # (F1, 16)
    w2t = params[0][1]['w'].T                                      # (F1, 9*F1)
    w3t = params[1][0]['w'].T                                      # (F2, 9*F1)
    w4t = params[1][1]['w'].T                                      # (F2, 9*F2)

    # --- per-(layer, channel, branch*batch image) affine params ------------- #
    layers = [params[0][0], params[0][1], params[1][0], params[1][1]]

    def aff(field):
        outs = []
        for cp in layers:
            a = jnp.repeat(cp[field], Bn, axis=0).T                # (cout, B2)
            a = jnp.pad(a, ((0, Cmax - a.shape[0]), (0, B2p - B2)))
            outs.append(a)
        return jnp.stack(outs)                                     # (4,Cmax,B2p)
    gam, bet = aff('gamma'), aff('beta')

    # --- constant border masks + image-indicator maps (tiny, numpy) --------- #
    qv, bbv, iv, jv = np.meshgrid(np.arange(4), np.arange(B2),
                                  np.arange(H2), np.arange(W2), indexing='ij')
    hv, wv = 2 * iv + qv // 2, 2 * jv + qv % 2
    bb2, iv2, jv2 = np.meshgrid(np.arange(B2), np.arange(H2), np.arange(W2),
                                indexing='ij')
    mask2 = np.zeros((9, N1), np.float32)
    mask3 = np.zeros((9, N2), np.float32)
    mask4 = np.zeros((9, N2), np.float32)
    for kh in range(3):
        for kw in range(3):
            t, dh, dw = kh * 3 + kw, kh - 1, kw - 1
            mask2[t] = (((hv + dh >= 0) & (hv + dh < H) &
                         (wv + dw >= 0) & (wv + dw < W))
                        .reshape(-1).astype(np.float32))
            mask3[t] = (((2 * iv2 + dh >= 0) & (2 * iv2 + dh < H) &
                         (2 * jv2 + dw >= 0) & (2 * jv2 + dw < W))
                        .reshape(-1).astype(np.float32))
            mask4[t] = (((iv2 + dh >= 0) & (iv2 + dh < H2) &
                         (jv2 + dw >= 0) & (jv2 + dw < W2))
                        .reshape(-1).astype(np.float32))
    imap1 = (bbv.reshape(-1)[None, :] ==
             np.arange(B2p)[:, None]).astype(np.float32)           # (B2p, N1)
    imap2 = (bb2.reshape(-1)[None, :] ==
             np.arange(B2p)[:, None]).astype(np.float32)           # (B2p, N2)

    args = [cols1, w1t, w2t, w3t, w4t, gam, bet,
            jnp.asarray(mask2), jnp.asarray(mask3), jnp.asarray(mask4),
            jnp.asarray(imap1), jnp.asarray(imap1.T),
            jnp.asarray(imap2), jnp.asarray(imap2.T)]

    def full_spec(shape):
        nd = len(shape)
        return pl.BlockSpec(tuple(shape), lambda i, nd=nd: (0,) * nd)

    out = pl.pallas_call(
        functools.partial(_fused_encoder_kernel,
                          B=Bn, H=H, W=W, F1=F1, F2=F2),
        out_shape=jax.ShapeDtypeStruct((F2, Bn * P2), jnp.float32),
        grid_spec=pltpu.PrefetchScalarGridSpec(
            num_scalar_prefetch=0,
            grid=(1,),
            in_specs=[full_spec(a.shape) for a in args],
            out_specs=full_spec((F2, Bn * P2)),
            scratch_shapes=[
                pltpu.VMEM((9 * F1, N1), jnp.float32),   # conv2 tap stack
                pltpu.VMEM((9 * F1, N2), jnp.float32),   # conv3 tap stack
                pltpu.VMEM((9 * F2, N2), jnp.float32),   # conv4 tap stack
            ],
        ),
        compiler_params=pltpu.CompilerParams(
            dimension_semantics=("arbitrary",)),
    )(*args)

    # (F2, B*P2) lane-dense result -> NCHW.
    return out.reshape(F2, Bn, H2, W2).transpose(1, 0, 2, 3)


# ----------------------- parameters (deterministic) ------------------------ #
def init_params(key, input_channels=2, n_stages=2, features_per_stage=(8, 16),
                kernel_size=3, strides=(1, 2), n_conv_per_stage=(2, 2)):
    num_separate_norms = input_channels        # as in the module's __init__
    cin = 1                                    # each branch has 1 channel
    params = []
    for s in range(n_stages):
        stage_params = []
        for c in range(n_conv_per_stage[s]):
            cout = features_per_stage[s]
            key, k1, k2, k3 = jax.random.split(key, 4)
            fan_in = kernel_size * kernel_size * cin
            w = jax.random.normal(k1, (kernel_size, kernel_size, cin, cout),
                                  jnp.float32) * (2.0 / fan_in) ** 0.5 * 0.5
            gamma = 1.0 + 0.1 * jax.random.normal(
                k2, (num_separate_norms, cout), jnp.float32)
            beta = 0.1 * jax.random.normal(
                k3, (num_separate_norms, cout), jnp.float32)
            stage_params.append(dict(
                w=w.reshape(kernel_size * kernel_size * cin, cout),
                gamma=gamma, beta=beta,
                k=kernel_size, stride=(strides[s] if c == 0 else 1)))
            cin = cout
        params.append(stage_params)
    return params


# --------------------------- pure-JAX reference ----------------------------- #
def _ref_block(x_nhwc, w_mat, gamma, beta, k, stride):
    cin = x_nhwc.shape[-1]
    cout = w_mat.shape[1]
    w = w_mat.reshape(k, k, cin, cout)
    pad = (k - 1) // 2
    y = lax.conv_general_dilated(x_nhwc, w, (stride, stride),
                                 [(pad, pad), (pad, pad)],
                                 dimension_numbers=('NHWC', 'HWIO', 'NHWC'))
    mean = jnp.mean(y, axis=(1, 2), keepdims=True)
    var = jnp.mean((y - mean) ** 2, axis=(1, 2), keepdims=True)
    yn = (y - mean) * lax.rsqrt(var + EPS) * gamma + beta
    return jnp.where(yn >= 0, yn, NEG_SLOPE * yn)


def _ref_forward(x_nchw, params):
    x0 = jnp.transpose(x_nchw[:, 0:1], (0, 2, 3, 1))
    x1 = jnp.transpose(x_nchw[:, 1:2], (0, 2, 3, 1))
    out = None
    for stage_params in params:
        for cp in stage_params:
            x0 = _ref_block(x0, cp['w'], cp['gamma'][0], cp['beta'][0],
                            cp['k'], cp['stride'])
            x1 = _ref_block(x1, cp['w'], cp['gamma'][1], cp['beta'][1],
                            cp['k'], cp['stride'])
        out = jnp.transpose(x0 + x1, (0, 3, 1, 2))
    return out


if __name__ == "__main__":
    key = jax.random.PRNGKey(0)
    kx, kp = jax.random.split(key)
    # batch=2, input_channels=2 (-> two separate-norm branches), spatial 16x16
    x = jax.random.normal(kx, (2, 2, 16, 16), jnp.float32)
    params = init_params(kp)

    fwd = jax.jit(lambda xx: encoder_forward(xx, params))
    out = jax.block_until_ready(fwd(x))

    assert out.shape == (2, 16, 8, 8), out.shape
    ref = jax.block_until_ready(_ref_forward(x, params))
    assert jnp.allclose(out, ref, atol=1e-3, rtol=1e-3)

    print("KERNEL_OK")
</pallas_src>

<mosaic_0001>
module attributes {stable_mosaic.version = 11 : i64} {
  func.func @_fused_encoder_kernel(%arg0: i32, %arg1: memref<16x1024xf32, #tpu.memory_space<vmem>>, %arg2: memref<8x16xf32, #tpu.memory_space<vmem>>, %arg3: memref<8x72xf32, #tpu.memory_space<vmem>>, %arg4: memref<16x72xf32, #tpu.memory_space<vmem>>, %arg5: memref<16x144xf32, #tpu.memory_space<vmem>>, %arg6: memref<4x16x8xf32, #tpu.memory_space<vmem>>, %arg7: memref<4x16x8xf32, #tpu.memory_space<vmem>>, %arg8: memref<9x1024xf32, #tpu.memory_space<vmem>>, %arg9: memref<9x256xf32, #tpu.memory_space<vmem>>, %arg10: memref<9x256xf32, #tpu.memory_space<vmem>>, %arg11: memref<8x1024xf32, #tpu.memory_space<vmem>>, %arg12: memref<1024x8xf32, #tpu.memory_space<vmem>>, %arg13: memref<8x256xf32, #tpu.memory_space<vmem>>, %arg14: memref<256x8xf32, #tpu.memory_space<vmem>>, %arg15: memref<16x128xf32, #tpu.memory_space<vmem>>, %arg16: memref<72x1024xf32, #tpu.memory_space<vmem>>, %arg17: memref<72x256xf32, #tpu.memory_space<vmem>>, %arg18: memref<144x256xf32, #tpu.memory_space<vmem>>) attributes {dimension_semantics = [#tpu.dimension_semantics<arbitrary>], iteration_bounds = array<i64: 1>, scalar_prefetch = 0 : i64, scratch_operands = 3 : i64, tpu.core_type = #tpu.core_type<tc>, window_params = [{pipeline_mode = #tpu.pipeline_mode<synchronous>, transform_indices = @transform_0, window_bounds = array<i64: 16, 1024>}, {pipeline_mode = #tpu.pipeline_mode<synchronous>, transform_indices = @transform_1, window_bounds = array<i64: 8, 16>}, {pipeline_mode = #tpu.pipeline_mode<synchronous>, transform_indices = @transform_2, window_bounds = array<i64: 8, 72>}, {pipeline_mode = #tpu.pipeline_mode<synchronous>, transform_indices = @transform_3, window_bounds = array<i64: 16, 72>}, {pipeline_mode = #tpu.pipeline_mode<synchronous>, transform_indices = @transform_4, window_bounds = array<i64: 16, 144>}, {pipeline_mode = #tpu.pipeline_mode<synchronous>, transform_indices = @transform_5, window_bounds = array<i64: 4, 16, 8>}, {pipeline_mode = #tpu.pipeline_mode<synchronous>, transform_indices = @transform_6, window_bounds = array<i64: 4, 16, 8>}, {pipeline_mode = #tpu.pipeline_mode<synchronous>, transform_indices = @transform_7, window_bounds = array<i64: 9, 1024>}, {pipeline_mode = #tpu.pipeline_mode<synchronous>, transform_indices = @transform_8, window_bounds = array<i64: 9, 256>}, {pipeline_mode = #tpu.pipeline_mode<synchronous>, transform_indices = @transform_9, window_bounds = array<i64: 9, 256>}, {pipeline_mode = #tpu.pipeline_mode<synchronous>, transform_indices = @transform_10, window_bounds = array<i64: 8, 1024>}, {pipeline_mode = #tpu.pipeline_mode<synchronous>, transform_indices = @transform_11, window_bounds = array<i64: 1024, 8>}, {pipeline_mode = #tpu.pipeline_mode<synchronous>, transform_indices = @transform_12, window_bounds = array<i64: 8, 256>}, {pipeline_mode = #tpu.pipeline_mode<synchronous>, transform_indices = @transform_13, window_bounds = array<i64: 256, 8>}, {pipeline_mode = #tpu.pipeline_mode<synchronous>, transform_indices = @transform_14, window_bounds = array<i64: 16, 128>}]} {
    %c0 = arith.constant 0 : index
    %c0_0 = arith.constant 0 : index
    %0 = vector.load %arg11[%c0, %c0_0] : memref<8x1024xf32, #tpu.memory_space<vmem>>, vector<8x1024xf32>
    %c0_1 = arith.constant 0 : index
    %c0_2 = arith.constant 0 : index
    %1 = vector.load %arg12[%c0_1, %c0_2] : memref<1024x8xf32, #tpu.memory_space<vmem>>, vector<1024x8xf32>
    %c0_3 = arith.constant 0 : index
    %c0_4 = arith.constant 0 : index
    %2 = vector.load %arg13[%c0_3, %c0_4] : memref<8x256xf32, #tpu.memory_space<vmem>>, vector<8x256xf32>
    %c0_5 = arith.constant 0 : index
    %c0_6 = arith.constant 0 : index
    %3 = vector.load %arg14[%c0_5, %c0_6] : memref<256x8xf32, #tpu.memory_space<vmem>>, vector<256x8xf32>
    %c0_7 = arith.constant 0 : index
    %c0_8 = arith.constant 0 : index
    %4 = vector.load %arg2[%c0_7, %c0_8] : memref<8x16xf32, #tpu.memory_space<vmem>>, vector<8x16xf32>
    %c0_9 = arith.constant 0 : index
    %c0_10 = arith.constant 0 : index
    %5 = vector.load %arg1[%c0_9, %c0_10] : memref<16x1024xf32, #tpu.memory_space<vmem>>, vector<16x1024xf32>
    %cst = arith.constant dense<0.000000e+00> : vector<8x1024xf32>
    %6 = tpu.matmul %4, %5, %cst {dimension_numbers = #tpu.dot_dimension_numbers<[1], [0], [0], [1], [0, 0, 1, 1], [], []>} : vector<8x16xf32>, vector<16x1024xf32>, vector<8x1024xf32> -> vector<8x1024xf32>
    %cst_11 = arith.constant dense<0.000000e+00> : vector<8x8xf32>
    %7 = tpu.matmul %6, %1, %cst_11 {dimension_numbers = #tpu.dot_dimension_numbers<[1], [0], [0], [1], [0, 0, 1, 1], [], []>} : vector<8x1024xf32>, vector<1024x8xf32>, vector<8x8xf32> -> vector<8x8xf32>
    %8 = arith.mulf %6, %6 : vector<8x1024xf32>
    %cst_12 = arith.constant dense<0.000000e+00> : vector<8x8xf32>
    %9 = tpu.matmul %8, %1, %cst_12 {dimension_numbers = #tpu.dot_dimension_numbers<[1], [0], [0], [1], [0, 0, 1, 1], [], []>} : vector<8x1024xf32>, vector<1024x8xf32>, vector<8x8xf32> -> vector<8x8xf32>
    %cst_13 = arith.constant 3.906250e-03 : f32
    %10 = vector.broadcast %cst_13 : f32 to vector<8x8xf32>
    %11 = arith.mulf %7, %10 : vector<8x8xf32>
    %cst_14 = arith.constant 3.906250e-03 : f32
    %12 = vector.broadcast %cst_14 : f32 to vector<8x8xf32>
    %13 = arith.mulf %9, %12 : vector<8x8xf32>
    %14 = arith.mulf %11, %11 : vector<8x8xf32>
    %15 = arith.subf %13, %14 : vector<8x8xf32>
    %cst_15 = arith.constant 0.000000e+00 : f32
    %16 = vector.broadcast %cst_15 : f32 to vector<8x8xf32>
    %17 = arith.maximumf %15, %16 : vector<8x8xf32>
    %c0_16 = arith.constant 0 : index
    %c0_17 = arith.constant 0 : index
    %c0_18 = arith.constant 0 : index
    %18 = vector.load %arg6[%c0_16, %c0_17, %c0_18] : memref<4x16x8xf32, #tpu.memory_space<vmem>>, vector<1x8x8xf32>
    %19 = vector.shape_cast %18 : vector<1x8x8xf32> to vector<8x8xf32>
    %c0_19 = arith.constant 0 : index
    %c0_20 = arith.constant 0 : index
    %c0_21 = arith.constant 0 : index
    %20 = vector.load %arg7[%c0_19, %c0_20, %c0_21] : memref<4x16x8xf32, #tpu.memory_space<vmem>>, vector<1x8x8xf32>
    %21 = vector.shape_cast %20 : vector<1x8x8xf32> to vector<8x8xf32>
    %cst_22 = arith.constant 9.99999974E-6 : f32
    %22 = vector.broadcast %cst_22 : f32 to vector<8x8xf32>
    %23 = arith.addf %17, %22 : vector<8x8xf32>
    %24 = math.rsqrt %23 : vector<8x8xf32>
    %25 = arith.mulf %19, %24 : vector<8x8xf32>
    %26 = arith.mulf %11, %25 : vector<8x8xf32>
    %27 = arith.subf %21, %26 : vector<8x8xf32>
    %cst_23 = arith.constant dense<0.000000e+00> : vector<8x1024xf32>
    %28 = tpu.matmul %25, %0, %cst_23 {dimension_numbers = #tpu.dot_dimension_numbers<[1], [0], [0], [1], [0, 0, 1, 1], [], []>} : vector<8x8xf32>, vector<8x1024xf32>, vector<8x1024xf32> -> vector<8x1024xf32>
    %29 = arith.mulf %6, %28 : vector<8x1024xf32>
    %cst_24 = arith.constant dense<0.000000e+00> : vector<8x1024xf32>
    %30 = tpu.matmul %27, %0, %cst_24 {dimension_numbers = #tpu.dot_dimension_numbers<[1], [0], [0], [1], [0, 0, 1, 1], [], []>} : vector<8x8xf32>, vector<8x1024xf32>, vector<8x1024xf32> -> vector<8x1024xf32>
    %31 = arith.addf %29, %30 : vector<8x1024xf32>
    %cst_25 = arith.constant 0.000000e+00 : f32
    %32 = vector.broadcast %cst_25 : f32 to vector<8x1024xf32>
    %33 = arith.cmpf oge, %31, %32 : vector<8x1024xf32>
    %cst_26 = arith.constant 0.00999999977 : f32
    %34 = vector.broadcast %cst_26 : f32 to vector<8x1024xf32>
    %35 = arith.mulf %34, %31 : vector<8x1024xf32>
    %36 = arith.select %33, %31, %35 : vector<8x1024xi1>, vector<8x1024xf32>
    %37 = vector.extract_strided_slice %36 {offsets = [0, 759], sizes = [8, 256], strides = [1, 1]} : vector<8x1024xf32> to vector<8x256xf32>
    %c0_27 = arith.constant 0 : index
    %c0_28 = arith.constant 0 : index
    %38 = vector.load %arg8[%c0_27, %c0_28] : memref<9x1024xf32, #tpu.memory_space<vmem>>, vector<1x256xf32>
    %39 = vector.broadcast %38 : vector<1x256xf32> to vector<8x256xf32>
    %40 = arith.mulf %37, %39 : vector<8x256xf32>
    %c0_29 = arith.constant 0 : index
    %c0_30 = arith.constant 0 : index
    %41 = vector.load %arg16[%c0_29, %c0_30] : memref<72x1024xf32, #tpu.memory_space<vmem>>, vector<8x256xf32>
    tpu.vector_store %arg16[%c0_29, %c0_30], %40 {strides = array<i32>} : memref<72x1024xf32, #tpu.memory_space<vmem>>, vector<8x256xf32>,
    %42 = vector.extract_strided_slice %36 {offsets = [0, 504], sizes = [8, 256], strides = [1, 1]} : vector<8x1024xf32> to vector<8x256xf32>
    %c0_31 = arith.constant 0 : index
    %c256 = arith.constant 256 : index
    %43 = vector.load %arg8[%c0_31, %c256] : memref<9x1024xf32, #tpu.memory_space<vmem>>, vector<1x256xf32>
    %44 = vector.broadcast %43 : vector<1x256xf32> to vector<8x256xf32>
    %45 = arith.mulf %42, %44 : vector<8x256xf32>
    %c0_32 = arith.constant 0 : index
    %c256_33 = arith.constant 256 : index
    %46 = vector.load %arg16[%c0_32, %c256_33] : memref<72x1024xf32, #tpu.memory_space<vmem>>, vector<8x256xf32>
    tpu.vector_store %arg16[%c0_32, %c256_33], %45 {strides = array<i32>} : memref<72x1024xf32, #tpu.memory_space<vmem>>, vector<8x256xf32>,
    %47 = vector.extract_strided_slice %36 {offsets = [0, 255], sizes = [8, 256], strides = [1, 1]} : vector<8x1024xf32> to vector<8x256xf32>
    %c0_34 = arith.constant 0 : index
    %c512 = arith.constant 512 : index
    %48 = vector.load %arg8[%c0_34, %c512] : memref<9x1024xf32, #tpu.memory_space<vmem>>, vector<1x256xf32>
    %49 = vector.broadcast %48 : vector<1x256xf32> to vector<8x256xf32>
    %50 = arith.mulf %47, %49 : vector<8x256xf32>
    %c0_35 = arith.constant 0 : index
    %c512_36 = arith.constant 512 : index
    %51 = vector.load %arg16[%c0_35, %c512_36] : memref<72x1024xf32, #tpu.memory_space<vmem>>, vector<8x256xf32>
    tpu.vector_store %arg16[%c0_35, %c512_36], %50 {strides = array<i32>} : memref<72x1024xf32, #tpu.memory_space<vmem>>, vector<8x256xf32>,
    %52 = vector.extract_strided_slice %36 {offsets = [0, 0], sizes = [8, 256], strides = [1, 1]} : vector<8x1024xf32> to vector<8x256xf32>
    %c0_37 = arith.constant 0 : index
    %c768 = arith.constant 768 : index
    %53 = vector.load %arg8[%c0_37, %c768] : memref<9x1024xf32, #tpu.memory_space<vmem>>, vector<1x256xf32>
    %54 = vector.broadcast %53 : vector<1x256xf32> to vector<8x256xf32>
    %55 = arith.mulf %52, %54 : vector<8x256xf32>
    %c0_38 = arith.constant 0 : index
    %c768_39 = arith.constant 768 : index
    %56 = vector.load %arg16[%c0_38, %c768_39] : memref<72x1024xf32, #tpu.memory_space<vmem>>, vector<8x256xf32>
    tpu.vector_store %arg16[%c0_38, %c768_39], %55 {strides = array<i32>} : memref<72x1024xf32, #tpu.memory_space<vmem>>, vector<8x256xf32>,
    %57 = vector.extract_strided_slice %36 {offsets = [0, 504], sizes = [8, 256], strides = [1, 1]} : vector<8x1024xf32> to vector<8x256xf32>
    %c1 = arith.constant 1 : index
    %c0_40 = arith.constant 0 : index
    %58 = vector.load %arg8[%c1, %c0_40] : memref<9x1024xf32, #tpu.memory_space<vmem>>, vector<1x256xf32>
    %59 = vector.broadcast %58 : vector<1x256xf32> to vector<8x256xf32>
    %60 = arith.mulf %57, %59 : vector<8x256xf32>
    %c8 = arith.constant 8 : index
    %c0_41 = arith.constant 0 : index
    %61 = vector.load %arg16[%c8, %c0_41] : memref<72x1024xf32, #tpu.memory_space<vmem>>, vector<8x256xf32>
    tpu.vector_store %arg16[%c8, %c0_41], %60 {strides = array<i32>} : memref<72x1024xf32, #tpu.memory_space<vmem>>, vector<8x256xf32>,
    %62 = vector.extract_strided_slice %36 {offsets = [0, 760], sizes = [8, 256], strides = [1, 1]} : vector<8x1024xf32> to vector<8x256xf32>
    %c1_42 = arith.constant 1 : index
    %c256_43 = arith.constant 256 : index
    %63 = vector.load %arg8[%c1_42, %c256_43] : memref<9x1024xf32, #tpu.memory_space<vmem>>, vector<1x256xf32>
    %64 = vector.broadcast %63 : vector<1x256xf32> to vector<8x256xf32>
    %65 = arith.mulf %62, %64 : vector<8x256xf32>
    %c8_44 = arith.constant 8 : index
    %c256_45 = arith.constant 256 : index
    %66 = vector.load %arg16[%c8_44, %c256_45] : memref<72x1024xf32, #tpu.memory_space<vmem>>, vector<8x256xf32>
    tpu.vector_store %arg16[%c8_44, %c256_45], %65 {strides = array<i32>} : memref<72x1024xf32, #tpu.memory_space<vmem>>, vector<8x256xf32>,
    %67 = vector.extract_strided_slice %36 {offsets = [0, 0], sizes = [8, 256], strides = [1, 1]} : vector<8x1024xf32> to vector<8x256xf32>
    %c1_46 = arith.constant 1 : index
    %c512_47 = arith.constant 512 : index
    %68 = vector.load %arg8[%c1_46, %c512_47] : memref<9x1024xf32, #tpu.memory_space<vmem>>, vector<1x256xf32>
    %69 = vector.broadcast %68 : vector<1x256xf32> to vector<8x256xf32>
    %70 = arith.mulf %67, %69 : vector<8x256xf32>
    %c8_48 = arith.constant 8 : index
    %c512_49 = arith.constant 512 : index
    %71 = vector.load %arg16[%c8_48, %c512_49] : memref<72x1024xf32, #tpu.memory_space<vmem>>, vector<8x256xf32>
    tpu.vector_store %arg16[%c8_48, %c512_49], %70 {strides = array<i32>} : memref<72x1024xf32, #tpu.memory_space<vmem>>, vector<8x256xf32>,
    %72 = vector.extract_strided_slice %36 {offsets = [0, 256], sizes = [8, 256], strides = [1, 1]} : vector<8x1024xf32> to vector<8x256xf32>
    %c1_50 = arith.constant 1 : index
    %c768_51 = arith.constant 768 : index
    %73 = vector.load %arg8[%c1_50, %c768_51] : memref<9x1024xf32, #tpu.memory_space<vmem>>, vector<1x256xf32>
    %74 = vector.broadcast %73 : vector<1x256xf32> to vector<8x256xf32>
    %75 = arith.mulf %72, %74 : vector<8x256xf32>
    %c8_52 = arith.constant 8 : index
    %c768_53 = arith.constant 768 : index
    %76 = vector.load %arg16[%c8_52, %c768_53] : memref<72x1024xf32, #tpu.memory_space<vmem>>, vector<8x256xf32>
    tpu.vector_store %arg16[%c8_52, %c768_53], %75 {strides = array<i32>} : memref<72x1024xf32, #tpu.memory_space<vmem>>, vector<8x256xf32>,
    %77 = vector.extract_strided_slice %36 {offsets = [0, 760], sizes = [8, 256], strides = [1, 1]} : vector<8x1024xf32> to vector<8x256xf32>
    %c2 = arith.constant 2 : index
    %c0_54 = arith.constant 0 : index
    %78 = vector.load %arg8[%c2, %c0_54] : memref<9x1024xf32, #tpu.memory_space<vmem>>, vector<1x256xf32>
    %79 = vector.broadcast %78 : vector<1x256xf32> to vector<8x256xf32>
    %80 = arith.mulf %77, %79 : vector<8x256xf32>
    %c16 = arith.constant 16 : index
    %c0_55 = arith.constant 0 : index
    %81 = vector.load %arg16[%c16, %c0_55] : memref<72x1024xf32, #tpu.memory_space<vmem>>, vector<8x256xf32>
    tpu.vector_store %arg16[%c16, %c0_55], %80 {strides = array<i32>} : memref<72x1024xf32, #tpu.memory_space<vmem>>, vector<8x256xf32>,
    %82 = vector.extract_strided_slice %36 {offsets = [0, 505], sizes = [8, 256], strides = [1, 1]} : vector<8x1024xf32> to vector<8x256xf32>
    %c2_56 = arith.constant 2 : index
    %c256_57 = arith.constant 256 : index
    %83 = vector.load %arg8[%c2_56, %c256_57] : memref<9x1024xf32, #tpu.memory_space<vmem>>, vector<1x256xf32>
    %84 = vector.broadcast %83 : vector<1x256xf32> to vector<8x256xf32>
    %85 = arith.mulf %82, %84 : vector<8x256xf32>
    %c16_58 = arith.constant 16 : index
    %c256_59 = arith.constant 256 : index
    %86 = vector.load %arg16[%c16_58, %c256_59] : memref<72x1024xf32, #tpu.memory_space<vmem>>, vector<8x256xf32>
    tpu.vector_store %arg16[%c16_58, %c256_59], %85 {strides = array<i32>} : memref<72x1024xf32, #tpu.memory_space<vmem>>, vector<8x256xf32>,
    %87 = vector.extract_strided_slice %36 {offsets = [0, 256], sizes = [8, 256], strides = [1, 1]} : vector<8x1024xf32> to vector<8x256xf32>
    %c2_60 = arith.constant 2 : index
    %c512_61 = arith.constant 512 : index
    %88 = vector.load %arg8[%c2_60, %c512_61] : memref<9x1024xf32, #tpu.memory_space<vmem>>, vector<1x256xf32>
    %89 = vector.broadcast %88 : vector<1x256xf32> to vector<8x256xf32>
    %90 = arith.mulf %87, %89 : vector<8x256xf32>
    %c16_62 = arith.constant 16 : index
    %c512_63 = arith.constant 512 : index
    %91 = vector.load %arg16[%c16_62, %c512_63] : memref<72x1024xf32, #tpu.memory_space<vmem>>, vector<8x256xf32>
    tpu.vector_store %arg16[%c16_62, %c512_63], %90 {strides = array<i32>} : memref<72x1024xf32, #tpu.memory_space<vmem>>, vector<8x256xf32>,
    %92 = vector.extract_strided_slice %36 {offsets = [0, 1], sizes = [8, 256], strides = [1, 1]} : vector<8x1024xf32> to vector<8x256xf32>
    %c2_64 = arith.constant 2 : index
    %c768_65 = arith.constant 768 : index
    %93 = vector.load %arg8[%c2_64, %c768_65] : memref<9x1024xf32, #tpu.memory_space<vmem>>, vector<1x256xf32>
    %94 = vector.broadcast %93 : vector<1x256xf32> to vector<8x256xf32>
    %95 = arith.mulf %92, %94 : vector<8x256xf32>
    %c16_66 = arith.constant 16 : index
    %c768_67 = arith.constant 768 : index
    %96 = vector.load %arg16[%c16_66, %c768_67] : memref<72x1024xf32, #tpu.memory_space<vmem>>, vector<8x256xf32>
    tpu.vector_store %arg16[%c16_66, %c768_67], %95 {strides = array<i32>} : memref<72x1024xf32, #tpu.memory_space<vmem>>, vector<8x256xf32>,
    %97 = vector.extract_strided_slice %36 {offsets = [0, 255], sizes = [8, 256], strides = [1, 1]} : vector<8x1024xf32> to vector<8x256xf32>
    %c3 = arith.constant 3 : index
    %c0_68 = arith.constant 0 : index
    %98 = vector.load %arg8[%c3, %c0_68] : memref<9x1024xf32, #tpu.memory_space<vmem>>, vector<1x256xf32>
    %99 = vector.broadcast %98 : vector<1x256xf32> to vector<8x256xf32>
    %100 = arith.mulf %97, %99 : vector<8x256xf32>
    %c24 = arith.constant 24 : index
    %c0_69 = arith.constant 0 : index
    %101 = vector.load %arg16[%c24, %c0_69] : memref<72x1024xf32, #tpu.memory_space<vmem>>, vector<8x256xf32>
    tpu.vector_store %arg16[%c24, %c0_69], %100 {strides = array<i32>} : memref<72x1024xf32, #tpu.memory_space<vmem>>, vector<8x256xf32>,
    %102 = vector.extract_strided_slice %36 {offsets = [0, 0], sizes = [8, 256], strides = [1, 1]} : vector<8x1024xf32> to vector<8x256xf32>
    %c3_70 = arith.constant 3 : index
    %c256_71 = arith.constant 256 : index
    %103 = vector.load %arg8[%c3_70, %c256_71] : memref<9x1024xf32, #tpu.memory_space<vmem>>, vector<1x256xf32>
    %104 = vector.broadcast %103 : vector<1x256xf32> to vector<8x256xf32>
    %105 = arith.mulf %102, %104 : vector<8x256xf32>
    %c24_72 = arith.constant 24 : index
    %c256_73 = arith.constant 256 : index
    %106 = vector.load %arg16[%c24_72, %c256_73] : memref<72x1024xf32, #tpu.memory_space<vmem>>, vector<8x256xf32>
    tpu.vector_store %arg16[%c24_72, %c256_73], %105 {strides = array<i32>} : memref<72x1024xf32, #tpu.memory_space<vmem>>, vector<8x256xf32>,
    %107 = vector.extract_strided_slice %36 {offsets = [0, 767], sizes = [8, 256], strides = [1, 1]} : vector<8x1024xf32> to vector<8x256xf32>
    %c3_74 = arith.constant 3 : index
    %c512_75 = arith.constant 512 : index
    %108 = vector.load %arg8[%c3_74, %c512_75] : memref<9x1024xf32, #tpu.memory_space<vmem>>, vector<1x256xf32>
    %109 = vector.broadcast %108 : vector<1x256xf32> to vector<8x256xf32>
    %110 = arith.mulf %107, %109 : vector<8x256xf32>
    %c24_76 = arith.constant 24 : index
    %c512_77 = arith.constant 512 : index
    %111 = vector.load %arg16[%c24_76, %c512_77] : memref<72x1024xf32, #tpu.memory_space<vmem>>, vector<8x256xf32>
    tpu.vector_store %arg16[%c24_76, %c512_77], %110 {strides = array<i32>} : memref<72x1024xf32, #tpu.memory_space<vmem>>, vector<8x256xf32>,
    %112 = vector.extract_strided_slice %36 {offsets = [0, 512], sizes = [8, 256], strides = [1, 1]} : vector<8x1024xf32> to vector<8x256xf32>
    %c3_78 = arith.constant 3 : index
    %c768_79 = arith.constant 768 : index
    %113 = vector.load %arg8[%c3_78, %c768_79] : memref<9x1024xf32, #tpu.memory_space<vmem>>, vector<1x256xf32>
    %114 = vector.broadcast %113 : vector<1x256xf32> to vector<8x256xf32>
    %115 = arith.mulf %112, %114 : vector<8x256xf32>
    %c24_80 = arith.constant 24 : index
    %c768_81 = arith.constant 768 : index
    %116 = vector.load %arg16[%c24_80, %c768_81] : memref<72x1024xf32, #tpu.memory_space<vmem>>, vector<8x256xf32>
    tpu.vector_store %arg16[%c24_80, %c768_81], %115 {strides = array<i32>} : memref<72x1024xf32, #tpu.memory_space<vmem>>, vector<8x256xf32>,
    %117 = vector.extract_strided_slice %36 {offsets = [0, 0], sizes = [8, 256], strides = [1, 1]} : vector<8x1024xf32> to vector<8x256xf32>
    %c4 = arith.constant 4 : index
    %c0_82 = arith.constant 0 : index
    %118 = vector.load %arg8[%c4, %c0_82] : memref<9x1024xf32, #tpu.memory_space<vmem>>, vector<1x256xf32>
    %119 = vector.broadcast %118 : vector<1x256xf32> to vector<8x256xf32>
    %120 = arith.mulf %117, %119 : vector<8x256xf32>
    %c32 = arith.constant 32 : index
    %c0_83 = arith.constant 0 : index
    %121 = vector.load %arg16[%c32, %c0_83] : memref<72x1024xf32, #tpu.memory_space<vmem>>, vector<8x256xf32>
    tpu.vector_store %arg16[%c32, %c0_83], %120 {strides = array<i32>} : memref<72x1024xf32, #tpu.memory_space<vmem>>, vector<8x256xf32>,
    %122 = vector.extract_strided_slice %36 {offsets = [0, 256], sizes = [8, 256], strides = [1, 1]} : vector<8x1024xf32> to vector<8x256xf32>
    %c4_84 = arith.constant 4 : index
    %c256_85 = arith.constant 256 : index
    %123 = vector.load %arg8[%c4_84, %c256_85] : memref<9x1024xf32, #tpu.memory_space<vmem>>, vector<1x256xf32>
    %124 = vector.broadcast %123 : vector<1x256xf32> to vector<8x256xf32>
    %125 = arith.mulf %122, %124 : vector<8x256xf32>
    %c32_86 = arith.constant 32 : index
    %c256_87 = arith.constant 256 : index
    %126 = vector.load %arg16[%c32_86, %c256_87] : memref<72x1024xf32, #tpu.memory_space<vmem>>, vector<8x256xf32>
    tpu.vector_store %arg16[%c32_86, %c256_87], %125 {strides = array<i32>} : memref<72x1024xf32, #tpu.memory_space<vmem>>, vector<8x256xf32>,
    %127 = vector.extract_strided_slice %36 {offsets = [0, 512], sizes = [8, 256], strides = [1, 1]} : vector<8x1024xf32> to vector<8x256xf32>
    %c4_88 = arith.constant 4 : index
    %c512_89 = arith.constant 512 : index
    %128 = vector.load %arg8[%c4_88, %c512_89] : memref<9x1024xf32, #tpu.memory_space<vmem>>, vector<1x256xf32>
    %129 = vector.broadcast %128 : vector<1x256xf32> to vector<8x256xf32>
    %130 = arith.mulf %127, %129 : vector<8x256xf32>
    %c32_90 = arith.constant 32 : index
    %c512_91 = arith.constant 512 : index
    %131 = vector.load %arg16[%c32_90, %c512_91] : memref<72x1024xf32, #tpu.memory_space<vmem>>, vector<8x256xf32>
    tpu.vector_store %arg16[%c32_90, %c512_91], %130 {strides = array<i32>} : memref<72x1024xf32, #tpu.memory_space<vmem>>, vector<8x256xf32>,
    %132 = vector.extract_strided_slice %36 {offsets = [0, 768], sizes = [8, 256], strides = [1, 1]} : vector<8x1024xf32> to vector<8x256xf32>
    %c4_92 = arith.constant 4 : index
    %c768_93 = arith.constant 768 : index
    %133 = vector.load %arg8[%c4_92, %c768_93] : memref<9x1024xf32, #tpu.memory_space<vmem>>, vector<1x256xf32>
    %134 = vector.broadcast %133 : vector<1x256xf32> to vector<8x256xf32>
    %135 = arith.mulf %132, %134 : vector<8x256xf32>
    %c32_94 = arith.constant 32 : index
    %c768_95 = arith.constant 768 : index
    %136 = vector.load %arg16[%c32_94, %c768_95] : memref<72x1024xf32, #tpu.memory_space<vmem>>, vector<8x256xf32>
    tpu.vector_store %arg16[%c32_94, %c768_95], %135 {strides = array<i32>} : memref<72x1024xf32, #tpu.memory_space<vmem>>, vector<8x256xf32>,
    %137 = vector.extract_strided_slice %36 {offsets = [0, 256], sizes = [8, 256], strides = [1, 1]} : vector<8x1024xf32> to vector<8x256xf32>
    %c5 = arith.constant 5 : index
    %c0_96 = arith.constant 0 : index
    %138 = vector.load %arg8[%c5, %c0_96] : memref<9x1024xf32, #tpu.memory_space<vmem>>, vector<1x256xf32>
    %139 = vector.broadcast %138 : vector<1x256xf32> to vector<8x256xf32>
    %140 = arith.mulf %137, %139 : vector<8x256xf32>
    %c40 = arith.constant 40 : index
    %c0_97 = arith.constant 0 : index
    %141 = vector.load %arg16[%c40, %c0_97] : memref<72x1024xf32, #tpu.memory_space<vmem>>, vector<8x256xf32>
    tpu.vector_store %arg16[%c40, %c0_97], %140 {strides = array<i32>} : memref<72x1024xf32, #tpu.memory_space<vmem>>, vector<8x256xf32>,
    %142 = vector.extract_strided_slice %36 {offsets = [0, 1], sizes = [8, 256], strides = [1, 1]} : vector<8x1024xf32> to vector<8x256xf32>
    %c5_98 = arith.constant 5 : index
    %c256_99 = arith.constant 256 : index
    %143 = vector.load %arg8[%c5_98, %c256_99] : memref<9x1024xf32, #tpu.memory_space<vmem>>, vector<1x256xf32>
    %144 = vector.broadcast %143 : vector<1x256xf32> to vector<8x256xf32>
    %145 = arith.mulf %142, %144 : vector<8x256xf32>
    %c40_100 = arith.constant 40 : index
    %c256_101 = arith.constant 256 : index
    %146 = vector.load %arg16[%c40_100, %c256_101] : memref<72x1024xf32, #tpu.memory_space<vmem>>, vector<8x256xf32>
    tpu.vector_store %arg16[%c40_100, %c256_101], %145 {strides = array<i32>} : memref<72x1024xf32, #tpu.memory_space<vmem>>, vector<8x256xf32>,
    %147 = vector.extract_strided_slice %36 {offsets = [0, 768], sizes = [8, 256], strides = [1, 1]} : vector<8x1024xf32> to vector<8x256xf32>
    %c5_102 = arith.constant 5 : index
    %c512_103 = arith.constant 512 : index
    %148 = vector.load %arg8[%c5_102, %c512_103] : memref<9x1024xf32, #tpu.memory_space<vmem>>, vector<1x256xf32>
    %149 = vector.broadcast %148 : vector<1x256xf32> to vector<8x256xf32>
    %150 = arith.mulf %147, %149 : vector<8x256xf32>
    %c40_104 = arith.constant 40 : index
    %c512_105 = arith.constant 512 : index
    %151 = vector.load %arg16[%c40_104, %c512_105] : memref<72x1024xf32, #tpu.memory_space<vmem>>, vector<8x256xf32>
    tpu.vector_store %arg16[%c40_104, %c512_105], %150 {strides = array<i32>} : memref<72x1024xf32, #tpu.memory_space<vmem>>, vector<8x256xf32>,
    %152 = vector.extract_strided_slice %36 {offsets = [0, 513], sizes = [8, 256], strides = [1, 1]} : vector<8x1024xf32> to vector<8x256xf32>
    %c5_106 = arith.constant 5 : index
    %c768_107 = arith.constant 768 : index
    %153 = vector.load %arg8[%c5_106, %c768_107] : memref<9x1024xf32, #tpu.memory_space<vmem>>, vector<1x256xf32>
    %154 = vector.broadcast %153 : vector<1x256xf32> to vector<8x256xf32>
    %155 = arith.mulf %152, %154 : vector<8x256xf32>
    %c40_108 = arith.constant 40 : index
    %c768_109 = arith.constant 768 : index
    %156 = vector.load %arg16[%c40_108, %c768_109] : memref<72x1024xf32, #tpu.memory_space<vmem>>, vector<8x256xf32>
    tpu.vector_store %arg16[%c40_108, %c768_109], %155 {strides = array<i32>} : memref<72x1024xf32, #tpu.memory_space<vmem>>, vector<8x256xf32>,
    %157 = vector.extract_strided_slice %36 {offsets = [0, 767], sizes = [8, 256], strides = [1, 1]} : vector<8x1024xf32> to vector<8x256xf32>
    %c6 = arith.constant 6 : index
    %c0_110 = arith.constant 0 : index
    %158 = vector.load %arg8[%c6, %c0_110] : memref<9x1024xf32, #tpu.memory_space<vmem>>, vector<1x256xf32>
    %159 = vector.broadcast %158 : vector<1x256xf32> to vector<8x256xf32>
    %160 = arith.mulf %157, %159 : vector<8x256xf32>
    %c48 = arith.constant 48 : index
    %c0_111 = arith.constant 0 : index
    %161 = vector.load %arg16[%c48, %c0_111] : memref<72x1024xf32, #tpu.memory_space<vmem>>, vector<8x256xf32>
    tpu.vector_store %arg16[%c48, %c0_111], %160 {strides = array<i32>} : memref<72x1024xf32, #tpu.memory_space<vmem>>, vector<8x256xf32>,
    %162 = vector.extract_strided_slice %36 {offsets = [0, 512], sizes = [8, 256], strides = [1, 1]} : vector<8x1024xf32> to vector<8x256xf32>
    %c6_112 = arith.constant 6 : index
    %c256_113 = arith.constant 256 : index
    %163 = vector.load %arg8[%c6_112, %c256_113] : memref<9x1024xf32, #tpu.memory_space<vmem>>, vector<1x256xf32>
    %164 = vector.broadcast %163 : vector<1x256xf32> to vector<8x256xf32>
    %165 = arith.mulf %162, %164 : vector<8x256xf32>
    %c48_114 = arith.constant 48 : index
    %c256_115 = arith.constant 256 : index
    %166 = vector.load %arg16[%c48_114, %c256_115] : memref<72x1024xf32, #tpu.memory_space<vmem>>, vector<8x256xf32>
    tpu.vector_store %arg16[%c48_114, %c256_115], %165 {strides = array<i32>} : memref<72x1024xf32, #tpu.memory_space<vmem>>, vector<8x256xf32>,
    %167 = vector.extract_strided_slice %36 {offsets = [0, 263], sizes = [8, 256], strides = [1, 1]} : vector<8x1024xf32> to vector<8x256xf32>
    %c6_116 = arith.constant 6 : index
    %c512_117 = arith.constant 512 : index
    %168 = vector.load %arg8[%c6_116, %c512_117] : memref<9x1024xf32, #tpu.memory_space<vmem>>, vector<1x256xf32>
    %169 = vector.broadcast %168 : vector<1x256xf32> to vector<8x256xf32>
    %170 = arith.mulf %167, %169 : vector<8x256xf32>
    %c48_118 = arith.constant 48 : index
    %c512_119 = arith.constant 512 : index
    %171 = vector.load %arg16[%c48_118, %c512_119] : memref<72x1024xf32, #tpu.memory_space<vmem>>, vector<8x256xf32>
    tpu.vector_store %arg16[%c48_118, %c512_119], %170 {strides = array<i32>} : memref<72x1024xf32, #tpu.memory_space<vmem>>, vector<8x256xf32>,
    %172 = vector.extract_strided_slice %36 {offsets = [0, 8], sizes = [8, 256], strides = [1, 1]} : vector<8x1024xf32> to vector<8x256xf32>
    %c6_120 = arith.constant 6 : index
    %c768_121 = arith.constant 768 : index
    %173 = vector.load %arg8[%c6_120, %c768_121] : memref<9x1024xf32, #tpu.memory_space<vmem>>, vector<1x256xf32>
    %174 = vector.broadcast %173 : vector<1x256xf32> to vector<8x256xf32>
    %175 = arith.mulf %172, %174 : vector<8x256xf32>
    %c48_122 = arith.constant 48 : index
    %c768_123 = arith.constant 768 : index
    %176 = vector.load %arg16[%c48_122, %c768_123] : memref<72x1024xf32, #tpu.memory_space<vmem>>, vector<8x256xf32>
    tpu.vector_store %arg16[%c48_122, %c768_123], %175 {strides = array<i32>} : memref<72x1024xf32, #tpu.memory_space<vmem>>, vector<8x256xf32>,
    %177 = vector.extract_strided_slice %36 {offsets = [0, 512], sizes = [8, 256], strides = [1, 1]} : vector<8x1024xf32> to vector<8x256xf32>
    %c7 = arith.constant 7 : index
    %c0_124 = arith.constant 0 : index
    %178 = vector.load %arg8[%c7, %c0_124] : memref<9x1024xf32, #tpu.memory_space<vmem>>, vector<1x256xf32>
    %179 = vector.broadcast %178 : vector<1x256xf32> to vector<8x256xf32>
    %180 = arith.mulf %177, %179 : vector<8x256xf32>
    %c56 = arith.constant 56 : index
    %c0_125 = arith.constant 0 : index
    %181 = vector.load %arg16[%c56, %c0_125] : memref<72x1024xf32, #tpu.memory_space<vmem>>, vector<8x256xf32>
    tpu.vector_store %arg16[%c56, %c0_125], %180 {strides = array<i32>} : memref<72x1024xf32, #tpu.memory_space<vmem>>, vector<8x256xf32>,
    %182 = vector.extract_strided_slice %36 {offsets = [0, 768], sizes = [8, 256], strides = [1, 1]} : vector<8x1024xf32> to vector<8x256xf32>
    %c7_126 = arith.constant 7 : index
    %c256_127 = arith.constant 256 : index
    %183 = vector.load %arg8[%c7_126, %c256_127] : memref<9x1024xf32, #tpu.memory_space<vmem>>, vector<1x256xf32>
    %184 = vector.broadcast %183 : vector<1x256xf32> to vector<8x256xf32>
    %185 = arith.mulf %182, %184 : vector<8x256xf32>
    %c56_128 = arith.constant 56 : index
    %c256_129 = arith.constant 256 : index
    %186 = vector.load %arg16[%c56_128, %c256_129] : memref<72x1024xf32, #tpu.memory_space<vmem>>, vector<8x256xf32>
    tpu.vector_store %arg16[%c56_128, %c256_129], %185 {strides = array<i32>} : memref<72x1024xf32, #tpu.memory_space<vmem>>, vector<8x256xf32>,
    %187 = vector.extract_strided_slice %36 {offsets = [0, 8], sizes = [8, 256], strides = [1, 1]} : vector<8x1024xf32> to vector<8x256xf32>
    %c7_130 = arith.constant 7 : index
    %c512_131 = arith.constant 512 : index
    %188 = vector.load %arg8[%c7_130, %c512_131] : memref<9x1024xf32, #tpu.memory_space<vmem>>, vector<1x256xf32>
    %189 = vector.broadcast %188 : vector<1x256xf32> to vector<8x256xf32>
    %190 = arith.mulf %187, %189 : vector<8x256xf32>
    %c56_132 = arith.constant 56 : index
    %c512_133 = arith.constant 512 : index
    %191 = vector.load %arg16[%c56_132, %c512_133] : memref<72x1024xf32, #tpu.memory_space<vmem>>, vector<8x256xf32>
    tpu.vector_store %arg16[%c56_132, %c512_133], %190 {strides = array<i32>} : memref<72x1024xf32, #tpu.memory_space<vmem>>, vector<8x256xf32>,
    %192 = vector.extract_strided_slice %36 {offsets = [0, 264], sizes = [8, 256], strides = [1, 1]} : vector<8x1024xf32> to vector<8x256xf32>
    %c7_134 = arith.constant 7 : index
    %c768_135 = arith.constant 768 : index
    %193 = vector.load %arg8[%c7_134, %c768_135] : memref<9x1024xf32, #tpu.memory_space<vmem>>, vector<1x256xf32>
    %194 = vector.broadcast %193 : vector<1x256xf32> to vector<8x256xf32>
    %195 = arith.mulf %192, %194 : vector<8x256xf32>
    %c56_136 = arith.constant 56 : index
    %c768_137 = arith.constant 768 : index
    %196 = vector.load %arg16[%c56_136, %c768_137] : memref<72x1024xf32, #tpu.memory_space<vmem>>, vector<8x256xf32>
    tpu.vector_store %arg16[%c56_136, %c768_137], %195 {strides = array<i32>} : memref<72x1024xf32, #tpu.memory_space<vmem>>, vector<8x256xf32>,
    %197 = vector.extract_strided_slice %36 {offsets = [0, 768], sizes = [8, 256], strides = [1, 1]} : vector<8x1024xf32> to vector<8x256xf32>
    %c8_138 = arith.constant 8 : index
    %c0_139 = arith.constant 0 : index
    %198 = vector.load %arg8[%c8_138, %c0_139] : memref<9x1024xf32, #tpu.memory_space<vmem>>, vector<1x256xf32>
    %199 = vector.broadcast %198 : vector<1x256xf32> to vector<8x256xf32>
    %200 = arith.mulf %197, %199 : vector<8x256xf32>
    %c64 = arith.constant 64 : index
    %c0_140 = arith.constant 0 : index
    %201 = vector.load %arg16[%c64, %c0_140] : memref<72x1024xf32, #tpu.memory_space<vmem>>, vector<8x256xf32>
    tpu.vector_store %arg16[%c64, %c0_140], %200 {strides = array<i32>} : memref<72x1024xf32, #tpu.memory_space<vmem>>, vector<8x256xf32>,
    %202 = vector.extract_strided_slice %36 {offsets = [0, 513], sizes = [8, 256], strides = [1, 1]} : vector<8x1024xf32> to vector<8x256xf32>
    %c8_141 = arith.constant 8 : index
    %c256_142 = arith.constant 256 : index
    %203 = vector.load %arg8[%c8_141, %c256_142] : memref<9x1024xf32, #tpu.memory_space<vmem>>, vector<1x256xf32>
    %204 = vector.broadcast %203 : vector<1x256xf32> to vector<8x256xf32>
    %205 = arith.mulf %202, %204 : vector<8x256xf32>
    %c64_143 = arith.constant 64 : index
    %c256_144 = arith.constant 256 : index
    %206 = vector.load %arg16[%c64_143, %c256_144] : memref<72x1024xf32, #tpu.memory_space<vmem>>, vector<8x256xf32>
    tpu.vector_store %arg16[%c64_143, %c256_144], %205 {strides = array<i32>} : memref<72x1024xf32, #tpu.memory_space<vmem>>, vector<8x256xf32>,
    %207 = vector.extract_strided_slice %36 {offsets = [0, 264], sizes = [8, 256], strides = [1, 1]} : vector<8x1024xf32> to vector<8x256xf32>
    %c8_145 = arith.constant 8 : index
    %c512_146 = arith.constant 512 : index
    %208 = vector.load %arg8[%c8_145, %c512_146] : memref<9x1024xf32, #tpu.memory_space<vmem>>, vector<1x256xf32>
    %209 = vector.broadcast %208 : vector<1x256xf32> to vector<8x256xf32>
    %210 = arith.mulf %207, %209 : vector<8x256xf32>
    %c64_147 = arith.constant 64 : index
    %c512_148 = arith.constant 512 : index
    %211 = vector.load %arg16[%c64_147, %c512_148] : memref<72x1024xf32, #tpu.memory_space<vmem>>, vector<8x256xf32>
    tpu.vector_store %arg16[%c64_147, %c512_148], %210 {strides = array<i32>} : memref<72x1024xf32, #tpu.memory_space<vmem>>, vector<8x256xf32>,
    %212 = vector.extract_strided_slice %36 {offsets = [0, 9], sizes = [8, 256], strides = [1, 1]} : vector<8x1024xf32> to vector<8x256xf32>
    %c8_149 = arith.constant 8 : index
    %c768_150 = arith.constant 768 : index
    %213 = vector.load %arg8[%c8_149, %c768_150] : memref<9x1024xf32, #tpu.memory_space<vmem>>, vector<1x256xf32>
    %214 = vector.broadcast %213 : vector<1x256xf32> to vector<8x256xf32>
    %215 = arith.mulf %212, %214 : vector<8x256xf32>
    %c64_151 = arith.constant 64 : index
    %c768_152 = arith.constant 768 : index
    %216 = vector.load %arg16[%c64_151, %c768_152] : memref<72x1024xf32, #tpu.memory_space<vmem>>, vector<8x256xf32>
    tpu.vector_store %arg16[%c64_151, %c768_152], %215 {strides = array<i32>} : memref<72x1024xf32, #tpu.memory_space<vmem>>, vector<8x256xf32>,
    %c0_153 = arith.constant 0 : index
    %c0_154 = arith.constant 0 : index
    %217 = vector.load %arg3[%c0_153, %c0_154] : memref<8x72xf32, #tpu.memory_space<vmem>>, vector<8x72xf32>
    %c0_155 = arith.constant 0 : index
    %c0_156 = arith.constant 0 : index
    %218 = vector.load %arg16[%c0_155, %c0_156] : memref<72x1024xf32, #tpu.memory_space<vmem>>, vector<72x1024xf32>
    %cst_157 = arith.constant dense<0.000000e+00> : vector<8x1024xf32>
    %219 = tpu.matmul %217, %218, %cst_157 {dimension_numbers = #tpu.dot_dimension_numbers<[1], [0], [0], [1], [0, 0, 1, 1], [], []>} : vector<8x72xf32>, vector<72x1024xf32>, vector<8x1024xf32> -> vector<8x1024xf32>
    %cst_158 = arith.constant dense<0.000000e+00> : vector<8x8xf32>
    %220 = tpu.matmul %219, %1, %cst_158 {dimension_numbers = #tpu.dot_dimension_numbers<[1], [0], [0], [1], [0, 0, 1, 1], [], []>} : vector<8x1024xf32>, vector<1024x8xf32>, vector<8x8xf32> -> vector<8x8xf32>
    %221 = arith.mulf %219, %219 : vector<8x1024xf32>
    %cst_159 = arith.constant dense<0.000000e+00> : vector<8x8xf32>
    %222 = tpu.matmul %221, %1, %cst_159 {dimension_numbers = #tpu.dot_dimension_numbers<[1], [0], [0], [1], [0, 0, 1, 1], [], []>} : vector<8x1024xf32>, vector<1024x8xf32>, vector<8x8xf32> -> vector<8x8xf32>
    %cst_160 = arith.constant 3.906250e-03 : f32
    %223 = vector.broadcast %cst_160 : f32 to vector<8x8xf32>
    %224 = arith.mulf %220, %223 : vector<8x8xf32>
    %cst_161 = arith.constant 3.906250e-03 : f32
    %225 = vector.broadcast %cst_161 : f32 to vector<8x8xf32>
    %226 = arith.mulf %222, %225 : vector<8x8xf32>
    %227 = arith.mulf %224, %224 : vector<8x8xf32>
    %228 = arith.subf %226, %227 : vector<8x8xf32>
    %cst_162 = arith.constant 0.000000e+00 : f32
    %229 = vector.broadcast %cst_162 : f32 to vector<8x8xf32>
    %230 = arith.maximumf %228, %229 : vector<8x8xf32>
    %c1_163 = arith.constant 1 : index
    %c0_164 = arith.constant 0 : index
    %c0_165 = arith.constant 0 : index
    %231 = vector.load %arg6[%c1_163, %c0_164, %c0_165] : memref<4x16x8xf32, #tpu.memory_space<vmem>>, vector<1x8x8xf32>
    %232 = vector.shape_cast %231 : vector<1x8x8xf32> to vector<8x8xf32>
    %c1_166 = arith.constant 1 : index
    %c0_167 = arith.constant 0 : index
    %c0_168 = arith.constant 0 : index
    %233 = vector.load %arg7[%c1_166, %c0_167, %c0_168] : memref<4x16x8xf32, #tpu.memory_space<vmem>>, vector<1x8x8xf32>
    %234 = vector.shape_cast %233 : vector<1x8x8xf32> to vector<8x8xf32>
    %cst_169 = arith.constant 9.99999974E-6 : f32
    %235 = vector.broadcast %cst_169 : f32 to vector<8x8xf32>
    %236 = arith.addf %230, %235 : vector<8x8xf32>
    %237 = math.rsqrt %236 : vector<8x8xf32>
    %238 = arith.mulf %232, %237 : vector<8x8xf32>
    %239 = arith.mulf %224, %238 : vector<8x8xf32>
    %240 = arith.subf %234, %239 : vector<8x8xf32>
    %cst_170 = arith.constant dense<0.000000e+00> : vector<8x1024xf32>
    %241 = tpu.matmul %238, %0, %cst_170 {dimension_numbers = #tpu.dot_dimension_numbers<[1], [0], [0], [1], [0, 0, 1, 1], [], []>} : vector<8x8xf32>, vector<8x1024xf32>, vector<8x1024xf32> -> vector<8x1024xf32>
    %242 = arith.mulf %219, %241 : vector<8x1024xf32>
    %cst_171 = arith.constant dense<0.000000e+00> : vector<8x1024xf32>
    %243 = tpu.matmul %240, %0, %cst_171 {dimension_numbers = #tpu.dot_dimension_numbers<[1], [0], [0], [1], [0, 0, 1, 1], [], []>} : vector<8x8xf32>, vector<8x1024xf32>, vector<8x1024xf32> -> vector<8x1024xf32>
    %244 = arith.addf %242, %243 : vector<8x1024xf32>
    %cst_172 = arith.constant 0.000000e+00 : f32
    %245 = vector.broadcast %cst_172 : f32 to vector<8x1024xf32>
    %246 = arith.cmpf oge, %244, %245 : vector<8x1024xf32>
    %cst_173 = arith.constant 0.00999999977 : f32
    %247 = vector.broadcast %cst_173 : f32 to vector<8x1024xf32>
    %248 = arith.mulf %247, %244 : vector<8x1024xf32>
    %249 = arith.select %246, %244, %248 : vector<8x1024xi1>, vector<8x1024xf32>
    %250 = vector.extract_strided_slice %249 {offsets = [0, 759], sizes = [8, 256], strides = [1, 1]} : vector<8x1024xf32> to vector<8x256xf32>
    %c0_174 = arith.constant 0 : index
    %c0_175 = arith.constant 0 : index
    %251 = vector.load %arg9[%c0_174, %c0_175] : memref<9x256xf32, #tpu.memory_space<vmem>>, vector<1x256xf32>
    %252 = vector.broadcast %251 : vector<1x256xf32> to vector<8x256xf32>
    %253 = arith.mulf %250, %252 : vector<8x256xf32>
    %c0_176 = arith.constant 0 : index
    %c0_177 = arith.constant 0 : index
    %254 = vector.load %arg17[%c0_176, %c0_177] : memref<72x256xf32, #tpu.memory_space<vmem>>, vector<8x256xf32>
    tpu.vector_store %arg17[%c0_176, %c0_177], %253 {strides = array<i32>} : memref<72x256xf32, #tpu.memory_space<vmem>>, vector<8x256xf32>,
    %255 = vector.extract_strided_slice %249 {offsets = [0, 504], sizes = [8, 256], strides = [1, 1]} : vector<8x1024xf32> to vector<8x256xf32>
    %c1_178 = arith.constant 1 : index
    %c0_179 = arith.constant 0 : index
    %256 = vector.load %arg9[%c1_178, %c0_179] : memref<9x256xf32, #tpu.memory_space<vmem>>, vector<1x256xf32>
    %257 = vector.broadcast %256 : vector<1x256xf32> to vector<8x256xf32>
    %258 = arith.mulf %255, %257 : vector<8x256xf32>
    %c8_180 = arith.constant 8 : index
    %c0_181 = arith.constant 0 : index
    %259 = vector.load %arg17[%c8_180, %c0_181] : memref<72x256xf32, #tpu.memory_space<vmem>>, vector<8x256xf32>
    tpu.vector_store %arg17[%c8_180, %c0_181], %258 {strides = array<i32>} : memref<72x256xf32, #tpu.memory_space<vmem>>, vector<8x256xf32>,
    %260 = vector.extract_strided_slice %249 {offsets = [0, 760], sizes = [8, 256], strides = [1, 1]} : vector<8x1024xf32> to vector<8x256xf32>
    %c2_182 = arith.constant 2 : index
    %c0_183 = arith.constant 0 : index
    %261 = vector.load %arg9[%c2_182, %c0_183] : memref<9x256xf32, #tpu.memory_space<vmem>>, vector<1x256xf32>
    %262 = vector.broadcast %261 : vector<1x256xf32> to vector<8x256xf32>
    %263 = arith.mulf %260, %262 : vector<8x256xf32>
    %c16_184 = arith.constant 16 : index
    %c0_185 = arith.constant 0 : index
    %264 = vector.load %arg17[%c16_184, %c0_185] : memref<72x256xf32, #tpu.memory_space<vmem>>, vector<8x256xf32>
    tpu.vector_store %arg17[%c16_184, %c0_185], %263 {strides = array<i32>} : memref<72x256xf32, #tpu.memory_space<vmem>>, vector<8x256xf32>,
    %265 = vector.extract_strided_slice %249 {offsets = [0, 255], sizes = [8, 256], strides = [1, 1]} : vector<8x1024xf32> to vector<8x256xf32>
    %c3_186 = arith.constant 3 : index
    %c0_187 = arith.constant 0 : index
    %266 = vector.load %arg9[%c3_186, %c0_187] : memref<9x256xf32, #tpu.memory_space<vmem>>, vector<1x256xf32>
    %267 = vector.broadcast %266 : vector<1x256xf32> to vector<8x256xf32>
    %268 = arith.mulf %265, %267 : vector<8x256xf32>
    %c24_188 = arith.constant 24 : index
    %c0_189 = arith.constant 0 : index
    %269 = vector.load %arg17[%c24_188, %c0_189] : memref<72x256xf32, #tpu.memory_space<vmem>>, vector<8x256xf32>
    tpu.vector_store %arg17[%c24_188, %c0_189], %268 {strides = array<i32>} : memref<72x256xf32, #tpu.memory_space<vmem>>, vector<8x256xf32>,
    %270 = vector.extract_strided_slice %249 {offsets = [0, 0], sizes = [8, 256], strides = [1, 1]} : vector<8x1024xf32> to vector<8x256xf32>
    %c4_190 = arith.constant 4 : index
    %c0_191 = arith.constant 0 : index
    %271 = vector.load %arg9[%c4_190, %c0_191] : memref<9x256xf32, #tpu.memory_space<vmem>>, vector<1x256xf32>
    %272 = vector.broadcast %271 : vector<1x256xf32> to vector<8x256xf32>
    %273 = arith.mulf %270, %272 : vector<8x256xf32>
    %c32_192 = arith.constant 32 : index
    %c0_193 = arith.constant 0 : index
    %274 = vector.load %arg17[%c32_192, %c0_193] : memref<72x256xf32, #tpu.memory_space<vmem>>, vector<8x256xf32>
    tpu.vector_store %arg17[%c32_192, %c0_193], %273 {strides = array<i32>} : memref<72x256xf32, #tpu.memory_space<vmem>>, vector<8x256xf32>,
    %275 = vector.extract_strided_slice %249 {offsets = [0, 256], sizes = [8, 256], strides = [1, 1]} : vector<8x1024xf32> to vector<8x256xf32>
    %c5_194 = arith.constant 5 : index
    %c0_195 = arith.constant 0 : index
    %276 = vector.load %arg9[%c5_194, %c0_195] : memref<9x256xf32, #tpu.memory_space<vmem>>, vector<1x256xf32>
    %277 = vector.broadcast %276 : vector<1x256xf32> to vector<8x256xf32>
    %278 = arith.mulf %275, %277 : vector<8x256xf32>
    %c40_196 = arith.constant 40 : index
    %c0_197 = arith.constant 0 : index
    %279 = vector.load %arg17[%c40_196, %c0_197] : memref<72x256xf32, #tpu.memory_space<vmem>>, vector<8x256xf32>
    tpu.vector_store %arg17[%c40_196, %c0_197], %278 {strides = array<i32>} : memref<72x256xf32, #tpu.memory_space<vmem>>, vector<8x256xf32>,
    %280 = vector.extract_strided_slice %249 {offsets = [0, 767], sizes = [8, 256], strides = [1, 1]} : vector<8x1024xf32> to vector<8x256xf32>
    %c6_198 = arith.constant 6 : index
    %c0_199 = arith.constant 0 : index
    %281 = vector.load %arg9[%c6_198, %c0_199] : memref<9x256xf32, #tpu.memory_space<vmem>>, vector<1x256xf32>
    %282 = vector.broadcast %281 : vector<1x256xf32> to vector<8x256xf32>
    %283 = arith.mulf %280, %282 : vector<8x256xf32>
    %c48_200 = arith.constant 48 : index
    %c0_201 = arith.constant 0 : index
    %284 = vector.load %arg17[%c48_200, %c0_201] : memref<72x256xf32, #tpu.memory_space<vmem>>, vector<8x256xf32>
    tpu.vector_store %arg17[%c48_200, %c0_201], %283 {strides = array<i32>} : memref<72x256xf32, #tpu.memory_space<vmem>>, vector<8x256xf32>,
    %285 = vector.extract_strided_slice %249 {offsets = [0, 512], sizes = [8, 256], strides = [1, 1]} : vector<8x1024xf32> to vector<8x256xf32>
    %c7_202 = arith.constant 7 : index
    %c0_203 = arith.constant 0 : index
    %286 = vector.load %arg9[%c7_202, %c0_203] : memref<9x256xf32, #tpu.memory_space<vmem>>, vector<1x256xf32>
    %287 = vector.broadcast %286 : vector<1x256xf32> to vector<8x256xf32>
    %288 = arith.mulf %285, %287 : vector<8x256xf32>
    %c56_204 = arith.constant 56 : index
    %c0_205 = arith.constant 0 : index
    %289 = vector.load %arg17[%c56_204, %c0_205] : memref<72x256xf32, #tpu.memory_space<vmem>>, vector<8x256xf32>
    tpu.vector_store %arg17[%c56_204, %c0_205], %288 {strides = array<i32>} : memref<72x256xf32, #tpu.memory_space<vmem>>, vector<8x256xf32>,
    %290 = vector.extract_strided_slice %249 {offsets = [0, 768], sizes = [8, 256], strides = [1, 1]} : vector<8x1024xf32> to vector<8x256xf32>
    %c8_206 = arith.constant 8 : index
    %c0_207 = arith.constant 0 : index
    %291 = vector.load %arg9[%c8_206, %c0_207] : memref<9x256xf32, #tpu.memory_space<vmem>>, vector<1x256xf32>
    %292 = vector.broadcast %291 : vector<1x256xf32> to vector<8x256xf32>
    %293 = arith.mulf %290, %292 : vector<8x256xf32>
    %c64_208 = arith.constant 64 : index
    %c0_209 = arith.constant 0 : index
    %294 = vector.load %arg17[%c64_208, %c0_209] : memref<72x256xf32, #tpu.memory_space<vmem>>, vector<8x256xf32>
    tpu.vector_store %arg17[%c64_208, %c0_209], %293 {strides = array<i32>} : memref<72x256xf32, #tpu.memory_space<vmem>>, vector<8x256xf32>,
    %c0_210 = arith.constant 0 : index
    %c0_211 = arith.constant 0 : index
    %295 = vector.load %arg4[%c0_210, %c0_211] : memref<16x72xf32, #tpu.memory_space<vmem>>, vector<16x72xf32>
    %c0_212 = arith.constant 0 : index
    %c0_213 = arith.constant 0 : index
    %296 = vector.load %arg17[%c0_212, %c0_213] : memref<72x256xf32, #tpu.memory_space<vmem>>, vector<72x256xf32>
    %cst_214 = arith.constant dense<0.000000e+00> : vector<16x256xf32>
    %297 = tpu.matmul %295, %296, %cst_214 {dimension_numbers = #tpu.dot_dimension_numbers<[1], [0], [0], [1], [0, 0, 1, 1], [], []>} : vector<16x72xf32>, vector<72x256xf32>, vector<16x256xf32> -> vector<16x256xf32>
    %cst_215 = arith.constant dense<0.000000e+00> : vector<16x8xf32>
    %298 = tpu.matmul %297, %3, %cst_215 {dimension_numbers = #tpu.dot_dimension_numbers<[1], [0], [0], [1], [0, 0, 1, 1], [], []>} : vector<16x256xf32>, vector<256x8xf32>, vector<16x8xf32> -> vector<16x8xf32>
    %299 = arith.mulf %297, %297 : vector<16x256xf32>
    %cst_216 = arith.constant dense<0.000000e+00> : vector<16x8xf32>
    %300 = tpu.matmul %299, %3, %cst_216 {dimension_numbers = #tpu.dot_dimension_numbers<[1], [0], [0], [1], [0, 0, 1, 1], [], []>} : vector<16x256xf32>, vector<256x8xf32>, vector<16x8xf32> -> vector<16x8xf32>
    %cst_217 = arith.constant 1.562500e-02 : f32
    %301 = vector.broadcast %cst_217 : f32 to vector<16x8xf32>
    %302 = arith.mulf %298, %301 : vector<16x8xf32>
    %cst_218 = arith.constant 1.562500e-02 : f32
    %303 = vector.broadcast %cst_218 : f32 to vector<16x8xf32>
    %304 = arith.mulf %300, %303 : vector<16x8xf32>
    %305 = arith.mulf %302, %302 : vector<16x8xf32>
    %306 = arith.subf %304, %305 : vector<16x8xf32>
    %cst_219 = arith.constant 0.000000e+00 : f32
    %307 = vector.broadcast %cst_219 : f32 to vector<16x8xf32>
    %308 = arith.maximumf %306, %307 : vector<16x8xf32>
    %c2_220 = arith.constant 2 : index
    %c0_221 = arith.constant 0 : index
    %c0_222 = arith.constant 0 : index
    %309 = vector.load %arg6[%c2_220, %c0_221, %c0_222] : memref<4x16x8xf32, #tpu.memory_space<vmem>>, vector<1x16x8xf32>
    %310 = vector.shape_cast %309 : vector<1x16x8xf32> to vector<16x8xf32>
    %c2_223 = arith.constant 2 : index
    %c0_224 = arith.constant 0 : index
    %c0_225 = arith.constant 0 : index
    %311 = vector.load %arg7[%c2_223, %c0_224, %c0_225] : memref<4x16x8xf32, #tpu.memory_space<vmem>>, vector<1x16x8xf32>
    %312 = vector.shape_cast %311 : vector<1x16x8xf32> to vector<16x8xf32>
    %cst_226 = arith.constant 9.99999974E-6 : f32
    %313 = vector.broadcast %cst_226 : f32 to vector<16x8xf32>
    %314 = arith.addf %308, %313 : vector<16x8xf32>
    %315 = math.rsqrt %314 : vector<16x8xf32>
    %316 = arith.mulf %310, %315 : vector<16x8xf32>
    %317 = arith.mulf %302, %316 : vector<16x8xf32>
    %318 = arith.subf %312, %317 : vector<16x8xf32>
    %cst_227 = arith.constant dense<0.000000e+00> : vector<16x256xf32>
    %319 = tpu.matmul %316, %2, %cst_227 {dimension_numbers = #tpu.dot_dimension_numbers<[1], [0], [0], [1], [0, 0, 1, 1], [], []>} : vector<16x8xf32>, vector<8x256xf32>, vector<16x256xf32> -> vector<16x256xf32>
    %320 = arith.mulf %297, %319 : vector<16x256xf32>
    %cst_228 = arith.constant dense<0.000000e+00> : vector<16x256xf32>
    %321 = tpu.matmul %318, %2, %cst_228 {dimension_numbers = #tpu.dot_dimension_numbers<[1], [0], [0], [1], [0, 0, 1, 1], [], []>} : vector<16x8xf32>, vector<8x256xf32>, vector<16x256xf32> -> vector<16x256xf32>
    %322 = arith.addf %320, %321 : vector<16x256xf32>
    %cst_229 = arith.constant 0.000000e+00 : f32
    %323 = vector.broadcast %cst_229 : f32 to vector<16x256xf32>
    %324 = arith.cmpf oge, %322, %323 : vector<16x256xf32>
    %cst_230 = arith.constant 0.00999999977 : f32
    %325 = vector.broadcast %cst_230 : f32 to vector<16x256xf32>
    %326 = arith.mulf %325, %322 : vector<16x256xf32>
    %327 = arith.select %324, %322, %326 : vector<16x256xi1>, vector<16x256xf32>
    %328 = vector.extract_strided_slice %327 {offsets = [0, 247], sizes = [16, 9], strides = [1, 1]} : vector<16x256xf32> to vector<16x9xf32>
    %329 = vector.extract_strided_slice %327 {offsets = [0, 0], sizes = [16, 247], strides = [1, 1]} : vector<16x256xf32> to vector<16x247xf32>
    %330 = tpu.concatenate %328, %329 in 1 : vector<16x9xf32>, vector<16x247xf32> -> vector<16x256xf32>
    %c0_231 = arith.constant 0 : index
    %c0_232 = arith.constant 0 : index
    %331 = vector.load %arg10[%c0_231, %c0_232] : memref<9x256xf32, #tpu.memory_space<vmem>>, vector<1x256xf32>
    %332 = vector.broadcast %331 : vector<1x256xf32> to vector<16x256xf32>
    %333 = arith.mulf %330, %332 : vector<16x256xf32>
    %c0_233 = arith.constant 0 : index
    %c0_234 = arith.constant 0 : index
    %334 = vector.load %arg18[%c0_233, %c0_234] : memref<144x256xf32, #tpu.memory_space<vmem>>, vector<16x256xf32>
    tpu.vector_store %arg18[%c0_233, %c0_234], %333 {strides = array<i32>} : memref<144x256xf32, #tpu.memory_space<vmem>>, vector<16x256xf32>,
    %335 = vector.extract_strided_slice %327 {offsets = [0, 248], sizes = [16, 8], strides = [1, 1]} : vector<16x256xf32> to vector<16x8xf32>
    %336 = vector.extract_strided_slice %327 {offsets = [0, 0], sizes = [16, 248], strides = [1, 1]} : vector<16x256xf32> to vector<16x248xf32>
    %337 = tpu.concatenate %335, %336 in 1 : vector<16x8xf32>, vector<16x248xf32> -> vector<16x256xf32>
    %c1_235 = arith.constant 1 : index
    %c0_236 = arith.constant 0 : index
    %338 = vector.load %arg10[%c1_235, %c0_236] : memref<9x256xf32, #tpu.memory_space<vmem>>, vector<1x256xf32>
    %339 = vector.broadcast %338 : vector<1x256xf32> to vector<16x256xf32>
    %340 = arith.mulf %337, %339 : vector<16x256xf32>
    %c16_237 = arith.constant 16 : index
    %c0_238 = arith.constant 0 : index
    %341 = vector.load %arg18[%c16_237, %c0_238] : memref<144x256xf32, #tpu.memory_space<vmem>>, vector<16x256xf32>
    tpu.vector_store %arg18[%c16_237, %c0_238], %340 {strides = array<i32>} : memref<144x256xf32, #tpu.memory_space<vmem>>, vector<16x256xf32>,
    %342 = vector.extract_strided_slice %327 {offsets = [0, 249], sizes = [16, 7], strides = [1, 1]} : vector<16x256xf32> to vector<16x7xf32>
    %343 = vector.extract_strided_slice %327 {offsets = [0, 0], sizes = [16, 249], strides = [1, 1]} : vector<16x256xf32> to vector<16x249xf32>
    %344 = tpu.concatenate %342, %343 in 1 : vector<16x7xf32>, vector<16x249xf32> -> vector<16x256xf32>
    %c2_239 = arith.constant 2 : index
    %c0_240 = arith.constant 0 : index
    %345 = vector.load %arg10[%c2_239, %c0_240] : memref<9x256xf32, #tpu.memory_space<vmem>>, vector<1x256xf32>
    %346 = vector.broadcast %345 : vector<1x256xf32> to vector<16x256xf32>
    %347 = arith.mulf %344, %346 : vector<16x256xf32>
    %c32_241 = arith.constant 32 : index
    %c0_242 = arith.constant 0 : index
    %348 = vector.load %arg18[%c32_241, %c0_242] : memref<144x256xf32, #tpu.memory_space<vmem>>, vector<16x256xf32>
    tpu.vector_store %arg18[%c32_241, %c0_242], %347 {strides = array<i32>} : memref<144x256xf32, #tpu.memory_space<vmem>>, vector<16x256xf32>,
    %349 = vector.extract_strided_slice %327 {offsets = [0, 255], sizes = [16, 1], strides = [1, 1]} : vector<16x256xf32> to vector<16x1xf32>
    %350 = vector.extract_strided_slice %327 {offsets = [0, 0], sizes = [16, 255], strides = [1, 1]} : vector<16x256xf32> to vector<16x255xf32>
    %351 = tpu.concatenate %349, %350 in 1 : vector<16x1xf32>, vector<16x255xf32> -> vector<16x256xf32>
    %c3_243 = arith.constant 3 : index
    %c0_244 = arith.constant 0 : index
    %352 = vector.load %arg10[%c3_243, %c0_244] : memref<9x256xf32, #tpu.memory_space<vmem>>, vector<1x256xf32>
    %353 = vector.broadcast %352 : vector<1x256xf32> to vector<16x256xf32>
    %354 = arith.mulf %351, %353 : vector<16x256xf32>
    %c48_245 = arith.constant 48 : index
    %c0_246 = arith.constant 0 : index
    %355 = vector.load %arg18[%c48_245, %c0_246] : memref<144x256xf32, #tpu.memory_space<vmem>>, vector<16x256xf32>
    tpu.vector_store %arg18[%c48_245, %c0_246], %354 {strides = array<i32>} : memref<144x256xf32, #tpu.memory_space<vmem>>, vector<16x256xf32>,
    %c4_247 = arith.constant 4 : index
    %c0_248 = arith.constant 0 : index
    %356 = vector.load %arg10[%c4_247, %c0_248] : memref<9x256xf32, #tpu.memory_space<vmem>>, vector<1x256xf32>
    %357 = vector.broadcast %356 : vector<1x256xf32> to vector<16x256xf32>
    %358 = arith.mulf %327, %357 : vector<16x256xf32>
    %c64_249 = arith.constant 64 : index
    %c0_250 = arith.constant 0 : index
    %359 = vector.load %arg18[%c64_249, %c0_250] : memref<144x256xf32, #tpu.memory_space<vmem>>, vector<16x256xf32>
    tpu.vector_store %arg18[%c64_249, %c0_250], %358 {strides = array<i32>} : memref<144x256xf32, #tpu.memory_space<vmem>>, vector<16x256xf32>,
    %360 = vector.extract_strided_slice %327 {offsets = [0, 1], sizes = [16, 255], strides = [1, 1]} : vector<16x256xf32> to vector<16x255xf32>
    %361 = vector.extract_strided_slice %327 {offsets = [0, 0], sizes = [16, 1], strides = [1, 1]} : vector<16x256xf32> to vector<16x1xf32>
    %362 = tpu.concatenate %360, %361 in 1 : vector<16x255xf32>, vector<16x1xf32> -> vector<16x256xf32>
    %c5_251 = arith.constant 5 : index
    %c0_252 = arith.constant 0 : index
    %363 = vector.load %arg10[%c5_251, %c0_252] : memref<9x256xf32, #tpu.memory_space<vmem>>, vector<1x256xf32>
    %364 = vector.broadcast %363 : vector<1x256xf32> to vector<16x256xf32>
    %365 = arith.mulf %362, %364 : vector<16x256xf32>
    %c80 = arith.constant 80 : index
    %c0_253 = arith.constant 0 : index
    %366 = vector.load %arg18[%c80, %c0_253] : memref<144x256xf32, #tpu.memory_space<vmem>>, vector<16x256xf32>
    tpu.vector_store %arg18[%c80, %c0_253], %365 {strides = array<i32>} : memref<144x256xf32, #tpu.memory_space<vmem>>, vector<16x256xf32>,
    %367 = vector.extract_strided_slice %327 {offsets = [0, 7], sizes = [16, 249], strides = [1, 1]} : vector<16x256xf32> to vector<16x249xf32>
    %368 = vector.extract_strided_slice %327 {offsets = [0, 0], sizes = [16, 7], strides = [1, 1]} : vector<16x256xf32> to vector<16x7xf32>
    %369 = tpu.concatenate %367, %368 in 1 : vector<16x249xf32>, vector<16x7xf32> -> vector<16x256xf32>
    %c6_254 = arith.constant 6 : index
    %c0_255 = arith.constant 0 : index
    %370 = vector.load %arg10[%c6_254, %c0_255] : memref<9x256xf32, #tpu.memory_space<vmem>>, vector<1x256xf32>
    %371 = vector.broadcast %370 : vector<1x256xf32> to vector<16x256xf32>
    %372 = arith.mulf %369, %371 : vector<16x256xf32>
    %c96 = arith.constant 96 : index
    %c0_256 = arith.constant 0 : index
    %373 = vector.load %arg18[%c96, %c0_256] : memref<144x256xf32, #tpu.memory_space<vmem>>, vector<16x256xf32>
    tpu.vector_store %arg18[%c96, %c0_256], %372 {strides = array<i32>} : memref<144x256xf32, #tpu.memory_space<vmem>>, vector<16x256xf32>,
    %374 = vector.extract_strided_slice %327 {offsets = [0, 8], sizes = [16, 248], strides = [1, 1]} : vector<16x256xf32> to vector<16x248xf32>
    %375 = vector.extract_strided_slice %327 {offsets = [0, 0], sizes = [16, 8], strides = [1, 1]} : vector<16x256xf32> to vector<16x8xf32>
    %376 = tpu.concatenate %374, %375 in 1 : vector<16x248xf32>, vector<16x8xf32> -> vector<16x256xf32>
    %c7_257 = arith.constant 7 : index
    %c0_258 = arith.constant 0 : index
    %377 = vector.load %arg10[%c7_257, %c0_258] : memref<9x256xf32, #tpu.memory_space<vmem>>, vector<1x256xf32>
    %378 = vector.broadcast %377 : vector<1x256xf32> to vector<16x256xf32>
    %379 = arith.mulf %376, %378 : vector<16x256xf32>
    %c112 = arith.constant 112 : index
    %c0_259 = arith.constant 0 : index
    %380 = vector.load %arg18[%c112, %c0_259] : memref<144x256xf32, #tpu.memory_space<vmem>>, vector<16x256xf32>
    tpu.vector_store %arg18[%c112, %c0_259], %379 {strides = array<i32>} : memref<144x256xf32, #tpu.memory_space<vmem>>, vector<16x256xf32>,
    %381 = vector.extract_strided_slice %327 {offsets = [0, 9], sizes = [16, 247], strides = [1, 1]} : vector<16x256xf32> to vector<16x247xf32>
    %382 = vector.extract_strided_slice %327 {offsets = [0, 0], sizes = [16, 9], strides = [1, 1]} : vector<16x256xf32> to vector<16x9xf32>
    %383 = tpu.concatenate %381, %382 in 1 : vector<16x247xf32>, vector<16x9xf32> -> vector<16x256xf32>
    %c8_260 = arith.constant 8 : index
    %c0_261 = arith.constant 0 : index
    %384 = vector.load %arg10[%c8_260, %c0_261] : memref<9x256xf32, #tpu.memory_space<vmem>>, vector<1x256xf32>
    %385 = vector.broadcast %384 : vector<1x256xf32> to vector<16x256xf32>
    %386 = arith.mulf %383, %385 : vector<16x256xf32>
    %c128 = arith.constant 128 : index
    %c0_262 = arith.constant 0 : index
    %387 = vector.load %arg18[%c128, %c0_262] : memref<144x256xf32, #tpu.memory_space<vmem>>, vector<16x256xf32>
    tpu.vector_store %arg18[%c128, %c0_262], %386 {strides = array<i32>} : memref<144x256xf32, #tpu.memory_space<vmem>>, vector<16x256xf32>,
    %c0_263 = arith.constant 0 : index
    %c0_264 = arith.constant 0 : index
    %388 = vector.load %arg5[%c0_263, %c0_264] : memref<16x144xf32, #tpu.memory_space<vmem>>, vector<16x144xf32>
    %c0_265 = arith.constant 0 : index
    %c0_266 = arith.constant 0 : index
    %389 = vector.load %arg18[%c0_265, %c0_266] : memref<144x256xf32, #tpu.memory_space<vmem>>, vector<144x256xf32>
    %cst_267 = arith.constant dense<0.000000e+00> : vector<16x256xf32>
    %390 = tpu.matmul %388, %389, %cst_267 {dimension_numbers = #tpu.dot_dimension_numbers<[1], [0], [0], [1], [0, 0, 1, 1], [], []>} : vector<16x144xf32>, vector<144x256xf32>, vector<16x256xf32> -> vector<16x256xf32>
    %cst_268 = arith.constant dense<0.000000e+00> : vector<16x8xf32>
    %391 = tpu.matmul %390, %3, %cst_268 {dimension_numbers = #tpu.dot_dimension_numbers<[1], [0], [0], [1], [0, 0, 1, 1], [], []>} : vector<16x256xf32>, vector<256x8xf32>, vector<16x8xf32> -> vector<16x8xf32>
    %392 = arith.mulf %390, %390 : vector<16x256xf32>
    %cst_269 = arith.constant dense<0.000000e+00> : vector<16x8xf32>
    %393 = tpu.matmul %392, %3, %cst_269 {dimension_numbers = #tpu.dot_dimension_numbers<[1], [0], [0], [1], [0, 0, 1, 1], [], []>} : vector<16x256xf32>, vector<256x8xf32>, vector<16x8xf32> -> vector<16x8xf32>
    %cst_270 = arith.constant 1.562500e-02 : f32
    %394 = vector.broadcast %cst_270 : f32 to vector<16x8xf32>
    %395 = arith.mulf %391, %394 : vector<16x8xf32>
    %cst_271 = arith.constant 1.562500e-02 : f32
    %396 = vector.broadcast %cst_271 : f32 to vector<16x8xf32>
    %397 = arith.mulf %393, %396 : vector<16x8xf32>
    %398 = arith.mulf %395, %395 : vector<16x8xf32>
    %399 = arith.subf %397, %398 : vector<16x8xf32>
    %cst_272 = arith.constant 0.000000e+00 : f32
    %400 = vector.broadcast %cst_272 : f32 to vector<16x8xf32>
    %401 = arith.maximumf %399, %400 : vector<16x8xf32>
    %c3_273 = arith.constant 3 : index
    %c0_274 = arith.constant 0 : index
    %c0_275 = arith.constant 0 : index
    %402 = vector.load %arg6[%c3_273, %c0_274, %c0_275] : memref<4x16x8xf32, #tpu.memory_space<vmem>>, vector<1x16x8xf32>
    %403 = vector.shape_cast %402 : vector<1x16x8xf32> to vector<16x8xf32>
    %c3_276 = arith.constant 3 : index
    %c0_277 = arith.constant 0 : index
    %c0_278 = arith.constant 0 : index
    %404 = vector.load %arg7[%c3_276, %c0_277, %c0_278] : memref<4x16x8xf32, #tpu.memory_space<vmem>>, vector<1x16x8xf32>
    %405 = vector.shape_cast %404 : vector<1x16x8xf32> to vector<16x8xf32>
    %cst_279 = arith.constant 9.99999974E-6 : f32
    %406 = vector.broadcast %cst_279 : f32 to vector<16x8xf32>
    %407 = arith.addf %401, %406 : vector<16x8xf32>
    %408 = math.rsqrt %407 : vector<16x8xf32>
    %409 = arith.mulf %403, %408 : vector<16x8xf32>
    %410 = arith.mulf %395, %409 : vector<16x8xf32>
    %411 = arith.subf %405, %410 : vector<16x8xf32>
    %cst_280 = arith.constant dense<0.000000e+00> : vector<16x256xf32>
    %412 = tpu.matmul %409, %2, %cst_280 {dimension_numbers = #tpu.dot_dimension_numbers<[1], [0], [0], [1], [0, 0, 1, 1], [], []>} : vector<16x8xf32>, vector<8x256xf32>, vector<16x256xf32> -> vector<16x256xf32>
    %413 = arith.mulf %390, %412 : vector<16x256xf32>
    %cst_281 = arith.constant dense<0.000000e+00> : vector<16x256xf32>
    %414 = tpu.matmul %411, %2, %cst_281 {dimension_numbers = #tpu.dot_dimension_numbers<[1], [0], [0], [1], [0, 0, 1, 1], [], []>} : vector<16x8xf32>, vector<8x256xf32>, vector<16x256xf32> -> vector<16x256xf32>
    %415 = arith.addf %413, %414 : vector<16x256xf32>
    %cst_282 = arith.constant 0.000000e+00 : f32
    %416 = vector.broadcast %cst_282 : f32 to vector<16x256xf32>
    %417 = arith.cmpf oge, %415, %416 : vector<16x256xf32>
    %cst_283 = arith.constant 0.00999999977 : f32
    %418 = vector.broadcast %cst_283 : f32 to vector<16x256xf32>
    %419 = arith.mulf %418, %415 : vector<16x256xf32>
    %420 = arith.select %417, %415, %419 : vector<16x256xi1>, vector<16x256xf32>
    %421 = vector.extract_strided_slice %420 {offsets = [0, 0], sizes = [16, 128], strides = [1, 1]} : vector<16x256xf32> to vector<16x128xf32>
    %422 = vector.extract_strided_slice %420 {offsets = [0, 128], sizes = [16, 128], strides = [1, 1]} : vector<16x256xf32> to vector<16x128xf32>
    %423 = arith.addf %421, %422 : vector<16x128xf32>
    %c0_284 = arith.constant 0 : index
    %c0_285 = arith.constant 0 : index
    %424 = vector.load %arg15[%c0_284, %c0_285] : memref<16x128xf32, #tpu.memory_space<vmem>>, vector<16x128xf32>
    tpu.vector_store %arg15[%c0_284, %c0_285], %423 {strides = array<i32>} : memref<16x128xf32, #tpu.memory_space<vmem>>, vector<16x128xf32>,
    return
  }
  func.func @transform_0(%arg0: i32) -> (i32, i32) {
    %c0_i32 = arith.constant 0 : i32
    %c0_i32_0 = arith.constant 0 : i32
    %c0_i32_1 = arith.constant 0 : i32
    return %c0_i32, %c0_i32_0 : i32, i32
  }
  func.func @transform_1(%arg0: i32) -> (i32, i32) {
    %c0_i32 = arith.constant 0 : i32
    %c0_i32_0 = arith.constant 0 : i32
    %c0_i32_1 = arith.constant 0 : i32
    return %c0_i32, %c0_i32_0 : i32, i32
  }
  func.func @transform_2(%arg0: i32) -> (i32, i32) {
    %c0_i32 = arith.constant 0 : i32
    %c0_i32_0 = arith.constant 0 : i32
    %c0_i32_1 = arith.constant 0 : i32
    return %c0_i32, %c0_i32_0 : i32, i32
  }
  func.func @transform_3(%arg0: i32) -> (i32, i32) {
    %c0_i32 = arith.constant 0 : i32
    %c0_i32_0 = arith.constant 0 : i32
    %c0_i32_1 = arith.constant 0 : i32
    return %c0_i32, %c0_i32_0 : i32, i32
  }
  func.func @transform_4(%arg0: i32) -> (i32, i32) {
    %c0_i32 = arith.constant 0 : i32
    %c0_i32_0 = arith.constant 0 : i32
    %c0_i32_1 = arith.constant 0 : i32
    return %c0_i32, %c0_i32_0 : i32, i32
  }
  func.func @transform_5(%arg0: i32) -> (i32, i32, i32) {
    %c0_i32 = arith.constant 0 : i32
    %c0_i32_0 = arith.constant 0 : i32
    %c0_i32_1 = arith.constant 0 : i32
    %c0_i32_2 = arith.constant 0 : i32
    return %c0_i32, %c0_i32_0, %c0_i32_1 : i32, i32, i32
  }
  func.func @transform_6(%arg0: i32) -> (i32, i32, i32) {
    %c0_i32 = arith.constant 0 : i32
    %c0_i32_0 = arith.constant 0 : i32
    %c0_i32_1 = arith.constant 0 : i32
    %c0_i32_2 = arith.constant 0 : i32
    return %c0_i32, %c0_i32_0, %c0_i32_1 : i32, i32, i32
  }
  func.func @transform_7(%arg0: i32) -> (i32, i32) {
    %c0_i32 = arith.constant 0 : i32
    %c0_i32_0 = arith.constant 0 : i32
    %c0_i32_1 = arith.constant 0 : i32
    return %c0_i32, %c0_i32_0 : i32, i32
  }
  func.func @transform_8(%arg0: i32) -> (i32, i32) {
    %c0_i32 = arith.constant 0 : i32
    %c0_i32_0 = arith.constant 0 : i32
    %c0_i32_1 = arith.constant 0 : i32
    return %c0_i32, %c0_i32_0 : i32, i32
  }
  func.func @transform_9(%arg0: i32) -> (i32, i32) {
    %c0_i32 = arith.constant 0 : i32
    %c0_i32_0 = arith.constant 0 : i32
    %c0_i32_1 = arith.constant 0 : i32
    return %c0_i32, %c0_i32_0 : i32, i32
  }
  func.func @transform_10(%arg0: i32) -> (i32, i32) {
    %c0_i32 = arith.constant 0 : i32
    %c0_i32_0 = arith.constant 0 : i32
    %c0_i32_1 = arith.constant 0 : i32
    return %c0_i32, %c0_i32_0 : i32, i32
  }
  func.func @transform_11(%arg0: i32) -> (i32, i32) {
    %c0_i32 = arith.constant 0 : i32
    %c0_i32_0 = arith.constant 0 : i32
    %c0_i32_1 = arith.constant 0 : i32
    return %c0_i32, %c0_i32_0 : i32, i32
  }
  func.func @transform_12(%arg0: i32) -> (i32, i32) {
    %c0_i32 = arith.constant 0 : i32
    %c0_i32_0 = arith.constant 0 : i32
    %c0_i32_1 = arith.constant 0 : i32
    return %c0_i32, %c0_i32_0 : i32, i32
  }
  func.func @transform_13(%arg0: i32) -> (i32, i32) {
    %c0_i32 = arith.constant 0 : i32
    %c0_i32_0 = arith.constant 0 : i32
    %c0_i32_1 = arith.constant 0 : i32
    return %c0_i32, %c0_i32_0 : i32, i32
  }
  func.func @transform_14(%arg0: i32) -> (i32, i32) {
    %c0_i32 = arith.constant 0 : i32
    %c0_i32_0 = arith.constant 0 : i32
    %c0_i32_1 = arith.constant 0 : i32
    return %c0_i32, %c0_i32_0 : i32, i32
  }
}

</mosaic_0001>

<bundles_post_ra>
// kernel: _lambda_.1
= control target key start
LH: loop header
LB: loop body
LE: loop exit
PB: predicated region body
PF: predicated region fallthrough
CT: control target
= control target key end

     0   :  { %v10368_v3 = vmov 0.0   ;;  %vm234_vm0 = vcmask 130048   ;;  %s6813_s15 = smov 1   ;;  %s6814_s16 = smov 127   ;;  %vm1102_vm1 = vcmask 64512   ;;  %vm1808_vm8 = vcmask 1039360   ;;  %s10353_s0 = inlined_call_operand.vmem [shape: f32[16,1024], index: 0, kind: input, shape index: {}]   ;;  %s10354_s1 = inlined_call_operand.vmem [shape: f32[8,16], index: 1, kind: input, shape index: {}]   ;;  %s10355_s11 = inlined_call_operand.vmem [shape: f32[1024,8], index: 11, kind: input, shape index: {}]   ;;  %s10356_s10 = inlined_call_operand.vmem [shape: f32[8,1024], index: 10, kind: input, shape index: {}]   ;;  %s10357_s7 = inlined_call_operand.vmem [shape: f32[9,1024], index: 7, kind: input, shape index: {}]   ;;  %s10358_s5 = inlined_call_operand.vmem [shape: f32[4,16,8], index: 5, kind: input, shape index: {}]   ;;  %s10359_s6 = inlined_call_operand.vmem [shape: f32[4,16,8], index: 6, kind: input, shape index: {}]   ;;  %s10360_s2 = inlined_call_operand.vmem [shape: f32[8,72], index: 2, kind: input, shape index: {}]   ;;  %s10361_s8 = inlined_call_operand.vmem [shape: f32[9,256], index: 8, kind: input, shape index: {}]   ;;  %s10362_s13 = inlined_call_operand.vmem [shape: f32[256,8], index: 13, kind: input, shape index: {}]   ;;  %s10363_s3 = inlined_call_operand.vmem [shape: f32[16,72], index: 3, kind: input, shape index: {}]   ;;  %s10364_s12 = inlined_call_operand.vmem [shape: f32[8,256], index: 12, kind: input, shape index: {}]   ;;  %s10365_s4 = inlined_call_operand.vmem [shape: f32[16,144], index: 4, kind: input, shape index: {}]   ;;  %s10366_s9 = inlined_call_operand.vmem [shape: f32[9,256], index: 9, kind: input, shape index: {}]   ;;  %s10367_s14 = inlined_call_operand.vmem [shape: f32[16,128], index: 14, kind: output, shape index: {}]  }
   0x1   :  { %v227_v0 = vld [vmem:[%s10353_s0 + $0x48] sm:$0xff]  ;;  %v226_v1 = vld [vmem:[%s10353_s0 + $0x40] sm:$0xff]  ;;  %302 = vmatprep.mubr.f32.mxu1 %v10368_v3  ;;  %v229_v6 = vld [vmem:[%s10353_s0 + $0x58] sm:$0xff]  ;;  %s6815_s25 = smov 120   ;;  %s6816_s29 = smov 121   ;;  %vm1825_vm11 = vcmask 7168  }
   0x2   :  { %v219_v2 = vld [vmem:[%s10353_s0 + $0x8] sm:$0xff]  ;;  %266 = vmatprep.subr.mxu1 %v227_v0  ;;  %v218_v4 = vld [vmem:[%s10353_s0] sm:$0xff]  ;;  %v228_v7 = vld [vmem:[%s10353_s0 + $0x50] sm:$0xff]  ;;  %s6817_s17 = smov 119   ;;  %s6818_s24 = smov 8   ;;  %vm1748_vm12 = vcmask 72704  }
   0x3   :  { %267 = vmatpush1.msra.mxu1 %v226_v1  ;;  %v217_v5 = vld [vmem:[%s10354_s1] sm:$0xff]  ;;  %v221_v8 = vld [vmem:[%s10353_s0 + $0x18] sm:$0xff]  ;;  %v220_v9 = vld [vmem:[%s10353_s0 + $0x10] sm:$0xff]  ;;  %s6819_s1 = smov 9   ;;  %s6820_s19 = smov 7   ;;  %vm2026_vm13 = vcmask 56320  }
   0x4   :  { %268 = vmatprep.subr.mxu1 %v219_v2  ;;  %v6928_v10 = vld [vmem:[%s10355_s11 + $0xf8] sm:$0xff]  ;;  %v231_v11 = vld [vmem:[%s10353_s0 + $0x68] sm:$0xff]  ;;  %v230_v13 = vld [vmem:[%s10353_s0 + $0x60] sm:$0xff]  ;;  %vm1770_vm14 = vcmask 982016   ;;  %vm2009_vm15 = vcmask 990208  }
   0x5   :  { %269 = vmatpush1.msra.mxu1 %v218_v4  ;;  %v6937_v12 = vld [vmem:[%s10355_s11 + $0x78] sm:$0xff]  ;;  %5943 = vmatprep.subr.mxu0 %v6928_v10  ;;  %v223_v14 = vld [vmem:[%s10353_s0 + $0x28] sm:$0xff]  ;;  %v6950_v15 = vld [vmem:[%s10355_s11 + $0xf0] sm:$0xff] }
   0x6   :  { %5846 = vmatmul.mubr.msk.f32.vlgmr.msra.gmra.mxu1 %vm234_vm0, %v217_v5  ;;  %337 = vmatprep.subr.mxu1 %v229_v6  ;;  %v222_v16 = vld [vmem:[%s10353_s0 + $0x20] sm:$0xff]  ;;  %v6959_v17 = vld [vmem:[%s10355_s11 + $0x70] sm:$0xff]  ;;  %v233_v18 = vld [vmem:[%s10353_s0 + $0x78] sm:$0xff] }
   0x7   :  { %338 = vmatpush1.msra.mxu1 %v228_v7  ;;  %373 = vmatprep.mubr.f32.mxu1 %v10368_v3  ;;  %v232_v19 = vld [vmem:[%s10353_s0 + $0x70] sm:$0xff]  ;;  %v225_v20 = vld [vmem:[%s10353_s0 + $0x38] sm:$0xff]  ;;  %v6976_v21 = vld [vmem:[%s10355_s11 + $0xe8] sm:$0xff] }
   0x8   :  { %339 = vmatprep.subr.mxu1 %v221_v8  ;;  %5944 = vmatpush3.msra.mxu0 %v6937_v12  ;;  %v224_v22 = vld [vmem:[%s10353_s0 + $0x30] sm:$0xff]  ;;  %v6985_v23 = vld [vmem:[%s10355_s11 + $0x68] sm:$0xff]  ;;  %v6991_v24 = vld [vmem:[%s10355_s11 + $0x1f8] sm:$0xff] }
   0x9   :  { %340 = vmatpush1.msra.mxu1 %v220_v9  ;;  %5945 = vmatprep.subr.mxu0 %v6950_v15  ;;  %v6997_v25 = vld [vmem:[%s10355_s11 + $0x178] sm:$0xff]  ;;  %v7002_v26 = vld [vmem:[%s10355_s11 + $0xe0] sm:$0xff]  ;;  %v7008_v27 = vld [vmem:[%s10355_s11 + $0x1f0] sm:$0xff] }
   0xa   :  { %5847 = vmatmul.mubr.msk.f32.vlgmr.msra.gmra.mxu1 %vm234_vm0, %v217_v5  ;;  %408 = vmatprep.subr.mxu1 %v231_v11  ;;  %v7013_v28 = vld [vmem:[%s10355_s11 + $0x60] sm:$0xff]  ;;  %v7020_v29 = vld [vmem:[%s10355_s11 + $0x170] sm:$0xff]  ;;  %v7025_v30 = vld [vmem:[%s10355_s11 + $0xd8] sm:$0xff] }
   0xb   :  { %409 = vmatpush1.msra.mxu1 %v230_v13  ;;  %444 = vmatprep.mubr.f32.mxu1 %v10368_v3  ;;  %v7032_v31 = vld [vmem:[%s10355_s11 + $0x1e8] sm:$0xff]  ;;  %v7037_v32 = vld [vmem:[%s10355_s11 + $0x58] sm:$0xff]  ;;  %v7049_v34 = vld [vmem:[%s10355_s11 + $0xd0] sm:$0xff] }
   0xc   :  { %410 = vmatprep.subr.mxu1 %v223_v14  ;;  %5946 = vmatpush3.msra.mxu0 %v6959_v17  ;;  %v7044_v33 = vld [vmem:[%s10355_s11 + $0x168] sm:$0xff]  ;;  %v7056_v35 = vld [vmem:[%s10355_s11 + $0x1e0] sm:$0xff]  ;;  %v7061_v36 = vld [vmem:[%s10355_s11 + $0x50] sm:$0xff] }
   0xd   :  { %411 = vmatpush1.msra.mxu1 %v222_v16  ;;  %5947 = vmatprep.subr.mxu0 %v6976_v21  ;;  %v7068_v37 = vld [vmem:[%s10355_s11 + $0x160] sm:$0xff]  ;;  %v7073_v38 = vld [vmem:[%s10355_s11 + $0xc8] sm:$0xff]  ;;  %v7080_v39 = vld [vmem:[%s10355_s11 + $0x1d8] sm:$0xff] }
   0xe   :  { %5848 = vmatmul.mubr.msk.f32.vlgmr.msra.gmra.mxu1 %vm234_vm0, %v217_v5  ;;  %479 = vmatprep.subr.mxu1 %v233_v18  ;;  %v7085_v40 = vld [vmem:[%s10355_s11 + $0x48] sm:$0xff]  ;;  %v7092_v41 = vld [vmem:[%s10355_s11 + $0x158] sm:$0xff]  ;;  %v7097_v42 = vld [vmem:[%s10355_s11 + $0xc0] sm:$0xff] }
   0xf   :  { %480 = vmatpush1.msra.mxu1 %v232_v19  ;;  %515 = vmatprep.mubr.f32.mxu1 %v10368_v3  ;;  %v7104_v43 = vld [vmem:[%s10355_s11 + $0x1d0] sm:$0xff]  ;;  %v7109_v44 = vld [vmem:[%s10355_s11 + $0x40] sm:$0xff]  ;;  %v7121_v46 = vld [vmem:[%s10355_s11 + $0xb8] sm:$0xff] }
  0x10   :  { %481 = vmatprep.subr.mxu1 %v225_v20  ;;  %5948 = vmatpush3.msra.mxu0 %v6985_v23  ;;  %v7116_v45 = vld [vmem:[%s10355_s11 + $0x150] sm:$0xff]  ;;  %v7128_v47 = vld [vmem:[%s10355_s11 + $0x1c8] sm:$0xff]  ;;  %v7133_v48 = vld [vmem:[%s10355_s11 + $0x38] sm:$0xff] }
  0x11   :  { %482 = vmatpush1.msra.mxu1 %v224_v22  ;;  %5949 = vmatprep.subr.mxu0 %v7002_v26  ;;  %v7140_v49 = vld [vmem:[%s10355_s11 + $0x148] sm:$0xff]  ;;  %v7145_v50 = vld [vmem:[%s10355_s11 + $0xb0] sm:$0xff]  ;;  %v7152_v51 = vld [vmem:[%s10355_s11 + $0x1c0] sm:$0xff] }
  0x12   :  { %5849 = vmatmul.mubr.msk.f32.vlgmr.msra.gmra.mxu1 %vm234_vm0, %v217_v5  ;;  %5978 = vmatprep.subr.mxu1 %v6991_v24  ;;  %v7157_v52 = vld [vmem:[%s10355_s11 + $0x30] sm:$0xff]  ;;  %v7164_v53 = vld [vmem:[%s10355_s11 + $0x140] sm:$0xff]  ;;  %v7169_v54 = vld [vmem:[%s10355_s11 + $0xa8] sm:$0xff] }
  0x13   :  { %5979 = vmatpush3.msra.mxu1 %v6997_v25  ;;  %5950 = vmatpush3.msra.mxu0 %v7013_v28  ;;  %v7176_v55 = vld [vmem:[%s10355_s11 + $0x1b8] sm:$0xff]  ;;  %v7181_v56 = vld [vmem:[%s10355_s11 + $0x28] sm:$0xff]  ;;  %v7193_v58 = vld [vmem:[%s10355_s11 + $0xa0] sm:$0xff] }
  0x14   :  { %5980 = vmatprep.subr.mxu1 %v7008_v27  ;;  %5951 = vmatprep.subr.mxu0 %v7025_v30  ;;  %v7188_v57 = vld [vmem:[%s10355_s11 + $0x138] sm:$0xff]  ;;  %v7200_v59 = vld [vmem:[%s10355_s11 + $0x1b0] sm:$0xff]  ;;  %v7205_v60 = vld [vmem:[%s10355_s11 + $0x20] sm:$0xff] }
  0x15   :  { %5981 = vmatpush3.msra.mxu1 %v7020_v29  ;;  %5952 = vmatpush3.msra.mxu0 %v7037_v32  ;;  %v7212_v61 = vld [vmem:[%s10355_s11 + $0x130] sm:$0xff]  ;;  %v7217_v62 = vld [vmem:[%s10355_s11 + $0x98] sm:$0xff]  ;;  %v7224_v63 = vld [vmem:[%s10355_s11 + $0x1a8] sm:$0xff] }
  0x16   :  { %5982 = vmatprep.subr.mxu1 %v7032_v31  ;;  %5953 = vmatprep.subr.mxu0 %v7049_v34  ;;  %v7229_v0 = vld [vmem:[%s10355_s11 + $0x18] sm:$0xff]  ;;  %v7236_v1 = vld [vmem:[%s10355_s11 + $0x128] sm:$0xff]  ;;  %v7241_v2 = vld [vmem:[%s10355_s11 + $0x90] sm:$0xff] }
  0x17   :  { %5983 = vmatpush3.msra.mxu1 %v7044_v33  ;;  %5954 = vmatpush3.msra.mxu0 %v7061_v36  ;;  %v7248_v4 = vld [vmem:[%s10355_s11 + $0x1a0] sm:$0xff]  ;;  %v7253_v5 = vld [vmem:[%s10355_s11 + $0x10] sm:$0xff]  ;;  %v7265_v7 = vld [vmem:[%s10355_s11 + $0x88] sm:$0xff] }
  0x18   :  { %5984 = vmatprep.subr.mxu1 %v7056_v35  ;;  %5955 = vmatprep.subr.mxu0 %v7073_v38  ;;  %v7260_v6 = vld [vmem:[%s10355_s11 + $0x120] sm:$0xff]  ;;  %10533 = vst [vmem:[#allocation5_spill] sm:$0xff] %v7265_v7  ;;  %v7272_v8 = vld [vmem:[%s10355_s11 + $0x198] sm:$0xff]  ;;  %v7282_v9 = vld [vmem:[%s10355_s11 + $0x8] sm:$0xff] }
  0x19   :  { %5985 = vmatpush3.msra.mxu1 %v7068_v37  ;;  %5956 = vmatpush3.msra.mxu0 %v7085_v40  ;;  %10534 = vst [vmem:[#allocation6_spill] sm:$0xff] %v7272_v8  ;;  %10535 = vst [vmem:[#allocation7_spill] sm:$0xff] %v7282_v9  ;;  %v7287_v11 = vld [vmem:[%s10355_s11 + $0x118] sm:$0xff]  ;;  %v7294_v13 = vld [vmem:[%s10355_s11 + $0x80] sm:$0xff] }
  0x1a   :  { %5986 = vmatprep.subr.mxu1 %v7080_v39  ;;  %5957 = vmatprep.subr.mxu0 %v7097_v42  ;;  %10536 = vst [vmem:[#allocation8_spill] sm:$0xff] %v7287_v11  ;;  %10537 = vst [vmem:[#allocation9_spill] sm:$0xff] %v7294_v13  ;;  %v7299_v14 = vld [vmem:[%s10355_s11 + $0x190] sm:$0xff]  ;;  %v7306_v16 = vld [vmem:[%s10355_s11] sm:$0xff] }
  0x1b   :  { %5987 = vmatpush3.msra.mxu1 %v7092_v41  ;;  %5958 = vmatpush3.msra.mxu0 %v7109_v44  ;;  %10538 = vst [vmem:[#allocation10_spill] sm:$0xff] %v7299_v14  ;;  %10539 = vst [vmem:[#allocation11_spill] sm:$0xff] %v7306_v16  ;;  %v7311_v18 = vld [vmem:[%s10355_s11 + $0x110] sm:$0xff]  ;;  %v7318_v19 = vld [vmem:[%s10355_s11 + $0x188] sm:$0xff] }
  0x1c   :  { %5988 = vmatprep.subr.mxu1 %v7104_v43  ;;  %5959 = vmatprep.subr.mxu0 %v7121_v46  ;;  %10540 = vst [vmem:[#allocation12_spill] sm:$0xff] %v7311_v18  ;;  %10541 = vst [vmem:[#allocation13_spill] sm:$0xff] %v7318_v19  ;;  %v7323_v20 = vld [vmem:[%s10355_s11 + $0x2f8] sm:$0xff]  ;;  %v7330_v22 = vld [vmem:[%s10355_s11 + $0x108] sm:$0xff] }
  0x1d   :  { %5989 = vmatpush3.msra.mxu1 %v7116_v45  ;;  %5960 = vmatpush3.msra.mxu0 %v7133_v48  ;;  %10542 = vst [vmem:[#allocation14_spill] sm:$0xff] %v7323_v20  ;;  %10543 = vst [vmem:[#allocation15_spill] sm:$0xff] %v7330_v22  ;;  %v7336_v3 = vld [vmem:[%s10355_s11 + $0x180] sm:$0xff] }
  0x1e   :  { %5990 = vmatprep.subr.mxu1 %v7128_v47  ;;  %5961 = vmatprep.subr.mxu0 %v7145_v50  ;;  %10544 = vst [vmem:[#allocation16_spill] sm:$0xff] %v7336_v3 }
  0x1f   :  { %5991 = vmatpush3.msra.mxu1 %v7140_v49  ;;  %5962 = vmatpush3.msra.mxu0 %v7157_v52 }
  0x20   :  { %5992 = vmatprep.subr.mxu1 %v7152_v51  ;;  %5963 = vmatprep.subr.mxu0 %v7169_v54 }
  0x21   :  { %5993 = vmatpush3.msra.mxu1 %v7164_v53  ;;  %5964 = vmatpush3.msra.mxu0 %v7181_v56 }
  0x22   :  { %5994 = vmatprep.subr.mxu1 %v7176_v55  ;;  %5965 = vmatprep.subr.mxu0 %v7193_v58 }
  0x23   :  { %5995 = vmatpush3.msra.mxu1 %v7188_v57  ;;  %5966 = vmatpush3.msra.mxu0 %v7205_v60 }
  0x24   :  { %5996 = vmatprep.subr.mxu1 %v7200_v59  ;;  %5967 = vmatprep.subr.mxu0 %v7217_v62 }
  0x25   :  { %5997 = vmatpush3.msra.mxu1 %v7212_v61  ;;  %5968 = vmatpush3.msra.mxu0 %v7229_v0 }
  0x26   :  { %5998 = vmatprep.subr.mxu1 %v7224_v63  ;;  %5969 = vmatprep.subr.mxu0 %v7241_v2 }
  0x27   :  { %5999 = vmatpush3.msra.mxu1 %v7236_v1  ;;  %5970 = vmatpush3.msra.mxu0 %v7253_v5 }
  0x28   :  { %6000 = vmatprep.subr.mxu1 %v7248_v4  ;;  %5971 = vmatprep.subr.mxu0 %v7265_v7 }
  0x29   :  { %6001 = vmatpush3.msra.mxu1 %v7260_v6  ;;  %5972 = vmatpush3.msra.mxu0 %v7282_v9  ;;  %v7415_v9 = vld [vmem:[%s10355_s11 + $0x370] sm:$0xff] }
  0x2a   :  { %6002 = vmatprep.subr.mxu1 %v7272_v8  ;;  %5973 = vmatprep.subr.mxu0 %v7294_v13  ;;  %10558 = vst [vmem:[#allocation30_spill] sm:$0xff] %v7415_v9 }
  0x2b   :  { %6003 = vmatpush3.msra.mxu1 %v7287_v11  ;;  %5974 = vmatpush3.msra.mxu0 %v7306_v16  ;;  %v7391_v11 = vld [vmem:[%s10355_s11 + $0x378] sm:$0xff] }
  0x2c   :  { %6004 = vmatprep.subr.mxu1 %v7299_v14  ;;  %6013 = vmatprep.subr.mxu0 %v7323_v20  ;;  %v7348_v20 = vld [vmem:[%s10355_s11 + $0x3f8] sm:$0xff]  ;;  %v7378_v14 = vld [vmem:[%s10355_s11 + $0x2e8] sm:$0xff]  ;;  %10554 = vst [vmem:[#allocation26_spill] sm:$0xff] %v7391_v11 }
  0x2d   :  { %6005 = vmatpush3.msra.mxu1 %v7311_v18  ;;  %10546 = vst [vmem:[#allocation18_spill] sm:$0xff] %v7348_v20  ;;  %10552 = vst [vmem:[#allocation24_spill] sm:$0xff] %v7378_v14 }
  0x2e   :  { %6006 = vmatprep.subr.mxu1 %v7318_v19  ;;  %v7342_v19 = vld [vmem:[%s10355_s11 + $0x100] sm:$0xff] }
  0x2f   :  { %6007 = vmatpush3.msra.mxu1 %v7330_v22  ;;  %10545 = vst [vmem:[#allocation17_spill] sm:$0xff] %v7342_v19 }
  0x30   :  { %6008 = vmatprep.subr.mxu1 %v7336_v3  ;;  %v7358_v3 = vld [vmem:[%s10355_s11 + $0x278] sm:$0xff] }
  0x31   :  { %6009 = vmatpush3.msra.mxu1 %v7342_v19  ;;  %10548 = vst [vmem:[#allocation20_spill] sm:$0xff] %v7358_v3  ;;  %v7364_v19 = vld [vmem:[%s10355_s11 + $0x2f0] sm:$0xff] }
  0x32   :  { %6048 = vmatprep.subr.mxu1 %v7348_v20  ;;  %10549 = vst [vmem:[#allocation21_spill] sm:$0xff] %v7364_v19  ;;  %v7372_v20 = vld [vmem:[%s10355_s11 + $0x270] sm:$0xff] }
  0x33   :  { %10551 = vst [vmem:[#allocation23_spill] sm:$0xff] %v7372_v20 }
  0xc6   :  { %v7351_v22 = vpop.f32.mrf.mxu1 }
  0xc7   :  { %10547 = vst [vmem:[#allocation19_spill] sm:$0xff] %v7351_v22 }
  0xc8   :  { %v7353_v18 = vpop.f32.mrf.mxu1 }
  0xc9   :  { %586 = vmatprep.mubr.f32.mxu0 %v7353_v18 }
  0xca   :  { %v7366_v16 = vpop.f32.mrf.mxu1  ;;  %587 = vmatmul.mubr.f32.vlgmr.msra.gmra.mxu0 %v7351_v22  ;;  %v7386_v22 = vld [vmem:[%s10355_s11 + $0x268] sm:$0xff] }
  0xcb   :  { %10550 = vst [vmem:[#allocation22_spill] sm:$0xff] %v7366_v16  ;;  %6014 = vmatpush3.msra.mxu0 %v7358_v3  ;;  %10553 = vst [vmem:[#allocation25_spill] sm:$0xff] %v7386_v22  ;;  %v7403_v3 = vld [vmem:[%s10355_s11 + $0x3f0] sm:$0xff] }
  0xcc   :  { %6015 = vmatprep.subr.mxu0 %v7364_v19  ;;  %v7381_v13 = vpop.f32.mrf.mxu1  ;;  %v7398_v19 = vld [vmem:[%s10355_s11 + $0x2e0] sm:$0xff]  ;;  %10556 = vst [vmem:[#allocation28_spill] sm:$0xff] %v7403_v3 }
  0xcd   :  { %6016 = vmatpush3.msra.mxu0 %v7372_v20  ;;  %656 = vmatprep.mubr.f32.mxu1 %v7381_v13  ;;  %10555 = vst [vmem:[#allocation27_spill] sm:$0xff] %v7398_v19  ;;  %v7410_v20 = vld [vmem:[%s10355_s11 + $0x260] sm:$0xff] }
  0xce   :  { %6017 = vmatprep.subr.mxu0 %v7378_v14  ;;  %657 = vmatmul.mubr.f32.vlgmr.msra.gmra.mxu1 %v7366_v16  ;;  %10557 = vst [vmem:[#allocation29_spill] sm:$0xff] %v7410_v20  ;;  %v7422_v14 = vld [vmem:[%s10355_s11 + $0x2d8] sm:$0xff]  ;;  %v7427_v16 = vld [vmem:[%s10355_s11 + $0x3e8] sm:$0xff]  ;;  %v7633_v8 = vpop.f32.mrf.mxu1 }
  0xcf   :  { %6018 = vmatpush3.msra.mxu0 %v7386_v22  ;;  %6049 = vmatpush3.msra.mxu1 %v7391_v11  ;;  %10559 = vst [vmem:[#allocation31_spill] sm:$0xff] %v7422_v14  ;;  %10560 = vst [vmem:[#allocation32_spill] sm:$0xff] %v7427_v16  ;;  %v7434_v22 = vld [vmem:[%s10355_s11 + $0x258] sm:$0xff]  ;;  %v7439_v11 = vld [vmem:[%s10355_s11 + $0x368] sm:$0xff] }
  0xd0   :  { %6019 = vmatprep.subr.mxu0 %v7398_v19  ;;  %6050 = vmatprep.subr.mxu1 %v7403_v3  ;;  %10561 = vst [vmem:[#allocation33_spill] sm:$0xff] %v7434_v22  ;;  %10562 = vst [vmem:[#allocation34_spill] sm:$0xff] %v7439_v11  ;;  %v7446_v19 = vld [vmem:[%s10355_s11 + $0x2d0] sm:$0xff]  ;;  %v7451_v3 = vld [vmem:[%s10355_s11 + $0x3e0] sm:$0xff]  ;;  %v7683_v7 = vpop.f32.mrf.mxu1 }
  0xd1   :  { %6020 = vmatpush3.msra.mxu0 %v7410_v20  ;;  %6051 = vmatpush3.msra.mxu1 %v7415_v9  ;;  %10563 = vst [vmem:[#allocation35_spill] sm:$0xff] %v7446_v19  ;;  %10564 = vst [vmem:[#allocation36_spill] sm:$0xff] %v7451_v3  ;;  %v7458_v20 = vld [vmem:[%s10355_s11 + $0x250] sm:$0xff]  ;;  %v7463_v9 = vld [vmem:[%s10355_s11 + $0x360] sm:$0xff] }
  0xd2   :  { %6021 = vmatprep.subr.mxu0 %v7422_v14  ;;  %6052 = vmatprep.subr.mxu1 %v7427_v16  ;;  %10565 = vst [vmem:[#allocation37_spill] sm:$0xff] %v7458_v20  ;;  %10566 = vst [vmem:[#allocation38_spill] sm:$0xff] %v7463_v9  ;;  %v7470_v14 = vld [vmem:[%s10355_s11 + $0x2c8] sm:$0xff]  ;;  %v7475_v16 = vld [vmem:[%s10355_s11 + $0x3d8] sm:$0xff] }
  0xd3   :  { %6022 = vmatpush3.msra.mxu0 %v7434_v22  ;;  %6053 = vmatpush3.msra.mxu1 %v7439_v11  ;;  %10567 = vst [vmem:[#allocation39_spill] sm:$0xff] %v7470_v14  ;;  %10568 = vst [vmem:[#allocation40_spill] sm:$0xff] %v7475_v16  ;;  %v7482_v22 = vld [vmem:[%s10355_s11 + $0x248] sm:$0xff]  ;;  %v7487_v11 = vld [vmem:[%s10355_s11 + $0x358] sm:$0xff] }
  0xd4   :  { %6023 = vmatprep.subr.mxu0 %v7446_v19  ;;  %6054 = vmatprep.subr.mxu1 %v7451_v3  ;;  %10569 = vst [vmem:[#allocation41_spill] sm:$0xff] %v7482_v22  ;;  %10570 = vst [vmem:[#allocation42_spill] sm:$0xff] %v7487_v11  ;;  %v7494_v19 = vld [vmem:[%s10355_s11 + $0x2c0] sm:$0xff]  ;;  %v7499_v3 = vld [vmem:[%s10355_s11 + $0x3d0] sm:$0xff] }
  0xd5   :  { %6024 = vmatpush3.msra.mxu0 %v7458_v20  ;;  %6055 = vmatpush3.msra.mxu1 %v7463_v9  ;;  %10571 = vst [vmem:[#allocation43_spill] sm:$0xff] %v7494_v19  ;;  %10572 = vst [vmem:[#allocation44_spill] sm:$0xff] %v7499_v3  ;;  %v7506_v20 = vld [vmem:[%s10355_s11 + $0x240] sm:$0xff]  ;;  %v7511_v9 = vld [vmem:[%s10355_s11 + $0x350] sm:$0xff] }
  0xd6   :  { %6025 = vmatprep.subr.mxu0 %v7470_v14  ;;  %6056 = vmatprep.subr.mxu1 %v7475_v16  ;;  %10573 = vst [vmem:[#allocation45_spill] sm:$0xff] %v7506_v20  ;;  %10574 = vst [vmem:[#allocation46_spill] sm:$0xff] %v7511_v9  ;;  %v7518_v14 = vld [vmem:[%s10355_s11 + $0x2b8] sm:$0xff]  ;;  %v7523_v16 = vld [vmem:[%s10355_s11 + $0x3c8] sm:$0xff] }
  0xd7   :  { %6026 = vmatpush3.msra.mxu0 %v7482_v22  ;;  %6057 = vmatpush3.msra.mxu1 %v7487_v11  ;;  %10575 = vst [vmem:[#allocation47_spill] sm:$0xff] %v7518_v14  ;;  %10576 = vst [vmem:[#allocation48_spill] sm:$0xff] %v7523_v16  ;;  %v7530_v22 = vld [vmem:[%s10355_s11 + $0x238] sm:$0xff]  ;;  %v7535_v11 = vld [vmem:[%s10355_s11 + $0x348] sm:$0xff] }
  0xd8   :  { %6027 = vmatprep.subr.mxu0 %v7494_v19  ;;  %6058 = vmatprep.subr.mxu1 %v7499_v3  ;;  %10577 = vst [vmem:[#allocation49_spill] sm:$0xff] %v7530_v22  ;;  %10578 = vst [vmem:[#allocation50_spill] sm:$0xff] %v7535_v11  ;;  %v7542_v19 = vld [vmem:[%s10355_s11 + $0x2b0] sm:$0xff]  ;;  %v7547_v3 = vld [vmem:[%s10355_s11 + $0x3c0] sm:$0xff] }
  0xd9   :  { %6028 = vmatpush3.msra.mxu0 %v7506_v20  ;;  %6059 = vmatpush3.msra.mxu1 %v7511_v9  ;;  %10579 = vst [vmem:[#allocation51_spill] sm:$0xff] %v7542_v19  ;;  %10580 = vst [vmem:[#allocation52_spill] sm:$0xff] %v7547_v3  ;;  %v7554_v20 = vld [vmem:[%s10355_s11 + $0x230] sm:$0xff]  ;;  %v7559_v9 = vld [vmem:[%s10355_s11 + $0x340] sm:$0xff] }
  0xda   :  { %6029 = vmatprep.subr.mxu0 %v7518_v14  ;;  %6060 = vmatprep.subr.mxu1 %v7523_v16  ;;  %10581 = vst [vmem:[#allocation53_spill] sm:$0xff] %v7554_v20  ;;  %10582 = vst [vmem:[#allocation54_spill] sm:$0xff] %v7559_v9  ;;  %v7566_v14 = vld [vmem:[%s10355_s11 + $0x2a8] sm:$0xff]  ;;  %v7571_v16 = vld [vmem:[%s10355_s11 + $0x3b8] sm:$0xff] }
  0xdb   :  { %6030 = vmatpush3.msra.mxu0 %v7530_v22  ;;  %6061 = vmatpush3.msra.mxu1 %v7535_v11  ;;  %10583 = vst [vmem:[#allocation55_spill] sm:$0xff] %v7566_v14  ;;  %10584 = vst [vmem:[#allocation56_spill] sm:$0xff] %v7571_v16  ;;  %v7578_v22 = vld [vmem:[%s10355_s11 + $0x228] sm:$0xff]  ;;  %v7583_v11 = vld [vmem:[%s10355_s11 + $0x338] sm:$0xff] }
  0xdc   :  { %6031 = vmatprep.subr.mxu0 %v7542_v19  ;;  %6062 = vmatprep.subr.mxu1 %v7547_v3  ;;  %10585 = vst [vmem:[#allocation57_spill] sm:$0xff] %v7578_v22  ;;  %10586 = vst [vmem:[#allocation58_spill] sm:$0xff] %v7583_v11  ;;  %v7590_v19 = vld [vmem:[%s10355_s11 + $0x2a0] sm:$0xff]  ;;  %v7595_v3 = vld [vmem:[%s10355_s11 + $0x3b0] sm:$0xff] }
  0xdd   :  { %6032 = vmatpush3.msra.mxu0 %v7554_v20  ;;  %6063 = vmatpush3.msra.mxu1 %v7559_v9  ;;  %10587 = vst [vmem:[#allocation59_spill] sm:$0xff] %v7590_v19  ;;  %10588 = vst [vmem:[#allocation60_spill] sm:$0xff] %v7595_v3  ;;  %v7602_v20 = vld [vmem:[%s10355_s11 + $0x220] sm:$0xff]  ;;  %v7607_v9 = vld [vmem:[%s10355_s11 + $0x330] sm:$0xff] }
  0xde   :  { %6033 = vmatprep.subr.mxu0 %v7566_v14  ;;  %6064 = vmatprep.subr.mxu1 %v7571_v16  ;;  %10589 = vst [vmem:[#allocation61_spill] sm:$0xff] %v7602_v20  ;;  %10590 = vst [vmem:[#allocation62_spill] sm:$0xff] %v7607_v9  ;;  %v7614_v14 = vld [vmem:[%s10355_s11 + $0x298] sm:$0xff]  ;;  %v7619_v16 = vld [vmem:[%s10355_s11 + $0x3a8] sm:$0xff] }
  0xdf   :  { %6034 = vmatpush3.msra.mxu0 %v7578_v22  ;;  %6065 = vmatpush3.msra.mxu1 %v7583_v11  ;;  %10591 = vst [vmem:[#allocation63_spill] sm:$0xff] %v7614_v14  ;;  %10592 = vst [vmem:[#allocation64_spill] sm:$0xff] %v7619_v16  ;;  %v7626_v22 = vld [vmem:[%s10355_s11 + $0x218] sm:$0xff]  ;;  %v7631_v11 = vld [vmem:[%s10355_s11 + $0x328] sm:$0xff] }
  0xe0   :  { %6035 = vmatprep.subr.mxu0 %v7590_v19  ;;  %6066 = vmatprep.subr.mxu1 %v7595_v3  ;;  %10593 = vst [vmem:[#allocation65_spill] sm:$0xff] %v7626_v22  ;;  %10594 = vst [vmem:[#allocation66_spill] sm:$0xff] %v7631_v11  ;;  %v7640_v3 = vld [vmem:[%s10355_s11 + $0x290] sm:$0xff]  ;;  %v7645_v19 = vld [vmem:[%s10355_s11 + $0x3a0] sm:$0xff] }
  0xe1   :  { %6036 = vmatpush3.msra.mxu0 %v7602_v20  ;;  %6067 = vmatpush3.msra.mxu1 %v7607_v9  ;;  %10595 = vst [vmem:[#allocation67_spill] sm:$0xff] %v7640_v3  ;;  %10596 = vst [vmem:[#allocation68_spill] sm:$0xff] %v7645_v19  ;;  %v7652_v20 = vld [vmem:[%s10355_s11 + $0x210] sm:$0xff]  ;;  %v7657_v9 = vld [vmem:[%s10355_s11 + $0x320] sm:$0xff] }
  0xe2   :  { %6037 = vmatprep.subr.mxu0 %v7614_v14  ;;  %6068 = vmatprep.subr.mxu1 %v7619_v16  ;;  %10597 = vst [vmem:[#allocation69_spill] sm:$0xff] %v7652_v20  ;;  %10598 = vst [vmem:[#allocation70_spill] sm:$0xff] %v7657_v9  ;;  %v7664_v14 = vld [vmem:[%s10355_s11 + $0x288] sm:$0xff]  ;;  %v7669_v16 = vld [vmem:[%s10355_s11 + $0x398] sm:$0xff] }
  0xe3   :  { %6038 = vmatpush3.msra.mxu0 %v7626_v22  ;;  %6069 = vmatpush3.msra.mxu1 %v7631_v11  ;;  %10599 = vst [vmem:[#allocation71_spill] sm:$0xff] %v7664_v14  ;;  %10600 = vst [vmem:[#allocation72_spill] sm:$0xff] %v7669_v16  ;;  %v7676_v22 = vld [vmem:[%s10355_s11 + $0x208] sm:$0xff]  ;;  %v7681_v11 = vld [vmem:[%s10355_s11 + $0x318] sm:$0xff] }
  0xe4   :  { %6039 = vmatprep.subr.mxu0 %v7640_v3  ;;  %6070 = vmatprep.subr.mxu1 %v7645_v19  ;;  %10601 = vst [vmem:[#allocation73_spill] sm:$0xff] %v7681_v11  ;;  %v7690_v19 = vld [vmem:[%s10355_s11 + $0x280] sm:$0xff]  ;;  %v7695_v3 = vld [vmem:[%s10355_s11 + $0x390] sm:$0xff] }
  0xe5   :  { %6040 = vmatpush3.msra.mxu0 %v7652_v20  ;;  %6071 = vmatpush3.msra.mxu1 %v7657_v9  ;;  %10602 = vst [vmem:[#allocation74_spill] sm:$0xff] %v7690_v19  ;;  %10603 = vst [vmem:[#allocation75_spill] sm:$0xff] %v7695_v3  ;;  %v7702_v20 = vld [vmem:[%s10355_s11 + $0x200] sm:$0xff]  ;;  %v7709_v9 = vld [vmem:[%s10355_s11 + $0x310] sm:$0xff] }
  0xe6   :  { %6041 = vmatprep.subr.mxu0 %v7664_v14  ;;  %6072 = vmatprep.subr.mxu1 %v7669_v16  ;;  %10604 = vst [vmem:[#allocation76_spill] sm:$0xff] %v7702_v20  ;;  %10605 = vst [vmem:[#allocation77_spill] sm:$0xff] %v7709_v9  ;;  %v7713_v14 = vpop.f32.mrf.mxu1  ;;  %v7718_v16 = vld [vmem:[%s10355_s11 + $0x388] sm:$0xff] }
  0xe7   :  { %6042 = vmatpush3.msra.mxu0 %v7676_v22  ;;  %6073 = vmatpush3.msra.mxu1 %v7681_v11  ;;  %v7725_v11 = vld [vmem:[%s10355_s11 + $0x308] sm:$0xff] }
  0xe8   :  { %6043 = vmatprep.subr.mxu0 %v7690_v19  ;;  %6074 = vmatprep.subr.mxu1 %v7695_v3  ;;  %v7732_v3 = vld [vmem:[%s10355_s11 + $0x380] sm:$0xff]  ;;  %v803_v19 = vmul.f32 %v7353_v18, %v7353_v18 }
  0xe9   :  { %6044 = vmatpush3.msra.mxu0 %v7702_v20  ;;  %726 = vmatprep.mubr.f32.mxu0 %v7683_v7  ;;  %v7741_v20 = vld [vmem:[%s10355_s11 + $0x300] sm:$0xff] }
  0xea   :  { %6075 = vmatpush3.msra.mxu1 %v7709_v9  ;;  %727 = vmatmul.mubr.f32.vlgmr.msra.gmra.mxu0 %v7633_v8  ;;  %v7745_v9 = vpop.f32.mrf.mxu1 }
  0xeb   :  { %6076 = vmatprep.subr.mxu1 %v7718_v16  ;;  %6083 = vmatprep.subr.mxu0 %v6928_v10  ;;  %v805_v10 = vmul.f32 %v7381_v13, %v7381_v13 }
  0xec   :  { %6077 = vmatpush3.msra.mxu1 %v7725_v11  ;;  %6084 = vmatpush3.msra.mxu0 %v6937_v12  ;;  %v10606_v12 = vld [vmem:[#allocation5_spill] sm:$0xff] }
  0xed   :  { %874 = vmatprep.mubr.f32.mxu0 %v803_v19  ;;  %6078 = vmatprep.subr.mxu1 %v7732_v3  ;;  %v10653_v19 = vld [vmem:[#allocation52_spill] sm:$0xff] }
  0xee   :  { %6085 = vmatprep.subr.mxu0 %v6950_v15  ;;  %6079 = vmatpush3.msra.mxu1 %v7741_v20  ;;  %v10607_v15 = vld [vmem:[#allocation6_spill] sm:$0xff] }
  0xef   :  { %796 = vmatprep.mubr.f32.mxu1 %v7745_v9  ;;  %6086 = vmatpush3.msra.mxu0 %v6959_v17  ;;  %v10608_v17 = vld [vmem:[#allocation7_spill] sm:$0xff] }
  0xf0   :  { %797 = vmatmul.mubr.f32.vlgmr.msra.gmra.mxu1 %v7713_v14  ;;  %6087 = vmatprep.subr.mxu0 %v6976_v21  ;;  %v10609_v21 = vld [vmem:[#allocation8_spill] sm:$0xff] }
  0xf1   :  { %6118 = vmatprep.subr.mxu1 %v6991_v24  ;;  %6088 = vmatpush3.msra.mxu0 %v6985_v23  ;;  %v10610_v23 = vld [vmem:[#allocation19_spill] sm:$0xff] }
  0xf2   :  { %6119 = vmatpush3.msra.mxu1 %v6997_v25  ;;  %944 = vmatprep.mubr.f32.mxu1 %v805_v10  ;;  %v802_v24 = vmul.f32 %v10610_v23, %v10610_v23  ;;  %v10611_v25 = vld [vmem:[#allocation9_spill] sm:$0xff] }
  0xf3   :  { %6089 = vmatprep.subr.mxu0 %v7002_v26  ;;  %6120 = vmatprep.subr.mxu1 %v7008_v27  ;;  %v10612_v26 = vld [vmem:[#allocation10_spill] sm:$0xff]  ;;  %v10613_v27 = vld [vmem:[#allocation11_spill] sm:$0xff]  ;;  %v10654_v10 = vld [vmem:[#allocation53_spill] sm:$0xff] }
  0xf4   :  { %6090 = vmatpush3.msra.mxu0 %v7013_v28  ;;  %6121 = vmatpush3.msra.mxu1 %v7020_v29  ;;  %v10614_v28 = vld [vmem:[#allocation12_spill] sm:$0xff]  ;;  %v807_v29 = vmul.f32 %v7683_v7, %v7683_v7 }
  0xf5   :  { %6091 = vmatprep.subr.mxu0 %v7025_v30  ;;  %6122 = vmatprep.subr.mxu1 %v7032_v31  ;;  %v10615_v30 = vld [vmem:[#allocation13_spill] sm:$0xff]  ;;  %v10616_v31 = vld [vmem:[#allocation14_spill] sm:$0xff] }
  0xf6   :  { %6092 = vmatpush3.msra.mxu0 %v7037_v32  ;;  %6123 = vmatpush3.msra.mxu1 %v7044_v33  ;;  %v10617_v32 = vld [vmem:[#allocation15_spill] sm:$0xff]  ;;  %v10618_v33 = vld [vmem:[#allocation20_spill] sm:$0xff] }
  0xf7   :  { %6093 = vmatprep.subr.mxu0 %v7049_v34  ;;  %6124 = vmatprep.subr.mxu1 %v7056_v35  ;;  %v10619_v34 = vld [vmem:[#allocation22_spill] sm:$0xff] }
  0xf8   :  { %6094 = vmatpush3.msra.mxu0 %v7061_v36  ;;  %6125 = vmatpush3.msra.mxu1 %v7068_v37  ;;  %v804_v35 = vmul.f32 %v10619_v34, %v10619_v34  ;;  %v10620_v36 = vld [vmem:[#allocation16_spill] sm:$0xff]  ;;  %v10621_v37 = vld [vmem:[#allocation21_spill] sm:$0xff] }
  0xf9   :  { %6095 = vmatprep.subr.mxu0 %v7073_v38  ;;  %6126 = vmatprep.subr.mxu1 %v7080_v39  ;;  %v10622_v38 = vld [vmem:[#allocation17_spill] sm:$0xff]  ;;  %v10623_v39 = vld [vmem:[#allocation23_spill] sm:$0xff] }
  0xfa   :  { %6096 = vmatpush3.msra.mxu0 %v7085_v40  ;;  %6127 = vmatpush3.msra.mxu1 %v7092_v41  ;;  %v809_v40 = vmul.f32 %v7745_v9, %v7745_v9  ;;  %v10624_v41 = vld [vmem:[#allocation24_spill] sm:$0xff] }
  0xfb   :  { %6097 = vmatprep.subr.mxu0 %v7097_v42  ;;  %6128 = vmatprep.subr.mxu1 %v7104_v43  ;;  %v10625_v42 = vld [vmem:[#allocation18_spill] sm:$0xff]  ;;  %v10626_v43 = vld [vmem:[#allocation25_spill] sm:$0xff] }
  0xfc   :  { %6098 = vmatpush3.msra.mxu0 %v7109_v44  ;;  %6129 = vmatpush3.msra.mxu1 %v7116_v45  ;;  %v10627_v44 = vld [vmem:[#allocation26_spill] sm:$0xff]  ;;  %v10628_v45 = vld [vmem:[#allocation27_spill] sm:$0xff] }
  0xfd   :  { %6099 = vmatprep.subr.mxu0 %v7121_v46  ;;  %6130 = vmatprep.subr.mxu1 %v7128_v47  ;;  %v10629_v46 = vld [vmem:[#allocation28_spill] sm:$0xff]  ;;  %v10630_v47 = vld [vmem:[#allocation29_spill] sm:$0xff] }
  0xfe   :  { %6100 = vmatpush3.msra.mxu0 %v7133_v48  ;;  %6131 = vmatpush3.msra.mxu1 %v7140_v49  ;;  %v10631_v48 = vld [vmem:[#allocation30_spill] sm:$0xff]  ;;  %v10632_v49 = vld [vmem:[#allocation31_spill] sm:$0xff] }
  0xff   :  { %6101 = vmatprep.subr.mxu0 %v7145_v50  ;;  %6132 = vmatprep.subr.mxu1 %v7152_v51  ;;  %v10633_v50 = vld [vmem:[#allocation32_spill] sm:$0xff]  ;;  %v10634_v51 = vld [vmem:[#allocation33_spill] sm:$0xff] }
 0x100   :  { %6102 = vmatpush3.msra.mxu0 %v7157_v52  ;;  %6133 = vmatpush3.msra.mxu1 %v7164_v53  ;;  %v10635_v52 = vld [vmem:[#allocation34_spill] sm:$0xff]  ;;  %v10636_v53 = vld [vmem:[#allocation35_spill] sm:$0xff] }
 0x101   :  { %6103 = vmatprep.subr.mxu0 %v7169_v54  ;;  %6134 = vmatprep.subr.mxu1 %v7176_v55  ;;  %v10637_v54 = vld [vmem:[#allocation36_spill] sm:$0xff]  ;;  %v10638_v55 = vld [vmem:[#allocation37_spill] sm:$0xff] }
 0x102   :  { %6104 = vmatpush3.msra.mxu0 %v7181_v56  ;;  %6135 = vmatpush3.msra.mxu1 %v7188_v57  ;;  %v10639_v56 = vld [vmem:[#allocation38_spill] sm:$0xff]  ;;  %v10640_v57 = vld [vmem:[#allocation39_spill] sm:$0xff] }
 0x103   :  { %6105 = vmatprep.subr.mxu0 %v7193_v58  ;;  %6136 = vmatprep.subr.mxu1 %v7200_v59  ;;  %v10641_v58 = vld [vmem:[#allocation40_spill] sm:$0xff]  ;;  %v10642_v59 = vld [vmem:[#allocation41_spill] sm:$0xff] }
 0x104   :  { %6106 = vmatpush3.msra.mxu0 %v7205_v60  ;;  %6137 = vmatpush3.msra.mxu1 %v7212_v61  ;;  %v10643_v60 = vld [vmem:[#allocation42_spill] sm:$0xff]  ;;  %v10644_v61 = vld [vmem:[#allocation43_spill] sm:$0xff] }
 0x105   :  { %6107 = vmatprep.subr.mxu0 %v7217_v62  ;;  %6138 = vmatprep.subr.mxu1 %v7224_v63  ;;  %v10645_v62 = vld [vmem:[#allocation44_spill] sm:$0xff]  ;;  %v10646_v63 = vld [vmem:[#allocation45_spill] sm:$0xff] }
 0x106   :  { %6108 = vmatpush3.msra.mxu0 %v7229_v0  ;;  %6139 = vmatpush3.msra.mxu1 %v7236_v1  ;;  %v10647_v0 = vld [vmem:[#allocation46_spill] sm:$0xff]  ;;  %v10648_v1 = vld [vmem:[#allocation47_spill] sm:$0xff] }
 0x107   :  { %6109 = vmatprep.subr.mxu0 %v7241_v2  ;;  %6140 = vmatprep.subr.mxu1 %v7248_v4  ;;  %v10649_v2 = vld [vmem:[#allocation48_spill] sm:$0xff]  ;;  %v10650_v4 = vld [vmem:[#allocation49_spill] sm:$0xff] }
 0x108   :  { %6110 = vmatpush3.msra.mxu0 %v7253_v5  ;;  %6141 = vmatpush3.msra.mxu1 %v7260_v6  ;;  %v10651_v5 = vld [vmem:[#allocation50_spill] sm:$0xff]  ;;  %v10652_v6 = vld [vmem:[#allocation51_spill] sm:$0xff] }
 0x109   :  { %6111 = vmatprep.subr.mxu0 %v10606_v12  ;;  %6142 = vmatprep.subr.mxu1 %v10607_v15  ;;  %v10655_v12 = vld [vmem:[#allocation54_spill] sm:$0xff]  ;;  %v10656_v15 = vld [vmem:[#allocation55_spill] sm:$0xff] }
 0x10a   :  { %6112 = vmatpush3.msra.mxu0 %v10608_v17  ;;  %6143 = vmatpush3.msra.mxu1 %v10609_v21  ;;  %v10657_v17 = vld [vmem:[#allocation56_spill] sm:$0xff]  ;;  %v10658_v21 = vld [vmem:[#allocation57_spill] sm:$0xff] }
 0x10b   :  { %6113 = vmatprep.subr.mxu0 %v10611_v25  ;;  %6144 = vmatprep.subr.mxu1 %v10612_v26  ;;  %v10660_v25 = vld [vmem:[#allocation59_spill] sm:$0xff]  ;;  %v10661_v26 = vld [vmem:[#allocation60_spill] sm:$0xff] }
 0x10c   :  { %6114 = vmatpush3.msra.mxu0 %v10613_v27  ;;  %6145 = vmatpush3.msra.mxu1 %v10614_v28  ;;  %v10662_v27 = vld [vmem:[#allocation61_spill] sm:$0xff]  ;;  %v10663_v28 = vld [vmem:[#allocation62_spill] sm:$0xff] }
 0x10d   :  { %875 = vmatmul.mubr.f32.vlgmr.msra.gmra.mxu0 %v802_v24  ;;  %6146 = vmatprep.subr.mxu1 %v10615_v30  ;;  %v10659_v24 = vld [vmem:[#allocation58_spill] sm:$0xff]  ;;  %v10665_v30 = vld [vmem:[#allocation64_spill] sm:$0xff] }
 0x10e   :  { %6153 = vmatprep.subr.mxu0 %v10616_v31  ;;  %6147 = vmatpush3.msra.mxu1 %v10617_v32  ;;  %v10666_v31 = vld [vmem:[#allocation65_spill] sm:$0xff]  ;;  %v10667_v32 = vld [vmem:[#allocation66_spill] sm:$0xff] }
 0x10f   :  { %6154 = vmatpush3.msra.mxu0 %v10618_v33  ;;  %1014 = vmatprep.mubr.f32.mxu0 %v807_v29  ;;  %v10664_v29 = vld [vmem:[#allocation63_spill] sm:$0xff] }
 0x110   :  { %6148 = vmatprep.subr.mxu1 %v10620_v36  ;;  %6155 = vmatprep.subr.mxu0 %v10621_v37  ;;  %v10668_v33 = vld [vmem:[#allocation67_spill] sm:$0xff]  ;;  %v10670_v36 = vld [vmem:[#allocation69_spill] sm:$0xff]  ;;  %v10671_v37 = vld [vmem:[#allocation70_spill] sm:$0xff] }
 0x111   :  { %6149 = vmatpush3.msra.mxu1 %v10622_v38  ;;  %6156 = vmatpush3.msra.mxu0 %v10623_v39  ;;  %v10672_v38 = vld [vmem:[#allocation71_spill] sm:$0xff]  ;;  %v10673_v39 = vld [vmem:[#allocation72_spill] sm:$0xff] }
 0x112   :  { %945 = vmatmul.mubr.f32.vlgmr.msra.gmra.mxu1 %v804_v35  ;;  %6157 = vmatprep.subr.mxu0 %v10624_v41  ;;  %v10669_v35 = vld [vmem:[#allocation68_spill] sm:$0xff]  ;;  %v806_v41 = vmul.f32 %v7633_v8, %v7633_v8 }
 0x113   :  { %6188 = vmatprep.subr.mxu1 %v10625_v42  ;;  %6158 = vmatpush3.msra.mxu0 %v10626_v43  ;;  %v10675_v42 = vld [vmem:[#allocation74_spill] sm:$0xff]  ;;  %v10676_v43 = vld [vmem:[#allocation75_spill] sm:$0xff] }
 0x114   :  { %6189 = vmatpush3.msra.mxu1 %v10627_v44  ;;  %1084 = vmatprep.mubr.f32.mxu1 %v809_v40  ;;  %v10674_v40 = vld [vmem:[#allocation73_spill] sm:$0xff]  ;;  %v10677_v44 = vld [vmem:[#allocation76_spill] sm:$0xff] }
 0x115   :  { %6159 = vmatprep.subr.mxu0 %v10628_v45  ;;  %6190 = vmatprep.subr.mxu1 %v10629_v46  ;;  %v10678_v45 = vld [vmem:[#allocation77_spill] sm:$0xff]  ;;  %v10679_v46 = vmov 0.0  }
 0x116   :  { %6160 = vmatpush3.msra.mxu0 %v10630_v47  ;;  %6191 = vmatpush3.msra.mxu1 %v10631_v48  ;;  %v7896_v47 = vld [vmem:[%s10356_s10 + $0x8] sm:$0xff]  ;;  %v7926_v48 = vld [vmem:[%s10356_s10 + $0x38] sm:$0xff] }
 0x117   :  { %6161 = vmatprep.subr.mxu0 %v10632_v49  ;;  %6192 = vmatprep.subr.mxu1 %v10633_v50  ;;  %v1719_v49 = vlaneseq }
 0x118   :  { %6162 = vmatpush3.msra.mxu0 %v10634_v51  ;;  %6193 = vmatpush3.msra.mxu1 %v10635_v52  ;;  %v5890_v52 = vld [vmem:[%s10357_s7 + $0x50] ss:$8 sm:$0x3] }
 0x119   :  { %6163 = vmatprep.subr.mxu0 %v10636_v53  ;;  %6194 = vmatprep.subr.mxu1 %v10637_v54  ;;  %v1720_v50 = vshrl.u32 %v1719_v49, 7  ;;  %v5881_v53 = vld [vmem:[%s10357_s7 + $0x6] ss:$8 sm:$0x3] }
 0x11a   :  { %6164 = vmatpush3.msra.mxu0 %v10638_v55  ;;  %6195 = vmatpush3.msra.mxu1 %v10639_v56  ;;  %v5884_v49 = vld [vmem:[%s10357_s7 + $0x36] ss:$8 sm:$0x3] }
 0x11b   :  { %6165 = vmatprep.subr.mxu0 %v10640_v57  ;;  %6196 = vmatprep.subr.mxu1 %v10641_v58  ;;  %v7929_v51 = vsub.s32 0, %v1720_v50  ;;  %v7937_v54 = vsub.s32 1, %v1720_v50 }
 0x11c   :  { %6166 = vmatpush3.msra.mxu0 %v10642_v59  ;;  %6197 = vmatpush3.msra.mxu1 %v10643_v60  ;;  %v5878_v59 = vld [vmem:[%s10357_s7 + $0x15] ss:$8 sm:$0x3] }
 0x11d   :  { %6167 = vmatprep.subr.mxu0 %v10644_v61  ;;  %6198 = vmatprep.subr.mxu1 %v10645_v62  ;;  %10680 = vst [vmem:[#allocation5_spill] sm:$0xff] %v7929_v51  ;;  %10681 = vst [vmem:[#allocation6_spill] sm:$0xff] %v7937_v54  ;;  %v2630_v55 = vrot.slane %v5890_v52, %v7929_v51  ;;  %v2377_v56 = vrot.slane %v5881_v53, %v7929_v51  ;;  %v5869_v62 = vld [vmem:[%s10357_s7 + $0x3] ss:$8 sm:$0x3] }
 0x11e   :  { %6168 = vmatpush3.msra.mxu0 %v10646_v63  ;;  %6199 = vmatpush3.msra.mxu1 %v10647_v0  ;;  %v2634_v57 = vrot.slane %v5890_v52, %v7937_v54  ;;  %v2381_v58 = vrot.slane %v5881_v53, %v7937_v54  ;;  %v2290_v60 = vrot.slane %v5878_v59, %v7937_v54  ;;  %v5880_v53 = vld [vmem:[%s10357_s7 + $0x35] ss:$8 sm:$0x3] }
 0x11f   :  { %6169 = vmatprep.subr.mxu0 %v10648_v1  ;;  %6200 = vmatprep.subr.mxu1 %v10649_v2  ;;  %v2286_v61 = vrot.slane %v5878_v59, %v7929_v51  ;;  %v2097_v63 = vrot.slane %v5869_v62, %v7937_v54  ;;  %v2093_v0 = vrot.slane %v5869_v62, %v7929_v51  ;;  %v5865_v1 = vld [vmem:[%s10357_s7 + $0x2] ss:$8 sm:$0x3]  ;;  %v5871_v59 = vld [vmem:[%s10357_s7 + $0x23] ss:$8 sm:$0x3] }
 0x120   :  { %6170 = vmatpush3.msra.mxu0 %v10650_v4  ;;  %6201 = vmatpush3.msra.mxu1 %v10651_v5  ;;  %v1967_v2 = vrot.slane %v5865_v1, %v7937_v54  ;;  %v1963_v4 = vrot.slane %v5865_v1, %v7929_v51  ;;  %v5861_v5 = vld [vmem:[%s10357_s7 + $0x1] ss:$8 sm:$0x3]  ;;  %v2472_v50 = vrot.slane %v5884_v49, %v7937_v54 }
 0x121   :  { %6171 = vmatprep.subr.mxu0 %v10652_v6  ;;  %6202 = vmatprep.subr.mxu1 %v10653_v19  ;;  %v1859_v6 = vrot.slane %v5861_v5, %v7937_v54  ;;  %v1855_v19 = vrot.slane %v5861_v5, %v7929_v51  ;;  %v2468_v52 = vrot.slane %v5884_v49, %v7929_v51 }
 0x122   :  { %6172 = vmatpush3.msra.mxu0 %v10654_v10  ;;  %6203 = vmatpush3.msra.mxu1 %v10655_v12  ;;  %v5866_v10 = vld [vmem:[%s10357_s7 + $0x12] ss:$8 sm:$0x3] }
 0x123   :  { %6173 = vmatprep.subr.mxu0 %v10656_v15  ;;  %6204 = vmatprep.subr.mxu1 %v10657_v17  ;;  %v2004_v12 = vrot.slane %v5866_v10, %v7937_v54  ;;  %v2000_v15 = vrot.slane %v5866_v10, %v7929_v51  ;;  %v1717_v17 = vld [vmem:[%s10357_s7] ss:$8 sm:$0x3] }
 0x124   :  { %6174 = vmatpush3.msra.mxu0 %v10658_v21  ;;  %6205 = vmatpush3.msra.mxu1 %v10659_v24  ;;  %v1726_v21 = vrot.slane %v1717_v17, %v7937_v54  ;;  %v1722_v24 = vrot.slane %v1717_v17, %v7929_v51 }
 0x125   :  { %6175 = vmatprep.subr.mxu0 %v10660_v25  ;;  %6206 = vmatprep.subr.mxu1 %v10661_v26  ;;  %v5862_v25 = vld [vmem:[%s10357_s7 + $0x11] ss:$8 sm:$0x3] }
 0x126   :  { %6176 = vmatpush3.msra.mxu0 %v10662_v27  ;;  %6207 = vmatpush3.msra.mxu1 %v10663_v28  ;;  %v1896_v26 = vrot.slane %v5862_v25, %v7937_v54  ;;  %v1892_v27 = vrot.slane %v5862_v25, %v7929_v51  ;;  %v5858_v28 = vld [vmem:[%s10357_s7 + $0x10] ss:$8 sm:$0x3] }
 0x127   :  { %6177 = vmatprep.subr.mxu0 %v10664_v29  ;;  %6208 = vmatprep.subr.mxu1 %v10665_v30  ;;  %v1765_v29 = vrot.slane %v5858_v28, %v7937_v54  ;;  %v1761_v30 = vrot.slane %v5858_v28, %v7929_v51 }
 0x128   :  { %6178 = vmatpush3.msra.mxu0 %v10666_v31  ;;  %6209 = vmatpush3.msra.mxu1 %v10667_v32  ;;  %v5891_v31 = vld [vmem:[%s10357_s7 + $0x60] ss:$8 sm:$0x3] }
 0x129   :  { %6179 = vmatprep.subr.mxu0 %v10668_v33  ;;  %6210 = vmatprep.subr.mxu1 %v10669_v35  ;;  %v2671_v32 = vrot.slane %v5891_v31, %v7937_v54  ;;  %v2667_v33 = vrot.slane %v5891_v31, %v7929_v51  ;;  %v5887_v35 = vld [vmem:[%s10357_s7 + $0x27] ss:$8 sm:$0x3] }
 0x12a   :  { %6180 = vmatpush3.msra.mxu0 %v10670_v36  ;;  %6211 = vmatpush3.msra.mxu1 %v10671_v37  ;;  %v2543_v36 = vrot.slane %v5887_v35, %v7937_v54  ;;  %v2539_v37 = vrot.slane %v5887_v35, %v7929_v51 }
 0x12b   :  { %6181 = vmatprep.subr.mxu0 %v10672_v38  ;;  %6212 = vmatprep.subr.mxu1 %v10673_v39  ;;  %v5892_v38 = vld [vmem:[%s10357_s7 + $0x70] ss:$8 sm:$0x3] }
 0x12c   :  { %6182 = vmatpush3.msra.mxu0 %v7676_v22  ;;  %6213 = vmatpush3.msra.mxu1 %v10674_v40  ;;  %v808_v22 = vmul.f32 %v7713_v14, %v7713_v14  ;;  %v2708_v39 = vrot.slane %v5892_v38, %v7937_v54  ;;  %v2704_v40 = vrot.slane %v5892_v38, %v7929_v51 }
 0x12d   :  { %6183 = vmatprep.subr.mxu0 %v10675_v42  ;;  %6214 = vmatprep.subr.mxu1 %v10676_v43 }
 0x12e   :  { %6184 = vmatpush3.msra.mxu0 %v10677_v44  ;;  %6215 = vmatpush3.msra.mxu1 %v10678_v45  ;;  %v5888_v44 = vld [vmem:[%s10357_s7 + $0x37] ss:$8 sm:$0x3] }
 0x12f   :  { %1015 = vmatmul.mubr.f32.vlgmr.msra.gmra.mxu0 %v806_v41  ;;  %6216 = vmatprep.subr.mxu1 %v7718_v16  ;;  %v7906_v16 = vld [vmem:[%s10356_s10 + $0x18] sm:$0xff]  ;;  %v5883_v41 = vld [vmem:[%s10357_s7 + $0x26] ss:$8 sm:$0x3]  ;;  %v2580_v45 = vrot.slane %v5888_v44, %v7937_v54 }
 0x130   :  { %6217 = vmatpush3.msra.mxu1 %v7725_v11  ;;  %1170 = vmatprep.mubr.f32.mxu0 %v10679_v46  ;;  %v7901_v11 = vld [vmem:[%s10356_s10] sm:$0xff]  ;;  %v2435_v42 = vrot.slane %v5883_v41, %v7937_v54  ;;  %v2431_v43 = vrot.slane %v5883_v41, %v7929_v51 }
 0x131   :  { %6218 = vmatprep.subr.mxu1 %v7732_v3  ;;  %1136 = vmatprep.subr.mxu0 %v7896_v47  ;;  %v7913_v3 = vld [vmem:[%s10356_s10 + $0x10] sm:$0xff] }
 0x132   :  { %6219 = vmatpush3.msra.mxu1 %v7741_v20  ;;  %1137 = vmatpush1.msra.mxu0 %v7901_v11  ;;  %v7920_v20 = vld [vmem:[%s10356_s10 + $0x28] sm:$0xff] }
 0x133   :  { %1085 = vmatmul.mubr.f32.vlgmr.msra.gmra.mxu1 %v808_v22  ;;  %1207 = vmatprep.subr.mxu1 %v7906_v16  ;;  %v2576_v22 = vrot.slane %v5888_v44, %v7929_v51 }
 0x134   :  { %1241 = vmatprep.mubr.f32.mxu1 %v10679_v46  ;;  %1208 = vmatpush1.msra.mxu1 %v7913_v3 }
 0x135   :  { %1278 = vmatprep.subr.mxu0 %v7920_v20  ;;  %1349 = vmatprep.subr.mxu1 %v7926_v48 }
 0x136   :  { %2635 = vrot.lane.b32.xlu0 %v2630_v55, %s6813_s15  ;;  %2382 = vrot.lane.b32.xlu1 %v2377_v56, %s6814_s16  ;;  %v2344_v55 = vrot.slane %v5880_v53, %v7937_v54  ;;  %v2340_v56 = vrot.slane %v5880_v53, %v7929_v51 }
 0x13a   :  { %2637 = vrot.lane.b32.xlu0 %v2634_v57, %s6813_s15  ;;  %2384 = vrot.lane.b32.xlu1 %v2381_v58, %s6814_s16 }
 0x13e   :  { %2293 = vrot.lane.b32.xlu1 %v2290_v60, %s6813_s15  ;;  %2291 = vrot.lane.b32.xlu0 %v2286_v61, %s6813_s15  ;;  %v2151_v60 = vrot.slane %v5871_v59, %v7937_v54  ;;  %v2147_v61 = vrot.slane %v5871_v59, %v7929_v51  ;;  %v53_v59 = vld [vmem:[%s10356_s10 + $0x30] sm:$0xff] }
 0x142   :  { %2100 = vrot.lane.b32.xlu1 %v2097_v63, %s6814_s16  ;;  %2098 = vrot.lane.b32.xlu0 %v2093_v0, %s6814_s16  ;;  %v5868_v0 = vld [vmem:[%s10357_s7 + $0x32] ss:$8 sm:$0x3] }
 0x143   :  { %v2056_v5 = vrot.slane %v5868_v0, %v7929_v51 }
 0x146   :  { %1970 = vrot.lane.b32.xlu1 %v1967_v2, %s6815_s25  ;;  %1968 = vrot.lane.b32.xlu0 %v1963_v4, %s6815_s25  ;;  %v2060_v4 = vrot.slane %v5868_v0, %v7937_v54 }
 0x14a   :  { %1862 = vrot.lane.b32.xlu1 %v1859_v6, %s6815_s25  ;;  %1860 = vrot.lane.b32.xlu0 %v1855_v19, %s6815_s25  ;;  %v5859_v6 = vld [vmem:[%s10357_s7 + $0x20] ss:$8 sm:$0x3] }
 0x14e   :  { %2007 = vrot.lane.b32.xlu1 %v2004_v12, %s6816_s29  ;;  %2005 = vrot.lane.b32.xlu0 %v2000_v15, %s6816_s29  ;;  %v1803_v12 = vrot.slane %v5859_v6, %v7937_v54  ;;  %v1799_v15 = vrot.slane %v5859_v6, %v7929_v51 }
 0x152   :  { %1729 = vrot.lane.b32.xlu1 %v1726_v21, %s6817_s17  ;;  %1727 = vrot.lane.b32.xlu0 %v1722_v24, %s6817_s17 }
 0x156   :  { %1899 = vrot.lane.b32.xlu1 %v1896_v26, %s6815_s25  ;;  %1897 = vrot.lane.b32.xlu0 %v1892_v27, %s6815_s25 }
 0x15a   :  { %1768 = vrot.lane.b32.xlu1 %v1765_v29, %s6815_s25  ;;  %1766 = vrot.lane.b32.xlu0 %v1761_v30, %s6815_s25 }
 0x15e   :  { %2674 = vrot.lane.b32.xlu1 %v2671_v32, %s6818_s24  ;;  %2672 = vrot.lane.b32.xlu0 %v2667_v33, %s6818_s24 }
 0x162   :  { %2546 = vrot.lane.b32.xlu1 %v2543_v36, %s6818_s24  ;;  %2544 = vrot.lane.b32.xlu0 %v2539_v37, %s6818_s24 }
 0x166   :  { %2711 = vrot.lane.b32.xlu1 %v2708_v39, %s6819_s1  ;;  %2709 = vrot.lane.b32.xlu0 %v2704_v40, %s6819_s1 }
 0x16a   :  { %2438 = vrot.lane.b32.xlu1 %v2435_v42, %s6820_s19  ;;  %2436 = vrot.lane.b32.xlu0 %v2431_v43, %s6820_s19 }
 0x16e   :  { %2583 = vrot.lane.b32.xlu1 %v2580_v45, %s6818_s24  ;;  %2581 = vrot.lane.b32.xlu0 %v2576_v22, %s6818_s24 }
 0x172   :  { %2475 = vrot.lane.b32.xlu1 %v2472_v50, %s6818_s24  ;;  %2473 = vrot.lane.b32.xlu0 %v2468_v52, %s6818_s24 }
 0x176   :  { %2347 = vrot.lane.b32.xlu1 %v2344_v55, %s6813_s15  ;;  %2345 = vrot.lane.b32.xlu0 %v2340_v56, %s6813_s15  ;;  %v1095_v55 = vld [vmem:[%s10358_s5] sm:$0xff] }
 0x17a   :  { %2154 = vrot.lane.b32.xlu1 %v2151_v60, %s6814_s16  ;;  %2152 = vrot.lane.b32.xlu0 %v2147_v61, %s6814_s16  ;;  %v1096_v61 = vld [vmem:[%s10359_s6] sm:$0xff] }
 0x17e   :  { %2063 = vrot.lane.b32.xlu1 %v2060_v4, %s6813_s15  ;;  %2061 = vrot.lane.b32.xlu0 %v2056_v5, %s6813_s15 }
 0x182   :  { %1806 = vrot.lane.b32.xlu1 %v1803_v12, %s6814_s16  ;;  %1804 = vrot.lane.b32.xlu0 %v1799_v15, %s6814_s16 }
 0x18a   :  { %v5975_v57 = vpop.f32.mrf.mxu0 }
 0x18c   :  { %v5976_v62 = vpop.f32.mrf.mxu0 }
 0x18d   :  { %v5977_v25 = vadd.f32 %v5976_v62, %v5975_v57 }
 0x18e   :  { %v6010_v58 = vpop.f32.mrf.mxu1 }
 0x190   :  { %v6011_v63 = vpop.f32.mrf.mxu1 }
 0x191   :  { %v6012_v24 = vadd.f32 %v6011_v63, %v6010_v58  ;;  %v51_v58 = vld [vmem:[%s10356_s10 + $0x20] sm:$0xff] }
 0x193   :  { %v659_v29 = vadd.f32 %v6012_v24, %v5977_v25 }
 0x1aa   :  { %v6045_v1 = vpop.f32.mrf.mxu0 }
 0x1ac   :  { %v6046_v19 = vpop.f32.mrf.mxu0 }
 0x1ad   :  { %v6047_v26 = vadd.f32 %v6046_v19, %v6045_v1 }
 0x1af   :  { %v729_v32 = vadd.f32 %v6047_v26, %v659_v29 }
 0x1b0   :  { %v6080_v2 = vpop.f32.mrf.mxu1 }
 0x1b2   :  { %v6081_v10 = vpop.f32.mrf.mxu1 }
 0x1b3   :  { %v6082_v30 = vadd.f32 %v6081_v10, %v6080_v2 }
 0x1b5   :  { %v799_v36 = vadd.f32 %v6082_v30, %v729_v32 }
 0x1b7   :  { %v1090_v42 = vmul.f32 0.00390625, %v799_v36 }
 0x1b9   :  { %v1092_v22 = vmul.f32 %v1090_v42, %v1090_v42 }
 0x1cd   :  { %v6115_v17 = vpop.f32.mrf.mxu0 }
 0x1cf   :  { %v6116_v27 = vpop.f32.mrf.mxu0 }
 0x1d0   :  { %v6117_v37 = vadd.f32 %v6116_v27, %v6115_v17 }
 0x1d2   :  { %v6150_v21 = vpop.f32.mrf.mxu1 }
 0x1d4   :  { %v6151_v28 = vpop.f32.mrf.mxu1 }
 0x1d5   :  { %v6152_v33 = vadd.f32 %v6151_v28, %v6150_v21 }
 0x1d7   :  { %v947_v40 = vadd.f32 %v6152_v33, %v6117_v37 }
 0x1ef   :  { %v6185_v31 = vpop.f32.mrf.mxu0 }
 0x1f1   :  { %v6186_v35 = vpop.f32.mrf.mxu0 }
 0x1f2   :  { %v6187_v38 = vadd.f32 %v6186_v35, %v6185_v31 }
 0x1f3   :  { %v6220_v39 = vpop.f32.mrf.mxu1 }
 0x1f4   :  { %v1017_v43 = vadd.f32 %v6187_v38, %v947_v40 }
 0x1f5   :  { %v6221_v41 = vpop.f32.mrf.mxu1 }
 0x1f6   :  { %v6222_v44 = vadd.f32 %v6221_v41, %v6220_v39 }
 0x1f8   :  { %v1087_v45 = vadd.f32 %v6222_v44, %v1017_v43 }
 0x1fa   :  { %v1091_v49 = vmul.f32 0.00390625, %v1087_v45 }
 0x1fc   :  { %v1093_v50 = vsub.f32 %v1091_v49, %v1092_v22 }
 0x1fe   :  { %v1094_v52 = vmax.f32 %v1093_v50, 0.0 }
 0x200   :  { %v1097_v53 = vadd.f32 1e-05, %v1094_v52 }
 0x202   :  { %6664 = vrsqrt.f32 %v1097_v53 }
 0x20f   :  { %v6665_v56 = vpop.eup %6664 }
 0x210   :  { %v1099_v57 = vmul.f32 %v6665_v56, %v1095_v55 }
 0x212   :  { %5850 = vmatmul.mubr.msk.f32.vlgmr.msra.gmra.mxu0 %vm1102_vm1, %v1099_v57  ;;  %5851 = vmatmul.mubr.msk.f32.vlgmr.msra.gmra.mxu1 %vm1102_vm1, %v1099_v57  ;;  %v1100_v60 = vmul.f32 %v1099_v57, %v1090_v42 }
 0x213   :  { %1279 = vmatpush1.msra.mxu0 %v51_v58  ;;  %1350 = vmatpush1.msra.mxu1 %v53_v59 }
 0x214   :  { %1312 = vmatprep.mubr.f32.mxu0 %v10679_v46  ;;  %1383 = vmatprep.mubr.f32.mxu1 %v10679_v46  ;;  %v1101_v62 = vsub.f32 %v1096_v61, %v1100_v60 }
 0x215   :  { %1431 = vmatprep.subr.mxu0 %v7896_v47  ;;  %1502 = vmatprep.subr.mxu1 %v7906_v16  ;;  %v8107_v47 = vpop.permute.xlu1 %2382 }
 0x216   :  { %5852 = vmatmul.mubr.msk.f32.vlgmr.msra.gmra.mxu0 %vm1102_vm1, %v1099_v57  ;;  %5853 = vmatmul.mubr.msk.f32.vlgmr.msra.gmra.mxu1 %vm1102_vm1, %v1099_v57 }
 0x217   :  { %1432 = vmatpush1.msra.mxu0 %v7901_v11  ;;  %1503 = vmatpush1.msra.mxu1 %v7913_v3  ;;  %v8109_v11 = vpop.permute.xlu0 %2635 }
 0x218   :  { %1465 = vmatprep.mubr.f32.mxu0 %v10679_v46  ;;  %1536 = vmatprep.mubr.f32.mxu1 %v10679_v46 }
 0x219   :  { %1573 = vmatprep.subr.mxu0 %v7920_v20  ;;  %1644 = vmatprep.subr.mxu1 %v7926_v48  ;;  %v8111_v16 = vpop.permute.xlu1 %2384 }
 0x21a   :  { %5854 = vmatmul.mubr.msk.f32.vlgmr.msra.gmra.mxu0 %vm1102_vm1, %v1101_v62  ;;  %5855 = vmatmul.mubr.msk.f32.vlgmr.msra.gmra.mxu1 %vm1102_vm1, %v1101_v62 }
 0x21b   :  { %1574 = vmatpush1.msra.mxu0 %v51_v58  ;;  %1607 = vmatprep.mubr.f32.mxu0 %v10679_v46  ;;  %v8113_v3 = vpop.permute.xlu0 %2637 }
 0x21c   :  { %1645 = vmatpush1.msra.mxu1 %v53_v59  ;;  %1678 = vmatprep.mubr.f32.mxu1 %v10679_v46 }
 0x21d   :  { %v8115_v20 = vpop.permute.xlu1 %2293 }
 0x21e   :  { %5856 = vmatmul.mubr.msk.f32.vlgmr.msra.gmra.mxu0 %vm1102_vm1, %v1101_v62  ;;  %5857 = vmatmul.mubr.msk.f32.vlgmr.msra.gmra.mxu1 %vm1102_vm1, %v1101_v62  ;;  %v5885_v62 = vld [vmem:[%s10357_s7 + $0x7] ss:$8 sm:$0x3] }
 0x21f   :  { %2876 = vmatprep.mubr.f32.mxu0 %v10679_v46  ;;  %2947 = vmatprep.mubr.f32.mxu1 %v10679_v46  ;;  %v8117_v48 = vpop.permute.xlu0 %2291 }
 0x221   :  { %v8119_v63 = vpop.permute.xlu1 %2100 }
 0x223   :  { %v8121_v0 = vpop.permute.xlu0 %2098 }
 0x225   :  { %v8123_v1 = vpop.permute.xlu1 %1970 }
 0x227   :  { %v8125_v2 = vpop.permute.xlu0 %1968 }
 0x229   :  { %v8127_v4 = vpop.permute.xlu1 %1862 }
 0x22b   :  { %v8129_v5 = vpop.permute.xlu0 %1860 }
 0x22d   :  { %v8131_v6 = vpop.permute.xlu1 %2007 }
 0x22f   :  { %v8133_v19 = vpop.permute.xlu0 %2005 }
 0x231   :  { %v8135_v10 = vpop.permute.xlu1 %1729 }
 0x233   :  { %v8137_v17 = vpop.permute.xlu0 %1727 }
 0x235   :  { %v8141_v27 = vpop.permute.xlu1 %1899 }
 0x237   :  { %v8143_v30 = vpop.permute.xlu0 %1897 }
 0x239   :  { %v8147_v40 = vpop.permute.xlu1 %1768 }
 0x2d2   :  { %v1172_v12 = vpop.f32.mrf.mxu0  ;;  %v1243_v15 = vpop.f32.mrf.mxu1 }
 0x2d3   :  { %v1390_v31 = vmul.f32 %v1172_v12, %v10610_v23  ;;  %v1392_v32 = vmul.f32 %v1243_v15, %v10619_v34  ;;  %v8151_v23 = vpop.permute.xlu0 %1766  ;;  %v8168_v12 = vpop.permute.xlu1 %2674 }
 0x2d4   :  { %v1174_v21 = vpop.f32.mrf.mxu0  ;;  %v8139_v24 = vpop.f32.mrf.mxu1 }
 0x2d5   :  { %v1391_v60 = vmul.f32 %v1174_v21, %v7353_v18 }
 0x2d6   :  { %v1314_v25 = vpop.f32.mrf.mxu0  ;;  %v1385_v26 = vpop.f32.mrf.mxu1 }
 0x2d7   :  { %v1394_v41 = vmul.f32 %v1314_v25, %v7633_v8  ;;  %v1396_v42 = vmul.f32 %v1385_v26, %v7713_v14  ;;  %v5889_v8 = vld [vmem:[%s10357_s7 + $0x40] ss:$8 sm:$0x3] }
 0x2d8   :  { %v1316_v28 = vpop.f32.mrf.mxu0  ;;  %v1387_v29 = vpop.f32.mrf.mxu1 }
 0x2d9   :  { %v1395_v50 = vmul.f32 %v1316_v28, %v7683_v7  ;;  %v1397_v52 = vmul.f32 %v1387_v29, %v7745_v9  ;;  %v2613_v7 = vrot.slane %v5889_v8, %v7929_v51  ;;  %v2617_v9 = vrot.slane %v5889_v8, %v7937_v54  ;;  %v8176_v28 = vpop.permute.xlu0 %2672 }
 0x2da   :  { %v1467_v33 = vpop.f32.mrf.mxu0  ;;  %v1538_v35 = vpop.f32.mrf.mxu1 }
 0x2db   :  { %v1685_v36 = vadd.f32 %v1467_v33, %v1390_v31  ;;  %v1687_v37 = vadd.f32 %v1538_v35, %v1392_v32  ;;  %v2509_v32 = vrot.slane %v5885_v62, %v7937_v54 }
 0x2dc   :  { %v1469_v38 = vpop.f32.mrf.mxu0  ;;  %v1540_v39 = vpop.f32.mrf.mxu1 }
 0x2dd   :  { %v1701_v43 = vmul.f32 0.01, %v1685_v36  ;;  %vm1693_vm2 = vcmp.ge.f32.partialorder %v1685_v36, 0.0  ;;  %v1703_v44 = vmul.f32 0.01, %v1687_v37  ;;  %vm1695_vm3 = vcmp.ge.f32.partialorder %v1687_v37, 0.0 }
 0x2de   :  { %v1609_v45 = vpop.f32.mrf.mxu0  ;;  %v1680_v22 = vpop.f32.mrf.mxu1  ;;  %v1686_v29 = vadd.f32 %v1469_v38, %v1391_v60  ;;  %v1393_v38 = vmul.f32 %v8139_v24, %v7381_v13 }
 0x2df   :  { %v1689_v34 = vadd.f32 %v1609_v45, %v1394_v41  ;;  %v1691_v49 = vadd.f32 %v1680_v22, %v1396_v42  ;;  %v8158_v14 = vsel %vm1693_vm2, %v1685_v36, %v1701_v43  ;;  %v8160_v57 = vsel %vm1695_vm3, %v1687_v37, %v1703_v44  ;;  %v2547_v45 = vpop.permute.xlu1 %2546  ;;  %v2545_v24 = vpop.permute.xlu0 %2544 }
 0x2e0   :  { %v1611_v53 = vpop.f32.mrf.mxu0  ;;  %v1682_v55 = vpop.f32.mrf.mxu1  ;;  %v2301_v18 = vmul.f32 %v8115_v20, %v8160_v57  ;;  %v2299_v21 = vmul.f32 %v8117_v48, %v8158_v14  ;;  %v2505_v36 = vrot.slane %v5885_v62, %v7929_v51  ;;  %v2102_v37 = vsel %vm1808_vm8, %v8121_v0, %v8119_v63 }
 0x2e1   :  { %v1707_v56 = vmul.f32 0.01, %v1691_v49  ;;  %vm1699_vm4 = vcmp.ge.f32.partialorder %v1691_v49, 0.0  ;;  %v1690_v58 = vadd.f32 %v1611_v53, %v1395_v50  ;;  %v1692_v59 = vadd.f32 %v1682_v55, %v1397_v52 }
 0x2e2   :  { %v1705_v61 = vmul.f32 0.01, %v1689_v34  ;;  %vm1697_vm7 = vcmp.ge.f32.partialorder %v1689_v34, 0.0  ;;  %2309 = vrot.lane.b32.xlu1 %v2301_v18, %s6814_s16  ;;  %2305 = vrot.lane.b32.xlu0 %v2299_v21, %s6814_s16  ;;  %v2107_v43 = vmul.f32 %v2102_v37, %v8160_v57  ;;  %v2680_v44 = vmul.f32 %v8176_v28, %v8160_v57 }
 0x2e3   :  { %vm1698_vm5 = vcmp.ge.f32.partialorder %v1690_v58, 0.0  ;;  %v1706_v15 = vmul.f32 0.01, %v1690_v58  ;;  %vm1700_vm6 = vcmp.ge.f32.partialorder %v1692_v59, 0.0  ;;  %v1708_v25 = vmul.f32 0.01, %v1692_v59  ;;  %v2712_v55 = vpop.permute.xlu1 %2711 }
 0x2e4   :  { %v8170_v26 = vsel %vm1699_vm4, %v1691_v49, %v1707_v56  ;;  %v8193_v41 = vsel %vm1697_vm7, %v1689_v34, %v1705_v61  ;;  %v1702_v22 = vmul.f32 0.01, %v1686_v29  ;;  %v1688_v49 = vadd.f32 %v1540_v39, %v1393_v38 }
 0x2e5   :  { %v8178_v31 = vsel %vm1700_vm6, %v1692_v59, %v1708_v25  ;;  %v8181_v33 = vsel %vm1698_vm5, %v1690_v58, %v1706_v15  ;;  %v2620_v42 = vmul.f32 %v2613_v7, %v8170_v26  ;;  %vm1694_vm9 = vcmp.ge.f32.partialorder %v1686_v29, 0.0  ;;  %v2710_v59 = vpop.permute.xlu0 %2709 }
 0x2e6   :  { %v2621_v35 = vmul.f32 %v2617_v9, %v8178_v31  ;;  %v2513_v50 = vmul.f32 %v2509_v32, %v8181_v33  ;;  %2114 = vrot.lane.b32.xlu1 %v2107_v43, %s6813_s15  ;;  %2686 = vrot.lane.b32.xlu0 %v2680_v44, %s6815_s25  ;;  %v2512_v13 = vmul.f32 %v2505_v36, %v8193_v41  ;;  %v1704_v39 = vmul.f32 0.01, %v1688_v49 }
 0x2e7   :  { %v2552_v34 = vmul.f32 %v2545_v24, %v8158_v14  ;;  %v2554_v52 = vmul.f32 %v2547_v45, %v8160_v57  ;;  %v8205_v53 = vsel %vm1694_vm9, %v1686_v29, %v1702_v22  ;;  %vm1696_vm10 = vcmp.ge.f32.partialorder %v1688_v49, 0.0 }
 0x2e8   :  { %2826 = vmatprep.subr.mxu0 %v2621_v35  ;;  %v2719_v8 = vmul.f32 %v2712_v55, %v8160_v57  ;;  %v2106_v56 = vmul.f32 %v8121_v0, %v8205_v53  ;;  %v8212_v58 = vsel %vm1696_vm10, %v1688_v49, %v1704_v39  ;;  %v2717_v60 = vmul.f32 %v2710_v59, %v8158_v14 }
 0x2e9   :  { %2827 = vmatpush1.msra.mxu0 %v2620_v42  ;;  %v1868_v61 = vmul.f32 %v8129_v5, %v8212_v58  ;;  %v2295_v0 = vsel %vm1825_vm11, %v8117_v48, %v8115_v20  ;;  %v1775_v9 = vmul.f32 %v8151_v23, %v8212_v58  ;;  %v2548_v62 = vsel %vm1102_vm1, %v2545_v24, %v2547_v45  ;;  %v2439_v20 = vpop.permute.xlu1 %2438  ;;  %v8234_v48 = vpop.permute.xlu0 %2436 }
 0x2ea   :  { %2828 = vmatprep.subr.mxu0 %v2513_v50  ;;  %2558 = vrot.lane.b32.xlu1 %v2552_v34, %s6815_s25  ;;  %v2300_v7 = vmul.f32 %v2295_v0, %v8205_v53  ;;  %v2108_v15 = vmul.f32 %v8119_v63, %v8212_v58  ;;  %v2553_v25 = vmul.f32 %v2548_v62, %v8205_v53  ;;  %vm1731_vm2 = vcmask 973824  }
 0x2eb   :  { %2829 = vmatpush1.msra.mxu0 %v2512_v13  ;;  %2562 = vrot.lane.b32.xlu0 %v2554_v52, %s6815_s25  ;;  %v2713_v18 = vsel %vm1748_vm12, %v2710_v59, %v2712_v55  ;;  %v2014_v21 = vmul.f32 %v8133_v19, %v8212_v58  ;;  %v2676_v63 = vsel %vm1102_vm1, %v8176_v28, %v8168_v12  ;;  %vm2808_vm3 = vcmask 588800  }
 0x2ec   :  { %v2718_v29 = vmul.f32 %v2713_v18, %v8205_v53  ;;  %v2440_v32 = vsel %vm2026_vm13, %v8234_v48, %v2439_v20  ;;  %v2681_v37 = vmul.f32 %v2676_v63, %v8212_v58  ;;  %v2643_v43 = vmul.f32 %v8109_v11, %v8193_v41 }
 0x2ed   :  { %v2584_v35 = vpop.permute.xlu1 %2583  ;;  %v8248_v36 = vpop.permute.xlu0 %2581  ;;  %v2445_v38 = vmul.f32 %v2440_v32, %v8212_v58  ;;  %v1972_v44 = vsel %vm1770_vm14, %v8125_v2, %v8123_v1  ;;  %v2645_v45 = vmul.f32 %v8113_v3, %v8170_v26  ;;  %v2386_v49 = vsel %vm1808_vm8, %v8107_v47, %v8111_v16 }
 0x2ee   :  { %2112 = vrot.lane.b32.xlu1 %v2106_v56, %s6813_s15  ;;  %v2585_v42 = vsel %vm1102_vm1, %v8248_v36, %v2584_v35  ;;  %v1977_v22 = vmul.f32 %v1972_v44, %v8170_v26  ;;  %v2391_v50 = vmul.f32 %v2386_v49, %v8170_v26  ;;  %v2446_v13 = vmul.f32 %v2439_v20, %v8193_v41 }
 0x2ef   :  { %2727 = vrot.lane.b32.xlu0 %v2719_v8, %s6817_s17  ;;  %v2590_v28 = vmul.f32 %v2585_v42, %v8212_v58  ;;  %v1864_v24 = vsel %vm1770_vm14, %v8129_v5, %v8127_v4  ;;  %v2591_v34 = vmul.f32 %v2584_v35, %v8193_v41  ;;  %v2639_v39 = vsel %vm1825_vm11, %v8109_v11, %v8113_v3 }
 0x2f0   :  { %v1869_v52 = vmul.f32 %v1864_v24, %v8193_v41  ;;  %v2010_v55 = vsel %vm2009_vm15, %v8133_v19, %v8131_v6  ;;  %v2644_v8 = vmul.f32 %v2639_v39, %v8181_v33  ;;  %v1732_v56 = vsel %vm1731_vm2, %v8137_v17, %v8135_v10 }
 0x2f1   :  { %v2015_v5 = vmul.f32 %v2010_v55, %v8193_v41  ;;  %v1737_v59 = vmul.f32 %v1732_v56, %v8170_v26  ;;  %v2392_v11 = vmul.f32 %v8111_v16, %v8178_v31  ;;  %v1901_v3 = vsel %vm1770_vm14, %v8143_v30, %v8141_v27  ;;  %v2474_v62 = vpop.permute.xlu0 %2473 }
 0x2f2   :  { %1874 = vrot.lane.b32.xlu1 %v1868_v61, %s6818_s24  ;;  %v1906_v19 = vmul.f32 %v1901_v3, %v8170_v26  ;;  %v1771_v16 = vsel %vm1770_vm14, %v8151_v23, %v8147_v40  ;;  %v1870_v0 = vmul.f32 %v8127_v4, %v8181_v33  ;;  %v2390_v23 = vmul.f32 %v8107_v47, %v8181_v33 }
 0x2f3   :  { %2723 = vrot.lane.b32.xlu0 %v2717_v60, %s6817_s17  ;;  %v1976_v60 = vmul.f32 %v8125_v2, %v8181_v33  ;;  %v1776_v61 = vmul.f32 %v1771_v16, %v8193_v41  ;;  %v2682_v2 = vmul.f32 %v8168_v12, %v8193_v41  ;;  %v1738_v4 = vmul.f32 %v8135_v10, %v8178_v31 }
 0x2f4   :  { %v1978_v12 = vmul.f32 %v8123_v1, %v8178_v31  ;;  %v2444_v47 = vmul.f32 %v8234_v48, %v8160_v57  ;;  %v1905_v10 = vmul.f32 %v8143_v30, %v8181_v33  ;;  %v2589_v30 = vmul.f32 %v8248_v36, %v8160_v57 }
 0x2f6   :  { %1781 = vrot.lane.b32.xlu1 %v1775_v9, %s6818_s24  ;;  %v2476_v9 = vpop.permute.xlu1 %2475 }
 0x2f7   :  { %2307 = vrot.lane.b32.xlu0 %v2300_v7, %s6814_s16  ;;  %v2016_v7 = vmul.f32 %v8131_v6, %v8181_v33  ;;  %v1907_v6 = vmul.f32 %v8141_v27, %v8178_v31  ;;  %v1777_v27 = vmul.f32 %v8147_v40, %v8181_v33  ;;  %v2477_v18 = vsel %vm1102_vm1, %v2474_v62, %v2476_v9 }
 0x2f8   :  { %v2482_v20 = vmul.f32 %v2477_v18, %v8205_v53  ;;  %v2483_v40 = vmul.f32 %v2476_v9, %v8160_v57  ;;  %v5886_v18 = vld [vmem:[%s10357_s7 + $0x17] ss:$8 sm:$0x3] }
 0x2fa   :  { %2560 = vrot.lane.b32.xlu1 %v2553_v25, %s6815_s25  ;;  %v2348_v1 = vpop.permute.xlu1 %2347  ;;  %v1736_v25 = vmul.f32 %v8137_v17, %v8181_v33  ;;  %v2481_v17 = vmul.f32 %v2474_v62, %v8158_v14 }
 0x2fb   :  { %2116 = vrot.lane.b32.xlu0 %v2108_v15, %s6813_s15  ;;  %v2346_v15 = vpop.permute.xlu0 %2345  ;;  %v2355_v35 = vmul.f32 %v2348_v1, %v8170_v26 }
 0x2fc   :  { %v2353_v32 = vmul.f32 %v2346_v15, %v8193_v41 }
 0x2fe   :  { %2725 = vrot.lane.b32.xlu1 %v2718_v29, %s6817_s17  ;;  %v2155_v48 = vpop.permute.xlu1 %2154 }
 0x2ff   :  { %2020 = vrot.lane.b32.xlu0 %v2014_v21, %s6820_s19  ;;  %v2153_v21 = vpop.permute.xlu0 %2152  ;;  %v2162_v49 = vmul.f32 %v2155_v48, %v8178_v31 }
 0x300   :  { %v2156_v36 = vsel %vm1808_vm8, %v2153_v21, %v2155_v48  ;;  %v2522_v48 = vrot.slane %v5886_v18, %v7929_v51 }
 0x301   :  { %v2161_v42 = vmul.f32 %v2156_v36, %v8170_v26  ;;  %v5874_v36 = vld [vmem:[%s10357_s7 + $0x14] ss:$8 sm:$0x3] }
 0x302   :  { %2452 = vrot.lane.b32.xlu1 %v2445_v38, %s6816_s29  ;;  %v2064_v29 = vpop.permute.xlu1 %2063 }
 0x303   :  { %2688 = vrot.lane.b32.xlu0 %v2681_v37, %s6815_s25  ;;  %v2062_v63 = vpop.permute.xlu0 %2061  ;;  %v2071_v44 = vmul.f32 %v2064_v29, %v8160_v57 }
 0x304   :  { %v2065_v37 = vsel %vm1825_vm11, %v2062_v63, %v2064_v29  ;;  %v2069_v24 = vmul.f32 %v2062_v63, %v8158_v14 }
 0x305   :  { %v2070_v38 = vmul.f32 %v2065_v37, %v8205_v53  ;;  %v2529_v37 = vmul.f32 %v2522_v48, %v8170_v26  ;;  %v5877_v48 = vld [vmem:[%s10357_s7 + $0x5] ss:$8 sm:$0x3] }
 0x306   :  { %2597 = vrot.lane.b32.xlu1 %v2590_v28, %s6815_s25  ;;  %v2349_v28 = vsel %vm1825_vm11, %v2346_v15, %v2348_v1 }
 0x307   :  { %2649 = vrot.lane.b32.xlu0 %v2643_v43, %s6814_s16  ;;  %v2354_v43 = vmul.f32 %v2349_v28, %v8181_v33 }
 0x30a   :  { %2653 = vrot.lane.b32.xlu1 %v2645_v45, %s6814_s16  ;;  %v1807_v45 = vpop.permute.xlu1 %1806 }
 0x30b   :  { %1984 = vrot.lane.b32.xlu0 %v1977_v22, %s6818_s24  ;;  %v1805_v22 = vpop.permute.xlu0 %1804 }
 0x30c   :  { %v1813_v39 = vmul.f32 %v1805_v22, %v8205_v53 }
 0x30e   :  { %2398 = vrot.lane.b32.xlu1 %v2391_v50, %s6813_s15  ;;  %v2160_v50 = vmul.f32 %v2153_v21, %v8181_v33 }
 0x30f   :  { %2454 = vrot.lane.b32.xlu0 %v2446_v13, %s6816_s29  ;;  %v1809_v13 = vsel %vm1808_vm8, %v1805_v22, %v1807_v45 }
 0x312   :  { %1876 = vrot.lane.b32.xlu1 %v1869_v52, %s6818_s24  ;;  %v1815_v52 = vmul.f32 %v1807_v45, %v8212_v58 }
 0x313   :  { %2599 = vrot.lane.b32.xlu0 %v2591_v34, %s6815_s25  ;;  %v1814_v34 = vmul.f32 %v1809_v13, %v8160_v57 }
 0x316   :  { %2022 = vrot.lane.b32.xlu1 %v2015_v5, %s6820_s19 }
 0x317   :  { %2651 = vrot.lane.b32.xlu0 %v2644_v8, %s6814_s16 }
 0x31a   :  { %1744 = vrot.lane.b32.xlu1 %v1737_v59, %s6819_s1 }
 0x31b   :  { %2400 = vrot.lane.b32.xlu0 %v2392_v11, %s6813_s15 }
 0x31e   :  { %1913 = vrot.lane.b32.xlu1 %v1906_v19, %s6818_s24 }
 0x31f   :  { %1982 = vrot.lane.b32.xlu0 %v1976_v60, %s6818_s24 }
 0x322   :  { %1783 = vrot.lane.b32.xlu1 %v1776_v61, %s6818_s24 }
 0x323   :  { %1878 = vrot.lane.b32.xlu0 %v1870_v0, %s6818_s24 }
 0x326   :  { %2690 = vrot.lane.b32.xlu1 %v2682_v2, %s6815_s25 }
 0x327   :  { %2024 = vrot.lane.b32.xlu0 %v2016_v7, %s6820_s19 }
 0x32a   :  { %2396 = vrot.lane.b32.xlu1 %v2390_v23, %s6813_s15 }
 0x32b   :  { %1746 = vrot.lane.b32.xlu0 %v1738_v4, %s6819_s1 }
 0x32e   :  { %1986 = vrot.lane.b32.xlu1 %v1978_v12, %s6818_s24 }
 0x32f   :  { %1915 = vrot.lane.b32.xlu0 %v1907_v6, %s6818_s24 }
 0x332   :  { %2450 = vrot.lane.b32.xlu1 %v2444_v47, %s6816_s29 }
 0x333   :  { %1911 = vrot.lane.b32.xlu0 %v1905_v10, %s6818_s24 }
 0x336   :  { %1742 = vrot.lane.b32.xlu1 %v1736_v25, %s6819_s1 }
 0x337   :  { %1785 = vrot.lane.b32.xlu0 %v1777_v27, %s6818_s24 }
 0x33a   :  { %2489 = vrot.lane.b32.xlu1 %v2482_v20, %s6815_s25  ;;  %v5882_v20 = vld [vmem:[%s10357_s7 + $0x16] ss:$8 sm:$0x3] }
 0x33b   :  { %2595 = vrot.lane.b32.xlu0 %v2589_v30, %s6815_s25  ;;  %v2526_v30 = vrot.slane %v5886_v18, %v7937_v54 }
 0x33e   :  { %2487 = vrot.lane.b32.xlu1 %v2481_v17, %s6815_s25  ;;  %v2418_v17 = vrot.slane %v5882_v20, %v7937_v54 }
 0x33f   :  { %2491 = vrot.lane.b32.xlu0 %v2483_v40, %s6815_s25 }
 0x340   :  { %v2422_v28 = vmul.f32 %v2418_v17, %v8181_v33  ;;  %v2273_v17 = vrot.slane %v5877_v48, %v7937_v54 }
 0x342   :  { %2363 = vrot.lane.b32.xlu1 %v2355_v35, %s6814_s16  ;;  %v2530_v35 = vmul.f32 %v2526_v30, %v8178_v31 }
 0x343   :  { %2359 = vrot.lane.b32.xlu0 %v2353_v32, %s6814_s16  ;;  %v2414_v32 = vrot.slane %v5882_v20, %v7929_v51 }
 0x345   :  { %v2421_v22 = vmul.f32 %v2414_v32, %v8193_v41  ;;  %v2269_v32 = vrot.slane %v5877_v48, %v7929_v51 }
 0x346   :  { %2168 = vrot.lane.b32.xlu1 %v2161_v42, %s6813_s15 }
 0x347   :  { %2077 = vrot.lane.b32.xlu0 %v2070_v38, %s6814_s16 }
 0x34a   :  { %2079 = vrot.lane.b32.xlu1 %v2071_v44, %s6814_s16  ;;  %v5870_v44 = vld [vmem:[%s10357_s7 + $0x13] ss:$8 sm:$0x3] }
 0x34b   :  { %2361 = vrot.lane.b32.xlu0 %v2354_v43, %s6814_s16  ;;  %v2222_v43 = vrot.slane %v5874_v36, %v7937_v54 }
 0x34e   :  { %2166 = vrot.lane.b32.xlu1 %v2160_v50, %s6813_s15  ;;  %v2134_v50 = vrot.slane %v5870_v44, %v7937_v54 }
 0x34f   :  { %2170 = vrot.lane.b32.xlu0 %v2162_v49, %s6813_s15  ;;  %v2218_v49 = vrot.slane %v5874_v36, %v7929_v51 }
 0x350   :  { %v2138_v18 = vmul.f32 %v2134_v50, %v8205_v53 }
 0x352   :  { %1821 = vrot.lane.b32.xlu1 %v1814_v34, %s6813_s15 }
 0x353   :  { %2075 = vrot.lane.b32.xlu0 %v2069_v24, %s6814_s16  ;;  %v2130_v24 = vrot.slane %v5870_v44, %v7929_v51  ;;  %v2276_v44 = vmul.f32 %v2269_v32, %v8160_v57 }
 0x354   :  { %v2310_v55 = vpop.permute.xlu1 %2309  ;;  %v2306_v5 = vpop.permute.xlu0 %2305 }
 0x355   :  { %v2137_v30 = vmul.f32 %v2130_v24, %v8158_v14 }
 0x356   :  { %1819 = vrot.lane.b32.xlu1 %v1813_v39, %s6813_s15 }
 0x357   :  { %1823 = vrot.lane.b32.xlu0 %v1815_v52, %s6813_s15 }
 0x358   :  { %v8385_v8 = vpop.permute.xlu1 %2114  ;;  %v8387_v56 = vpop.permute.xlu0 %2686 }
 0x35c   :  { %v8389_v59 = vpop.permute.xlu1 %2558 }
 0x35d   :  { %v8391_v11 = vpop.permute.xlu0 %2562 }
 0x360   :  { %v8395_v19 = vpop.permute.xlu1 %2112 }
 0x361   :  { %v8393_v3 = vpop.permute.xlu0 %2727  ;;  %v2118_v50 = vsel %vm1825_vm11, %v8395_v19, %v8385_v8 }
 0x364   :  { %v8399_v16 = vpop.permute.xlu1 %1874 }
 0x365   :  { %v8397_v60 = vpop.permute.xlu0 %2723 }
 0x368   :  { %v8401_v0 = vpop.permute.xlu1 %1781 }
 0x369   :  { %v2308_v61 = vpop.permute.xlu0 %2307 }
 0x36a   :  { %v2312_v13 = vsel %vm1808_vm8, %v2308_v61, %v2310_v55  ;;  %v2311_v39 = vsel %vm1808_vm8, %v2306_v5, %v2308_v61 }
 0x36c   :  { %v8405_v7 = vpop.permute.xlu1 %2560 }
 0x36d   :  { %v8403_v2 = vpop.permute.xlu0 %2116 }
 0x370   :  { %v8409_v4 = vpop.permute.xlu1 %2725 }
 0x371   :  { %v8407_v23 = vpop.permute.xlu0 %2020 }
 0x374   :  { %v8413_v6 = vpop.permute.xlu1 %2452 }
 0x375   :  { %v8411_v12 = vpop.permute.xlu0 %2688 }
 0x378   :  { %v8415_v9 = vpop.permute.xlu1 %2597 }
 0x379   :  { %v2650_v62 = vpop.permute.xlu0 %2649 }
 0x37c   :  { %v2654_v47 = vpop.permute.xlu1 %2653 }
 0x37d   :  { %v8417_v10 = vpop.permute.xlu0 %1984 }
 0x380   :  { %v8419_v1 = vpop.permute.xlu1 %2398 }
 0x381   :  { %v8421_v15 = vpop.permute.xlu0 %2454 }
 0x384   :  { %v8425_v25 = vpop.permute.xlu1 %1876 }
 0x385   :  { %v8423_v27 = vpop.permute.xlu0 %2599 }
 0x388   :  { %v2023_v21 = vpop.permute.xlu1 %2022 }
 0x389   :  { %v2652_v40 = vpop.permute.xlu0 %2651 }
 0x38a   :  { %v2655_v29 = vsel %vm1808_vm8, %v2650_v62, %v2652_v40  ;;  %v2656_v63 = vsel %vm1808_vm8, %v2652_v40, %v2654_v47  ;;  %v2226_v62 = vmul.f32 %v2222_v43, %v8212_v58  ;;  %v2225_v47 = vmul.f32 %v2218_v49, %v8160_v57 }
 0x38b   :  { %2897 = vmatprep.subr.mxu1 %v2656_v63  ;;  %v2027_v63 = vsel %vm2026_vm13, %v8407_v23, %v2023_v21  ;;  %v2277_v43 = vmul.f32 %v2273_v17, %v8212_v58 }
 0x38c   :  { %2898 = vmatpush1.msra.mxu1 %v2655_v29  ;;  %v8444_v38 = vpop.permute.xlu1 %1744  ;;  %v5873_v29 = vld [vmem:[%s10357_s7 + $0x4] ss:$8 sm:$0x3] }
 0x38d   :  { %2899 = vmatprep.subr.mxu1 %v2530_v35  ;;  %v2401_v42 = vpop.permute.xlu0 %2400  ;;  %v2205_v35 = vrot.slane %v5873_v29, %v7937_v54 }
 0x38e   :  { %2900 = vmatpush1.msra.mxu1 %v2529_v37  ;;  %v2403_v45 = vsel %vm1825_vm11, %v8419_v1, %v2401_v42  ;;  %v2201_v42 = vrot.slane %v5873_v29, %v7929_v51  ;;  %v2602_v29 = vsel %vm1770_vm14, %v8415_v9, %v8423_v27 }
 0x38f   :  { %2830 = vmatprep.subr.mxu0 %v2403_v45  ;;  %2901 = vmatprep.subr.mxu1 %v2422_v28  ;;  %v2209_v23 = vmul.f32 %v2205_v35, %v8205_v53 }
 0x390   :  { %2902 = vmatpush1.msra.mxu1 %v2421_v22  ;;  %v1914_v34 = vpop.permute.xlu1 %1913  ;;  %v2208_v22 = vmul.f32 %v2201_v42, %v8158_v14 }
 0x391   :  { %2903 = vmatprep.subr.mxu1 %v2312_v13  ;;  %v1983_v52 = vpop.permute.xlu0 %1982 }
 0x392   :  { %2904 = vmatpush1.msra.mxu1 %v2311_v39 }
 0x393   :  { %2905 = vmatprep.subr.mxu1 %v2226_v62  ;;  %v1988_v62 = vsel %vm1102_vm1, %v1983_v52, %v8417_v10 }
 0x394   :  { %2906 = vmatpush1.msra.mxu1 %v2225_v47  ;;  %v1784_v20 = vpop.permute.xlu1 %1783 }
 0x395   :  { %2907 = vmatprep.subr.mxu1 %v2138_v18  ;;  %v1879_v55 = vpop.permute.xlu0 %1878  ;;  %v1787_v52 = vsel %vm1102_vm1, %v8401_v0, %v1784_v20 }
 0x396   :  { %2908 = vmatpush1.msra.mxu1 %v2137_v30 }
 0x398   :  { %v2691_v5 = vpop.permute.xlu1 %2690 }
 0x399   :  { %v2025_v61 = vpop.permute.xlu0 %2024 }
 0x39a   :  { %v2028_v40 = vsel %vm2026_vm13, %v2023_v21, %v2025_v61 }
 0x39b   :  { %2909 = vmatprep.subr.mxu1 %v2028_v40 }
 0x39c   :  { %2910 = vmatpush1.msra.mxu1 %v2027_v63  ;;  %v2397_v36 = vpop.permute.xlu1 %2396 }
 0x39d   :  { %v1747_v37 = vpop.permute.xlu0 %1746  ;;  %v2402_v28 = vsel %vm1825_vm11, %v2397_v36, %v8419_v1  ;;  %v2119_v1 = vsel %vm1825_vm11, %v8385_v8, %v8403_v2  ;;  %v1881_v2 = vsel %vm1102_vm1, %v8425_v25, %v1879_v55  ;;  %v1880_v8 = vsel %vm1102_vm1, %v8399_v16, %v8425_v25 }
 0x39e   :  { %2831 = vmatpush1.msra.mxu0 %v2402_v28  ;;  %v1750_v30 = vsel %vm1748_vm12, %v8444_v38, %v1747_v37  ;;  %v2693_v55 = vsel %vm1770_vm14, %v8411_v12, %v2691_v5  ;;  %v5875_v5 = vld [vmem:[%s10357_s7 + $0x24] ss:$8 sm:$0x3] }
 0x39f   :  { %2832 = vmatprep.subr.mxu0 %v2277_v43  ;;  %v2239_v63 = vrot.slane %v5875_v5, %v7937_v54  ;;  %v5876_v43 = vld [vmem:[%s10357_s7 + $0x34] ss:$8 sm:$0x3] }
 0x3a0   :  { %2833 = vmatpush1.msra.mxu0 %v2276_v44  ;;  %v1987_v21 = vpop.permute.xlu1 %1986  ;;  %v2256_v44 = vrot.slane %v5876_v43, %v7937_v54 }
 0x3a1   :  { %v1916_v45 = vpop.permute.xlu0 %1915  ;;  %2834 = vmatprep.subr.mxu0 %v2209_v23  ;;  %v1989_v39 = vsel %vm1102_vm1, %v8417_v10, %v1987_v21  ;;  %v8504_v10 = vld [vmem:[%s10360_s2] sm:$0xff]  ;;  %v5872_v23 = vld [vmem:[%s10357_s7 + $0x33] ss:$8 sm:$0x3]  ;;  %v2252_v21 = vrot.slane %v5876_v43, %v7929_v51 }
 0x3a2   :  { %v1918_v49 = vsel %vm1102_vm1, %v1914_v34, %v1916_v45  ;;  %2835 = vmatpush1.msra.mxu0 %v2208_v22  ;;  %v8707_v43 = vld [vmem:[%s10355_s11 + $0x160] sm:$0xff] }
 0x3a3   :  { %2911 = vmatprep.subr.mxu1 %v1918_v49  ;;  %2836 = vmatprep.subr.mxu0 %v2119_v1  ;;  %v2188_v49 = vrot.slane %v5872_v23, %v7937_v54  ;;  %v5867_v1 = vld [vmem:[%s10357_s7 + $0x22] ss:$8 sm:$0x3] }
 0x3a4   :  { %2837 = vmatpush1.msra.mxu0 %v2118_v50  ;;  %v2451_v13 = vpop.permute.xlu1 %2450 }
 0x3a5   :  { %v1912_v24 = vpop.permute.xlu0 %1911  ;;  %2838 = vmatprep.subr.mxu0 %v1989_v39  ;;  %v5863_v39 = vld [vmem:[%s10357_s7 + $0x21] ss:$8 sm:$0x3] }
 0x3a6   :  { %v1917_v47 = vsel %vm1102_vm1, %v1912_v24, %v1914_v34  ;;  %2839 = vmatpush1.msra.mxu0 %v1988_v62  ;;  %v5879_v34 = vld [vmem:[%s10357_s7 + $0x25] ss:$8 sm:$0x3]  ;;  %v2184_v24 = vrot.slane %v5872_v23, %v7929_v51  ;;  %v2260_v62 = vmul.f32 %v2256_v44, %v8178_v31  ;;  %v8713_v44 = vld [vmem:[%s10355_s11 + $0xd8] sm:$0xff] }
 0x3a7   :  { %2912 = vmatpush1.msra.mxu1 %v1917_v47  ;;  %2840 = vmatprep.subr.mxu0 %v1881_v2  ;;  %v2323_v48 = vrot.slane %v5879_v34, %v7929_v51  ;;  %v2327_v40 = vrot.slane %v5879_v34, %v7937_v54  ;;  %v2043_v47 = vrot.slane %v5867_v1, %v7937_v54  ;;  %v8719_v23 = vld [vmem:[%s10355_s11 + $0x1d8] sm:$0xff] }
 0x3a8   :  { %2841 = vmatpush1.msra.mxu0 %v1880_v8  ;;  %v1743_v18 = vpop.permute.xlu1 %1742  ;;  %v2259_v2 = vmul.f32 %v2252_v21, %v8170_v26  ;;  %v2039_v8 = vrot.slane %v5867_v1, %v7929_v51  ;;  %v2192_v34 = vmul.f32 %v2188_v49, %v8181_v33  ;;  %v8725_v21 = vld [vmem:[%s10355_s11 + $0x58] sm:$0xff]  ;;  %v8743_v49 = vld [vmem:[%s10355_s11 + $0x1d0] sm:$0xff] }
 0x3a9   :  { %v1786_v19 = vpop.permute.xlu0 %1785  ;;  %v1749_v16 = vsel %vm1748_vm12, %v1743_v18, %v8444_v38  ;;  %2842 = vmatprep.subr.mxu0 %v1750_v30  ;;  %v2730_v38 = vsel %vm1731_vm2, %v8409_v4, %v8393_v3  ;;  %v2565_v3 = vsel %vm1770_vm14, %v8405_v7, %v8391_v11  ;;  %v2457_v11 = vsel %vm2009_vm15, %v8413_v6, %v8421_v15  ;;  %v8749_v1 = vld [vmem:[%s10355_s11 + $0x50] sm:$0xff] }
 0x3aa   :  { %v1788_v25 = vsel %vm1102_vm1, %v1784_v20, %v1786_v19  ;;  %2843 = vmatpush1.msra.mxu0 %v1749_v16  ;;  %v2692_v20 = vsel %vm1770_vm14, %v8387_v56, %v8411_v12  ;;  %v2729_v56 = vsel %vm1731_vm2, %v8397_v60, %v8409_v4  ;;  %v2564_v12 = vsel %vm1770_vm14, %v8389_v59, %v8405_v7  ;;  %v5864_v19 = vld [vmem:[%s10357_s7 + $0x31] ss:$8 sm:$0x3] }
 0x3ab   :  { %2913 = vmatprep.subr.mxu1 %v1788_v25  ;;  %5893 = vmatmul.mubr.msk.f32.vlgmr.msra.gmra.mxu0 %vm2808_vm3, %v8504_v10  ;;  %v2235_v60 = vrot.slane %v5875_v5, %v7929_v51  ;;  %v2456_v4 = vsel %vm2009_vm15, %v2451_v13, %v8413_v6  ;;  %v2331_v32 = vmul.f32 %v2327_v40, %v8178_v31 }
 0x3ac   :  { %2914 = vmatpush1.msra.mxu1 %v1787_v52  ;;  %2968 = vmatprep.subr.mxu0 %v2693_v55  ;;  %v2490_v61 = vpop.permute.xlu1 %2489  ;;  %v2330_v27 = vmul.f32 %v2323_v48, %v8170_v26  ;;  %v2243_v15 = vmul.f32 %v2239_v63, %v8181_v33  ;;  %v1929_v16 = vrot.slane %v5863_v39, %v7929_v51  ;;  %v5860_v48 = vld [vmem:[%s10357_s7 + $0x30] ss:$8 sm:$0x3] }
 0x3ad   :  { %5894 = vmatmul.mubr.msk.f32.vlgmr.msra.gmra.mxu1 %vm2808_vm3, %v8504_v10  ;;  %v2596_v0 = vpop.permute.xlu0 %2595  ;;  %3039 = vmatprep.subr.mxu1 %v2730_v38  ;;  %v2242_v6 = vmul.f32 %v2235_v60, %v8193_v41  ;;  %v1933_v31 = vrot.slane %v5863_v39, %v7937_v54  ;;  %v2191_v52 = vmul.f32 %v2184_v24, %v8193_v41  ;;  %v8767_v24 = vld [vmem:[%s10355_s11 + $0x1c8] sm:$0xff] }
 0x3ae   :  { %v2601_v17 = vsel %vm1770_vm14, %v2596_v0, %v8415_v9  ;;  %2969 = vmatpush1.msra.mxu0 %v2692_v20  ;;  %3040 = vmatpush1.msra.mxu1 %v2729_v56  ;;  %v1950_v55 = vrot.slane %v5864_v19, %v7937_v54  ;;  %v2047_v33 = vmul.f32 %v2043_v47, %v8212_v58  ;;  %v8773_v39 = vld [vmem:[%s10355_s11 + $0x48] sm:$0xff]  ;;  %v8785_v47 = vld [vmem:[%s10355_s11 + $0xc0] sm:$0xff] }
 0x3af   :  { %2970 = vmatprep.subr.mxu0 %v2565_v3  ;;  %3041 = vmatprep.subr.mxu1 %v2602_v29  ;;  %v1946_v38 = vrot.slane %v5864_v19, %v7929_v51  ;;  %v2046_v20 = vmul.f32 %v2039_v8, %v8160_v57  ;;  %v1842_v41 = vrot.slane %v5860_v48, %v7937_v54  ;;  %v8797_v8 = vld [vmem:[%s10355_s11 + $0x40] sm:$0xff] }
 0x3b0   :  { %2971 = vmatpush1.msra.mxu0 %v2564_v12  ;;  %3042 = vmatpush1.msra.mxu1 %v2601_v17  ;;  %v2488_v7 = vpop.permute.xlu1 %2487  ;;  %v1937_v5 = vmul.f32 %v1933_v31, %v8205_v53  ;;  %v1838_v17 = vrot.slane %v5860_v48, %v7929_v51  ;;  %v1936_v56 = vmul.f32 %v1929_v16, %v8158_v14  ;;  %v8803_v19 = vld [vmem:[%s10355_s11 + $0x140] sm:$0xff]  ;;  %v8827_v16 = vld [vmem:[%s10355_s11 + $0x138] sm:$0xff]  ;;  %v8833_v31 = vld [vmem:[%s10355_s11 + $0xb0] sm:$0xff] }
 0x3b1   :  { %2972 = vmatprep.subr.mxu0 %v2457_v11  ;;  %v2492_v59 = vpop.permute.xlu0 %2491  ;;  %v2493_v9 = vsel %vm1770_vm14, %v2488_v7, %v2490_v61  ;;  %3089 = vmatprep.mubr.f32.mxu1 %v10679_v46  ;;  %v1954_v12 = vmul.f32 %v1950_v55, %v8212_v58  ;;  %v1953_v29 = vmul.f32 %v1946_v38, %v8160_v57  ;;  %v8617_v57 = vld [vmem:[%s10355_s11 + $0xf8] sm:$0xff]  ;;  %v8857_v55 = vld [vmem:[%s10355_s11 + $0xa8] sm:$0xff]  ;;  %v8983_v54 = vld [vmem:[%s10355_s11 + $0x180] sm:$0xff] }
 0x3b2   :  { %2973 = vmatpush1.msra.mxu0 %v2456_v4  ;;  %v2494_v35 = vsel %vm1770_vm14, %v2490_v61, %v2492_v59  ;;  %3018 = vmatprep.mubr.f32.mxu0 %v10679_v46  ;;  %v1846_v63 = vmul.f32 %v1842_v41, %v8205_v53  ;;  %v1845_v4 = vmul.f32 %v1838_v17, %v8158_v14  ;;  %v8623_v14 = vld [vmem:[%s10355_s11 + $0x1f8] sm:$0xff]  ;;  %v8863_v48 = vld [vmem:[%s10355_s11 + $0x1a8] sm:$0xff]  ;;  %v8893_v41 = vld [vmem:[%s10355_s11 + $0x20] sm:$0xff] }
 0x3b3   :  { %2974 = vmatprep.subr.mxu0 %v2331_v32  ;;  %3043 = vmatprep.subr.mxu1 %v2494_v35  ;;  %v8629_v53 = vld [vmem:[%s10355_s11 + $0x78] sm:$0xff]  ;;  %v8647_v32 = vld [vmem:[%s10355_s11 + $0x1f0] sm:$0xff]  ;;  %v8665_v35 = vld [vmem:[%s10355_s11 + $0xe8] sm:$0xff]  ;;  %10688 = vst [vmem:[#allocation12_spill] sm:$0xff] %v8983_v54 }
 0x3b4   :  { %2975 = vmatpush1.msra.mxu0 %v2330_v27  ;;  %3044 = vmatpush1.msra.mxu1 %v2493_v9  ;;  %v2364_v37 = vpop.permute.xlu1 %2363  ;;  %v8635_v58 = vld [vmem:[%s10355_s11 + $0x178] sm:$0xff]  ;;  %v8653_v9 = vld [vmem:[%s10355_s11 + $0x70] sm:$0xff]  ;;  %v8875_v38 = vld [vmem:[%s10355_s11 + $0x128] sm:$0xff] }
 0x3b5   :  { %2976 = vmatprep.subr.mxu0 %v2243_v15  ;;  %v2360_v36 = vpop.permute.xlu0 %2359  ;;  %v8659_v27 = vld [vmem:[%s10355_s11 + $0x170] sm:$0xff]  ;;  %v8671_v15 = vld [vmem:[%s10355_s11 + $0x1e8] sm:$0xff]  ;;  %v8917_v17 = vld [vmem:[%s10355_s11 + $0x18] sm:$0xff] }
 0x3b6   :  { %2977 = vmatpush1.msra.mxu0 %v2242_v6  ;;  %v8677_v6 = vld [vmem:[%s10355_s11 + $0x68] sm:$0xff]  ;;  %v8989_v51 = vld [vmem:[%s10355_s11] sm:$0xff] }
 0x3b7   :  { %10689 = vst [vmem:[#allocation13_spill] sm:$0xff] %v8989_v51  ;;  %v8995_v46 = vld [vmem:[%s10355_s11 + $0x100] sm:$0xff] }
 0x3b8   :  { %v2169_v28 = vpop.permute.xlu1 %2168  ;;  %10690 = vst [vmem:[#allocation14_spill] sm:$0xff] %v8995_v46 }
 0x3b9   :  { %v2078_v42 = vpop.permute.xlu0 %2077 }
 0x3bc   :  { %v2080_v22 = vpop.permute.xlu1 %2079 }
 0x3bd   :  { %v2362_v45 = vpop.permute.xlu0 %2361  ;;  %v2082_v0 = vsel %vm1808_vm8, %v2078_v42, %v2080_v22  ;;  %v8737_v22 = vld [vmem:[%s10355_s11 + $0xd0] sm:$0xff] }
 0x3be   :  { %v2365_v50 = vsel %vm1808_vm8, %v2360_v36, %v2362_v45  ;;  %v2366_v13 = vsel %vm1808_vm8, %v2362_v45, %v2364_v37  ;;  %v8683_v36 = vld [vmem:[%s10355_s11 + $0x168] sm:$0xff]  ;;  %v8689_v37 = vld [vmem:[%s10355_s11 + $0xe0] sm:$0xff]  ;;  %v8731_v45 = vld [vmem:[%s10355_s11 + $0x158] sm:$0xff] }
 0x3bf   :  { %3045 = vmatprep.subr.mxu1 %v2366_v13  ;;  %v8761_v13 = vld [vmem:[%s10355_s11 + $0xc8] sm:$0xff] }
 0x3c0   :  { %3046 = vmatpush1.msra.mxu1 %v2365_v50  ;;  %v2167_v30 = vpop.permute.xlu1 %2166  ;;  %v8755_v50 = vld [vmem:[%s10355_s11 + $0x150] sm:$0xff] }
 0x3c1   :  { %v2171_v18 = vpop.permute.xlu0 %2170  ;;  %3047 = vmatprep.subr.mxu1 %v2260_v62  ;;  %v2172_v25 = vsel %vm1825_vm11, %v2167_v30, %v2169_v28  ;;  %v8779_v62 = vld [vmem:[%s10355_s11 + $0x148] sm:$0xff]  ;;  %v8815_v30 = vld [vmem:[%s10355_s11 + $0x1b8] sm:$0xff] }
 0x3c2   :  { %3048 = vmatpush1.msra.mxu1 %v2259_v2  ;;  %v2173_v26 = vsel %vm1825_vm11, %v2169_v28, %v2171_v18  ;;  %v8701_v28 = vld [vmem:[%s10355_s11 + $0x60] sm:$0xff]  ;;  %v8809_v18 = vld [vmem:[%s10355_s11 + $0xb8] sm:$0xff] }
 0x3c3   :  { %2978 = vmatprep.subr.mxu0 %v2173_v26  ;;  %3049 = vmatprep.subr.mxu1 %v2192_v34  ;;  %v8791_v2 = vld [vmem:[%s10355_s11 + $0x1c0] sm:$0xff]  ;;  %v8821_v34 = vld [vmem:[%s10355_s11 + $0x38] sm:$0xff]  ;;  %v8845_v26 = vld [vmem:[%s10355_s11 + $0x30] sm:$0xff] }
 0x3c4   :  { %2979 = vmatpush1.msra.mxu0 %v2172_v25  ;;  %3050 = vmatpush1.msra.mxu1 %v2191_v52  ;;  %v1822_v40 = vpop.permute.xlu1 %1821  ;;  %v8839_v25 = vld [vmem:[%s10355_s11 + $0x1b0] sm:$0xff] }
 0x3c5   :  { %v2076_v61 = vpop.permute.xlu0 %2075  ;;  %2980 = vmatprep.subr.mxu0 %v2047_v33  ;;  %3051 = vmatprep.subr.mxu1 %v2082_v0  ;;  %v8851_v52 = vld [vmem:[%s10355_s11 + $0x130] sm:$0xff]  ;;  %v8869_v33 = vld [vmem:[%s10355_s11 + $0x28] sm:$0xff]  ;;  %v8881_v0 = vld [vmem:[%s10355_s11 + $0xa0] sm:$0xff] }
 0x3c6   :  { %v2081_v3 = vsel %vm1808_vm8, %v2076_v61, %v2078_v42  ;;  %2981 = vmatpush1.msra.mxu0 %v2046_v20  ;;  %v8695_v42 = vld [vmem:[%s10355_s11 + $0x1e0] sm:$0xff] }
 0x3c7   :  { %2982 = vmatprep.subr.mxu0 %v1937_v5  ;;  %3052 = vmatpush1.msra.mxu1 %v2081_v3  ;;  %v8887_v20 = vld [vmem:[%s10355_s11 + $0x1a0] sm:$0xff]  ;;  %v8911_v5 = vld [vmem:[%s10355_s11 + $0x198] sm:$0xff] }
 0x3c8   :  { %2983 = vmatpush1.msra.mxu0 %v1936_v56  ;;  %3053 = vmatprep.subr.mxu1 %v1954_v12  ;;  %v1820_v60 = vpop.permute.xlu1 %1819  ;;  %v8899_v61 = vld [vmem:[%s10355_s11 + $0x120] sm:$0xff]  ;;  %v8923_v3 = vld [vmem:[%s10355_s11 + $0x118] sm:$0xff]  ;;  %v8929_v56 = vld [vmem:[%s10355_s11 + $0x90] sm:$0xff] }
 0x3c9   :  { %v1824_v11 = vpop.permute.xlu0 %1823  ;;  %3054 = vmatpush1.msra.mxu1 %v1953_v29  ;;  %v1826_v59 = vsel %vm1825_vm11, %v1820_v60, %v1822_v40  ;;  %v8935_v12 = vld [vmem:[%s10355_s11 + $0x190] sm:$0xff]  ;;  %v8959_v60 = vld [vmem:[%s10355_s11 + $0x188] sm:$0xff] }
 0x3ca   :  { %3055 = vmatprep.subr.mxu1 %v1846_v63  ;;  %v1827_v7 = vsel %vm1825_vm11, %v1822_v40, %v1824_v11  ;;  %v8905_v40 = vld [vmem:[%s10355_s11 + $0x98] sm:$0xff]  ;;  %v8941_v29 = vld [vmem:[%s10355_s11 + $0x10] sm:$0xff]  ;;  %v8953_v11 = vld [vmem:[%s10355_s11 + $0x88] sm:$0xff]  ;;  %10684 = vst [vmem:[#allocation19_spill] sm:$0xff] %v8959_v60 }
 0x3cb   :  { %2984 = vmatprep.subr.mxu0 %v1827_v7  ;;  %3056 = vmatpush1.msra.mxu1 %v1845_v4  ;;  %v8947_v63 = vld [vmem:[%s10355_s11 + $0x110] sm:$0xff]  ;;  %10683 = vst [vmem:[#allocation8_spill] sm:$0xff] %v8953_v11  ;;  %v8965_v4 = vld [vmem:[%s10355_s11 + $0x8] sm:$0xff]  ;;  %v8977_v7 = vld [vmem:[%s10355_s11 + $0x80] sm:$0xff] }
 0x3cc   :  { %2985 = vmatpush1.msra.mxu0 %v1826_v59  ;;  %5896 = vmatmul.mubr.msk.f32.vlgmr.msra.gmra.mxu1 %vm2808_vm3, %v8504_v10  ;;  %10682 = vst [vmem:[#allocation7_spill] sm:$0xff] %v8947_v63  ;;  %10685 = vst [vmem:[#allocation9_spill] sm:$0xff] %v8965_v4  ;;  %v8971_v59 = vld [vmem:[%s10355_s11 + $0x108] sm:$0xff] }
 0x3cd   :  { %5895 = vmatmul.mubr.msk.f32.vlgmr.msra.gmra.mxu0 %vm2808_vm3, %v8504_v10  ;;  %6223 = vmatprep.subr.mxu0 %v8617_v57  ;;  %v8641_v10 = vld [vmem:[%s10355_s11 + $0xf0] sm:$0xff]  ;;  %10686 = vst [vmem:[#allocation10_spill] sm:$0xff] %v8971_v59  ;;  %10687 = vst [vmem:[#allocation11_spill] sm:$0xff] %v8977_v7 }
 0x3ce   :  { %6258 = vmatprep.subr.mxu1 %v8623_v14  ;;  %6224 = vmatpush3.msra.mxu0 %v8629_v53 }
 0x3cf   :  { %6259 = vmatpush3.msra.mxu1 %v8635_v58  ;;  %6225 = vmatprep.subr.mxu0 %v8641_v10 }
 0x3d0   :  { %6260 = vmatprep.subr.mxu1 %v8647_v32  ;;  %6226 = vmatpush3.msra.mxu0 %v8653_v9 }
 0x3d1   :  { %6261 = vmatpush3.msra.mxu1 %v8659_v27  ;;  %6227 = vmatprep.subr.mxu0 %v8665_v35 }
 0x3d2   :  { %6262 = vmatprep.subr.mxu1 %v8671_v15  ;;  %6228 = vmatpush3.msra.mxu0 %v8677_v6 }
 0x3d3   :  { %6263 = vmatpush3.msra.mxu1 %v8683_v36  ;;  %6229 = vmatprep.subr.mxu0 %v8689_v37 }
 0x3d4   :  { %6264 = vmatprep.subr.mxu1 %v8695_v42  ;;  %6230 = vmatpush3.msra.mxu0 %v8701_v28 }
 0x3d5   :  { %6265 = vmatpush3.msra.mxu1 %v8707_v43  ;;  %6231 = vmatprep.subr.mxu0 %v8713_v44 }
 0x3d6   :  { %6266 = vmatprep.subr.mxu1 %v8719_v23  ;;  %6232 = vmatpush3.msra.mxu0 %v8725_v21 }
 0x3d7   :  { %6267 = vmatpush3.msra.mxu1 %v8731_v45  ;;  %6233 = vmatprep.subr.mxu0 %v8737_v22 }
 0x3d8   :  { %6268 = vmatprep.subr.mxu1 %v8743_v49  ;;  %6234 = vmatpush3.msra.mxu0 %v8749_v1 }
 0x3d9   :  { %6269 = vmatpush3.msra.mxu1 %v8755_v50  ;;  %6235 = vmatprep.subr.mxu0 %v8761_v13 }
 0x3da   :  { %6270 = vmatprep.subr.mxu1 %v8767_v24  ;;  %6236 = vmatpush3.msra.mxu0 %v8773_v39 }
 0x3db   :  { %6271 = vmatpush3.msra.mxu1 %v8779_v62  ;;  %6237 = vmatprep.subr.mxu0 %v8785_v47 }
 0x3dc   :  { %6272 = vmatprep.subr.mxu1 %v8791_v2  ;;  %6238 = vmatpush3.msra.mxu0 %v8797_v8 }
 0x3dd   :  { %6273 = vmatpush3.msra.mxu1 %v8803_v19  ;;  %6239 = vmatprep.subr.mxu0 %v8809_v18 }
 0x3de   :  { %6274 = vmatprep.subr.mxu1 %v8815_v30  ;;  %6240 = vmatpush3.msra.mxu0 %v8821_v34 }
 0x3df   :  { %6275 = vmatpush3.msra.mxu1 %v8827_v16  ;;  %6241 = vmatprep.subr.mxu0 %v8833_v31 }
 0x3e0   :  { %6276 = vmatprep.subr.mxu1 %v8839_v25  ;;  %6242 = vmatpush3.msra.mxu0 %v8845_v26 }
 0x3e1   :  { %6277 = vmatpush3.msra.mxu1 %v8851_v52  ;;  %6243 = vmatprep.subr.mxu0 %v8857_v55 }
 0x3e2   :  { %6278 = vmatprep.subr.mxu1 %v8863_v48  ;;  %6244 = vmatpush3.msra.mxu0 %v8869_v33 }
 0x3e3   :  { %6279 = vmatpush3.msra.mxu1 %v8875_v38  ;;  %6245 = vmatprep.subr.mxu0 %v8881_v0 }
 0x3e4   :  { %6280 = vmatprep.subr.mxu1 %v8887_v20  ;;  %6246 = vmatpush3.msra.mxu0 %v8893_v41 }
 0x3e5   :  { %6281 = vmatpush3.msra.mxu1 %v8899_v61  ;;  %6247 = vmatprep.subr.mxu0 %v8905_v40 }
 0x3e6   :  { %6282 = vmatprep.subr.mxu1 %v8911_v5  ;;  %6248 = vmatpush3.msra.mxu0 %v8917_v17 }
 0x3e7   :  { %6283 = vmatpush3.msra.mxu1 %v8923_v3  ;;  %6249 = vmatprep.subr.mxu0 %v8929_v56 }
 0x3e8   :  { %6284 = vmatprep.subr.mxu1 %v8935_v12  ;;  %6250 = vmatpush3.msra.mxu0 %v8941_v29 }
 0x3e9   :  { %6285 = vmatpush3.msra.mxu1 %v8947_v63  ;;  %6251 = vmatprep.subr.mxu0 %v8953_v11 }
 0x3ea   :  { %6286 = vmatprep.subr.mxu1 %v8959_v60  ;;  %6252 = vmatpush3.msra.mxu0 %v8965_v4 }
 0x3eb   :  { %6287 = vmatpush3.msra.mxu1 %v8971_v59  ;;  %6253 = vmatprep.subr.mxu0 %v8977_v7  ;;  %v9001_v7 = vld [vmem:[%s10355_s11 + $0x2f8] sm:$0xff] }
 0x3ec   :  { %6288 = vmatprep.subr.mxu1 %v8983_v54  ;;  %6254 = vmatpush3.msra.mxu0 %v8989_v51  ;;  %10691 = vst [vmem:[#allocation15_spill] sm:$0xff] %v9001_v7  ;;  %v9007_v54 = vld [vmem:[%s10355_s11 + $0x3f8] sm:$0xff] }
 0x3ed   :  { %6289 = vmatpush3.msra.mxu1 %v8995_v46  ;;  %6293 = vmatprep.subr.mxu0 %v9001_v7  ;;  %10692 = vst [vmem:[#allocation20_spill] sm:$0xff] %v9007_v54  ;;  %v9031_v7 = vld [vmem:[%s10355_s11 + $0x378] sm:$0xff] }
 0x3ee   :  { %6328 = vmatprep.subr.mxu1 %v9007_v54  ;;  %v9025_v54 = vld [vmem:[%s10355_s11 + $0x278] sm:$0xff]  ;;  %10696 = vst [vmem:[#allocation17_spill] sm:$0xff] %v9031_v7 }
 0x3ef   :  { %10695 = vst [vmem:[#allocation21_spill] sm:$0xff] %v9025_v54 }
 0x46b   :  { %v9010_v51 = vpop.f32.mrf.mxu0 }
 0x46c   :  { %10693 = vst [vmem:[#allocation22_spill] sm:$0xff] %v9010_v51 }
 0x46d   :  { %v9012_v59 = vpop.f32.mrf.mxu1  ;;  %v9014_v4 = vpop.f32.mrf.mxu0 }
 0x46e   :  { %10694 = vst [vmem:[#allocation16_spill] sm:$0xff] %v9012_v59  ;;  %3160 = vmatprep.mubr.f32.mxu0 %v9014_v4 }
 0x46f   :  { %v9016_v46 = vpop.f32.mrf.mxu1  ;;  %3161 = vmatmul.mubr.f32.vlgmr.msra.gmra.mxu0 %v9010_v51  ;;  %v9037_v51 = vld [vmem:[%s10355_s11 + $0x2f0] sm:$0xff] }
 0x470   :  { %3230 = vmatprep.mubr.f32.mxu1 %v9016_v46  ;;  %6294 = vmatpush3.msra.mxu0 %v9025_v54  ;;  %10697 = vst [vmem:[#allocation23_spill] sm:$0xff] %v9037_v51  ;;  %v9049_v54 = vld [vmem:[%s10355_s11 + $0x270] sm:$0xff] }
 0x471   :  { %3231 = vmatmul.mubr.f32.vlgmr.msra.gmra.mxu1 %v9012_v59  ;;  %6295 = vmatprep.subr.mxu0 %v9037_v51  ;;  %v9043_v59 = vld [vmem:[%s10355_s11 + $0x3f0] sm:$0xff]  ;;  %10699 = vst [vmem:[#allocation18_spill] sm:$0xff] %v9049_v54  ;;  %v9061_v51 = vld [vmem:[%s10355_s11 + $0x2e8] sm:$0xff] }
 0x472   :  { %6329 = vmatpush3.msra.mxu1 %v9031_v7  ;;  %10698 = vst [vmem:[#allocation24_spill] sm:$0xff] %v9043_v59  ;;  %6296 = vmatpush3.msra.mxu0 %v9049_v54  ;;  %v9055_v7 = vld [vmem:[%s10355_s11 + $0x370] sm:$0xff]  ;;  %10701 = vst [vmem:[#allocation26_spill] sm:$0xff] %v9061_v51  ;;  %v9073_v54 = vld [vmem:[%s10355_s11 + $0x268] sm:$0xff] }
 0x473   :  { %6330 = vmatprep.subr.mxu1 %v9043_v59  ;;  %10700 = vst [vmem:[#allocation25_spill] sm:$0xff] %v9055_v7  ;;  %6297 = vmatprep.subr.mxu0 %v9061_v51  ;;  %v9067_v59 = vld [vmem:[%s10355_s11 + $0x3e8] sm:$0xff]  ;;  %10703 = vst [vmem:[#allocation28_spill] sm:$0xff] %v9073_v54  ;;  %v9085_v51 = vld [vmem:[%s10355_s11 + $0x2e0] sm:$0xff] }
 0x474   :  { %6331 = vmatpush3.msra.mxu1 %v9055_v7  ;;  %10702 = vst [vmem:[#allocation27_spill] sm:$0xff] %v9067_v59  ;;  %6298 = vmatpush3.msra.mxu0 %v9073_v54  ;;  %v9079_v7 = vld [vmem:[%s10355_s11 + $0x368] sm:$0xff]  ;;  %10705 = vst [vmem:[#allocation30_spill] sm:$0xff] %v9085_v51  ;;  %v9097_v54 = vld [vmem:[%s10355_s11 + $0x260] sm:$0xff] }
 0x475   :  { %6332 = vmatprep.subr.mxu1 %v9067_v59  ;;  %10704 = vst [vmem:[#allocation29_spill] sm:$0xff] %v9079_v7  ;;  %6299 = vmatprep.subr.mxu0 %v9085_v51  ;;  %v9091_v59 = vld [vmem:[%s10355_s11 + $0x3e0] sm:$0xff]  ;;  %10707 = vst [vmem:[#allocation32_spill] sm:$0xff] %v9097_v54  ;;  %v9109_v51 = vld [vmem:[%s10355_s11 + $0x2d8] sm:$0xff] }
 0x476   :  { %6333 = vmatpush3.msra.mxu1 %v9079_v7  ;;  %10706 = vst [vmem:[#allocation31_spill] sm:$0xff] %v9091_v59  ;;  %6300 = vmatpush3.msra.mxu0 %v9097_v54  ;;  %v9103_v7 = vld [vmem:[%s10355_s11 + $0x360] sm:$0xff]  ;;  %10709 = vst [vmem:[#allocation34_spill] sm:$0xff] %v9109_v51  ;;  %v9121_v54 = vld [vmem:[%s10355_s11 + $0x258] sm:$0xff] }
 0x477   :  { %6334 = vmatprep.subr.mxu1 %v9091_v59  ;;  %10708 = vst [vmem:[#allocation33_spill] sm:$0xff] %v9103_v7  ;;  %6301 = vmatprep.subr.mxu0 %v9109_v51  ;;  %v9115_v59 = vld [vmem:[%s10355_s11 + $0x3d8] sm:$0xff]  ;;  %10711 = vst [vmem:[#allocation36_spill] sm:$0xff] %v9121_v54  ;;  %v9133_v51 = vld [vmem:[%s10355_s11 + $0x2d0] sm:$0xff] }
 0x478   :  { %6335 = vmatpush3.msra.mxu1 %v9103_v7  ;;  %10710 = vst [vmem:[#allocation35_spill] sm:$0xff] %v9115_v59  ;;  %6302 = vmatpush3.msra.mxu0 %v9121_v54  ;;  %v9127_v7 = vld [vmem:[%s10355_s11 + $0x358] sm:$0xff]  ;;  %10713 = vst [vmem:[#allocation38_spill] sm:$0xff] %v9133_v51  ;;  %v9145_v54 = vld [vmem:[%s10355_s11 + $0x250] sm:$0xff] }
 0x479   :  { %6336 = vmatprep.subr.mxu1 %v9115_v59  ;;  %10712 = vst [vmem:[#allocation37_spill] sm:$0xff] %v9127_v7  ;;  %6303 = vmatprep.subr.mxu0 %v9133_v51  ;;  %v9139_v59 = vld [vmem:[%s10355_s11 + $0x3d0] sm:$0xff]  ;;  %10715 = vst [vmem:[#allocation40_spill] sm:$0xff] %v9145_v54  ;;  %v9157_v51 = vld [vmem:[%s10355_s11 + $0x2c8] sm:$0xff] }
 0x47a   :  { %6337 = vmatpush3.msra.mxu1 %v9127_v7  ;;  %10714 = vst [vmem:[#allocation39_spill] sm:$0xff] %v9139_v59  ;;  %6304 = vmatpush3.msra.mxu0 %v9145_v54  ;;  %v9151_v7 = vld [vmem:[%s10355_s11 + $0x350] sm:$0xff]  ;;  %10717 = vst [vmem:[#allocation42_spill] sm:$0xff] %v9157_v51  ;;  %v9169_v54 = vld [vmem:[%s10355_s11 + $0x248] sm:$0xff] }
 0x47b   :  { %6338 = vmatprep.subr.mxu1 %v9139_v59  ;;  %10716 = vst [vmem:[#allocation41_spill] sm:$0xff] %v9151_v7  ;;  %6305 = vmatprep.subr.mxu0 %v9157_v51  ;;  %v9163_v59 = vld [vmem:[%s10355_s11 + $0x3c8] sm:$0xff]  ;;  %10719 = vst [vmem:[#allocation44_spill] sm:$0xff] %v9169_v54  ;;  %v9181_v51 = vld [vmem:[%s10355_s11 + $0x2c0] sm:$0xff] }
 0x47c   :  { %6339 = vmatpush3.msra.mxu1 %v9151_v7  ;;  %10718 = vst [vmem:[#allocation43_spill] sm:$0xff] %v9163_v59  ;;  %6306 = vmatpush3.msra.mxu0 %v9169_v54  ;;  %v9175_v7 = vld [vmem:[%s10355_s11 + $0x348] sm:$0xff]  ;;  %10721 = vst [vmem:[#allocation46_spill] sm:$0xff] %v9181_v51  ;;  %v9193_v54 = vld [vmem:[%s10355_s11 + $0x240] sm:$0xff] }
 0x47d   :  { %6340 = vmatprep.subr.mxu1 %v9163_v59  ;;  %10720 = vst [vmem:[#allocation45_spill] sm:$0xff] %v9175_v7  ;;  %6307 = vmatprep.subr.mxu0 %v9181_v51  ;;  %v9187_v59 = vld [vmem:[%s10355_s11 + $0x3c0] sm:$0xff]  ;;  %10723 = vst [vmem:[#allocation48_spill] sm:$0xff] %v9193_v54  ;;  %v9205_v51 = vld [vmem:[%s10355_s11 + $0x2b8] sm:$0xff] }
 0x47e   :  { %6341 = vmatpush3.msra.mxu1 %v9175_v7  ;;  %10722 = vst [vmem:[#allocation47_spill] sm:$0xff] %v9187_v59  ;;  %6308 = vmatpush3.msra.mxu0 %v9193_v54  ;;  %v9199_v7 = vld [vmem:[%s10355_s11 + $0x340] sm:$0xff]  ;;  %10725 = vst [vmem:[#allocation50_spill] sm:$0xff] %v9205_v51  ;;  %v9217_v54 = vld [vmem:[%s10355_s11 + $0x238] sm:$0xff] }
 0x47f   :  { %6342 = vmatprep.subr.mxu1 %v9187_v59  ;;  %10724 = vst [vmem:[#allocation49_spill] sm:$0xff] %v9199_v7  ;;  %6309 = vmatprep.subr.mxu0 %v9205_v51  ;;  %v9211_v59 = vld [vmem:[%s10355_s11 + $0x3b8] sm:$0xff]  ;;  %10727 = vst [vmem:[#allocation52_spill] sm:$0xff] %v9217_v54  ;;  %v9229_v51 = vld [vmem:[%s10355_s11 + $0x2b0] sm:$0xff] }
 0x480   :  { %6343 = vmatpush3.msra.mxu1 %v9199_v7  ;;  %10726 = vst [vmem:[#allocation51_spill] sm:$0xff] %v9211_v59  ;;  %6310 = vmatpush3.msra.mxu0 %v9217_v54  ;;  %v9223_v7 = vld [vmem:[%s10355_s11 + $0x338] sm:$0xff]  ;;  %10729 = vst [vmem:[#allocation54_spill] sm:$0xff] %v9229_v51  ;;  %v9241_v54 = vld [vmem:[%s10355_s11 + $0x230] sm:$0xff] }
 0x481   :  { %6344 = vmatprep.subr.mxu1 %v9211_v59  ;;  %10728 = vst [vmem:[#allocation53_spill] sm:$0xff] %v9223_v7  ;;  %6311 = vmatprep.subr.mxu0 %v9229_v51  ;;  %v9235_v59 = vld [vmem:[%s10355_s11 + $0x3b0] sm:$0xff]  ;;  %10731 = vst [vmem:[#allocation56_spill] sm:$0xff] %v9241_v54  ;;  %v9253_v51 = vld [vmem:[%s10355_s11 + $0x2a8] sm:$0xff] }
 0x482   :  { %6345 = vmatpush3.msra.mxu1 %v9223_v7  ;;  %10730 = vst [vmem:[#allocation55_spill] sm:$0xff] %v9235_v59  ;;  %6312 = vmatpush3.msra.mxu0 %v9241_v54  ;;  %v9247_v7 = vld [vmem:[%s10355_s11 + $0x330] sm:$0xff]  ;;  %10733 = vst [vmem:[#allocation58_spill] sm:$0xff] %v9253_v51  ;;  %v9265_v54 = vld [vmem:[%s10355_s11 + $0x228] sm:$0xff] }
 0x483   :  { %6346 = vmatprep.subr.mxu1 %v9235_v59  ;;  %10732 = vst [vmem:[#allocation57_spill] sm:$0xff] %v9247_v7  ;;  %6313 = vmatprep.subr.mxu0 %v9253_v51  ;;  %v9259_v59 = vld [vmem:[%s10355_s11 + $0x3a8] sm:$0xff]  ;;  %10735 = vst [vmem:[#allocation60_spill] sm:$0xff] %v9265_v54  ;;  %v9277_v51 = vld [vmem:[%s10355_s11 + $0x2a0] sm:$0xff] }
 0x484   :  { %6347 = vmatpush3.msra.mxu1 %v9247_v7  ;;  %10734 = vst [vmem:[#allocation59_spill] sm:$0xff] %v9259_v59  ;;  %6314 = vmatpush3.msra.mxu0 %v9265_v54  ;;  %v9271_v7 = vld [vmem:[%s10355_s11 + $0x328] sm:$0xff]  ;;  %10737 = vst [vmem:[#allocation62_spill] sm:$0xff] %v9277_v51  ;;  %v9289_v54 = vld [vmem:[%s10355_s11 + $0x220] sm:$0xff] }
 0x485   :  { %6348 = vmatprep.subr.mxu1 %v9259_v59  ;;  %10736 = vst [vmem:[#allocation61_spill] sm:$0xff] %v9271_v7  ;;  %6315 = vmatprep.subr.mxu0 %v9277_v51  ;;  %v9283_v59 = vld [vmem:[%s10355_s11 + $0x3a0] sm:$0xff]  ;;  %10739 = vst [vmem:[#allocation64_spill] sm:$0xff] %v9289_v54  ;;  %v9301_v51 = vld [vmem:[%s10355_s11 + $0x298] sm:$0xff] }
 0x486   :  { %6349 = vmatpush3.msra.mxu1 %v9271_v7  ;;  %10738 = vst [vmem:[#allocation63_spill] sm:$0xff] %v9283_v59  ;;  %6316 = vmatpush3.msra.mxu0 %v9289_v54  ;;  %v9295_v7 = vld [vmem:[%s10355_s11 + $0x320] sm:$0xff]  ;;  %10741 = vst [vmem:[#allocation66_spill] sm:$0xff] %v9301_v51  ;;  %v9313_v54 = vld [vmem:[%s10355_s11 + $0x218] sm:$0xff] }
 0x487   :  { %6350 = vmatprep.subr.mxu1 %v9283_v59  ;;  %10740 = vst [vmem:[#allocation65_spill] sm:$0xff] %v9295_v7  ;;  %6317 = vmatprep.subr.mxu0 %v9301_v51  ;;  %v9307_v59 = vld [vmem:[%s10355_s11 + $0x398] sm:$0xff]  ;;  %10743 = vst [vmem:[#allocation68_spill] sm:$0xff] %v9313_v54  ;;  %v9325_v51 = vld [vmem:[%s10355_s11 + $0x290] sm:$0xff] }
 0x488   :  { %6351 = vmatpush3.msra.mxu1 %v9295_v7  ;;  %10742 = vst [vmem:[#allocation67_spill] sm:$0xff] %v9307_v59  ;;  %6318 = vmatpush3.msra.mxu0 %v9313_v54  ;;  %v9319_v7 = vld [vmem:[%s10355_s11 + $0x318] sm:$0xff]  ;;  %10745 = vst [vmem:[#allocation70_spill] sm:$0xff] %v9325_v51  ;;  %v9337_v54 = vld [vmem:[%s10355_s11 + $0x210] sm:$0xff] }
 0x489   :  { %6352 = vmatprep.subr.mxu1 %v9307_v59  ;;  %10744 = vst [vmem:[#allocation69_spill] sm:$0xff] %v9319_v7  ;;  %6319 = vmatprep.subr.mxu0 %v9325_v51  ;;  %v9331_v59 = vld [vmem:[%s10355_s11 + $0x390] sm:$0xff]  ;;  %10747 = vst [vmem:[#allocation72_spill] sm:$0xff] %v9337_v54 }
 0x48a   :  { %6353 = vmatpush3.msra.mxu1 %v9319_v7  ;;  %10746 = vst [vmem:[#allocation71_spill] sm:$0xff] %v9331_v59  ;;  %6320 = vmatpush3.msra.mxu0 %v9337_v54  ;;  %v9343_v7 = vld [vmem:[%s10355_s11 + $0x310] sm:$0xff]  ;;  %v9357_v54 = vld [vmem:[%s10355_s11 + $0x388] sm:$0xff] }
 0x48b   :  { %6354 = vmatprep.subr.mxu1 %v9331_v59  ;;  %10748 = vst [vmem:[#allocation73_spill] sm:$0xff] %v9343_v7  ;;  %v9351_v59 = vld [vmem:[%s10355_s11 + $0x288] sm:$0xff]  ;;  %10750 = vst [vmem:[#allocation75_spill] sm:$0xff] %v9357_v54 }
 0x48c   :  { %6355 = vmatpush3.msra.mxu1 %v9343_v7  ;;  %v9346_v51 = vpop.f32.mrf.mxu1  ;;  %10749 = vst [vmem:[#allocation74_spill] sm:$0xff] %v9351_v59  ;;  %6321 = vmatprep.subr.mxu0 %v9351_v59  ;;  %v9365_v7 = vld [vmem:[%s10355_s11 + $0x208] sm:$0xff] }
 0x48d   :  { %6356 = vmatprep.subr.mxu1 %v9357_v54  ;;  %v9360_v60 = vpop.f32.mrf.mxu0  ;;  %10751 = vst [vmem:[#allocation76_spill] sm:$0xff] %v9365_v7  ;;  %6322 = vmatpush3.msra.mxu0 %v9365_v7  ;;  %v9371_v59 = vld [vmem:[%s10355_s11 + $0x308] sm:$0xff]  ;;  %v9379_v54 = vld [vmem:[%s10355_s11 + $0x280] sm:$0xff] }
 0x48e   :  { %10752 = vst [vmem:[#allocation77_spill] sm:$0xff] %v9371_v59  ;;  %6357 = vmatpush3.msra.mxu1 %v9371_v59  ;;  %v9374_v11 = vpop.f32.mrf.mxu1  ;;  %10753 = vst [vmem:[#allocation78_spill] sm:$0xff] %v9379_v54  ;;  %6323 = vmatprep.subr.mxu0 %v9379_v54  ;;  %v9385_v7 = vld [vmem:[%s10355_s11 + $0x380] sm:$0xff] }
 0x48f   :  { %10754 = vst [vmem:[#allocation79_spill] sm:$0xff] %v9385_v7  ;;  %6358 = vmatprep.subr.mxu1 %v9385_v7  ;;  %v9388_v63 = vpop.f32.mrf.mxu0  ;;  %v9393_v59 = vld [vmem:[%s10355_s11 + $0x200] sm:$0xff]  ;;  %3370 = vmatprep.mubr.f32.mxu1 %v9374_v11  ;;  %v3379_v7 = vmul.f32 %v9016_v46, %v9016_v46 }
 0x490   :  { %10755 = vst [vmem:[#allocation80_spill] sm:$0xff] %v9393_v59  ;;  %6324 = vmatpush3.msra.mxu0 %v9393_v59  ;;  %v9399_v54 = vld [vmem:[%s10355_s11 + $0x300] sm:$0xff]  ;;  %3300 = vmatprep.mubr.f32.mxu0 %v9388_v63  ;;  %v3377_v59 = vmul.f32 %v9014_v4, %v9014_v4 }
 0x491   :  { %6359 = vmatpush3.msra.mxu1 %v9399_v54  ;;  %6363 = vmatprep.subr.mxu0 %v8617_v57  ;;  %v10756_v57 = vld [vmem:[#allocation7_spill] sm:$0xff] }
 0x492   :  { %3371 = vmatmul.mubr.f32.vlgmr.msra.gmra.mxu1 %v9346_v51  ;;  %6398 = vmatprep.subr.mxu1 %v8623_v14  ;;  %v10757_v14 = vld [vmem:[#allocation8_spill] sm:$0xff] }
 0x493   :  { %3301 = vmatmul.mubr.f32.vlgmr.msra.gmra.mxu0 %v9360_v60  ;;  %6399 = vmatpush3.msra.mxu1 %v8635_v58  ;;  %v10759_v58 = vld [vmem:[#allocation9_spill] sm:$0xff] }
 0x494   :  { %6364 = vmatpush3.msra.mxu0 %v8629_v53  ;;  %3518 = vmatprep.mubr.f32.mxu1 %v3379_v7  ;;  %v10758_v53 = vld [vmem:[#allocation19_spill] sm:$0xff] }
 0x495   :  { %6365 = vmatprep.subr.mxu0 %v8641_v10  ;;  %3448 = vmatprep.mubr.f32.mxu0 %v3377_v59  ;;  %v10760_v10 = vld [vmem:[#allocation22_spill] sm:$0xff]  ;;  %v10808_v7 = vld [vmem:[#allocation59_spill] sm:$0xff] }
 0x496   :  { %6400 = vmatprep.subr.mxu1 %v8647_v32  ;;  %6366 = vmatpush3.msra.mxu0 %v8653_v9  ;;  %v3376_v32 = vmul.f32 %v10760_v10, %v10760_v10  ;;  %v10761_v9 = vld [vmem:[#allocation10_spill] sm:$0xff] }
 0x497   :  { %6401 = vmatpush3.msra.mxu1 %v8659_v27  ;;  %6367 = vmatprep.subr.mxu0 %v8665_v35  ;;  %v10762_v27 = vld [vmem:[#allocation11_spill] sm:$0xff]  ;;  %v10763_v35 = vld [vmem:[#allocation16_spill] sm:$0xff]  ;;  %v10807_v59 = vld [vmem:[#allocation58_spill] sm:$0xff] }
 0x498   :  { %6402 = vmatprep.subr.mxu1 %v8671_v15  ;;  %6368 = vmatpush3.msra.mxu0 %v8677_v6  ;;  %v3378_v15 = vmul.f32 %v10763_v35, %v10763_v35  ;;  %v10764_v6 = vld [vmem:[#allocation12_spill] sm:$0xff] }
 0x499   :  { %6403 = vmatpush3.msra.mxu1 %v8683_v36  ;;  %6369 = vmatprep.subr.mxu0 %v8689_v37  ;;  %v10765_v36 = vld [vmem:[#allocation13_spill] sm:$0xff]  ;;  %v10766_v37 = vld [vmem:[#allocation14_spill] sm:$0xff] }
 0x49a   :  { %6404 = vmatprep.subr.mxu1 %v8695_v42  ;;  %6370 = vmatpush3.msra.mxu0 %v8701_v28  ;;  %v3381_v42 = vmul.f32 %v9388_v63, %v9388_v63  ;;  %v10767_v28 = vld [vmem:[#allocation15_spill] sm:$0xff] }
 0x49b   :  { %6405 = vmatpush3.msra.mxu1 %v8707_v43  ;;  %6371 = vmatprep.subr.mxu0 %v8713_v44  ;;  %v3383_v43 = vmul.f32 %v9374_v11, %v9374_v11  ;;  %v10768_v44 = vld [vmem:[#allocation20_spill] sm:$0xff] }
 0x49c   :  { %6406 = vmatprep.subr.mxu1 %v8719_v23  ;;  %6372 = vmatpush3.msra.mxu0 %v8725_v21  ;;  %v10769_v23 = vld [vmem:[#allocation21_spill] sm:$0xff] }
 0x49d   :  { %6407 = vmatpush3.msra.mxu1 %v8731_v45  ;;  %6373 = vmatprep.subr.mxu0 %v8737_v22  ;;  %v10770_v21 = vld [vmem:[#allocation17_spill] sm:$0xff]  ;;  %v10771_v45 = vld [vmem:[#allocation23_spill] sm:$0xff]  ;;  %v10772_v22 = vld [vmem:[#allocation24_spill] sm:$0xff] }
 0x49e   :  { %6408 = vmatprep.subr.mxu1 %v8743_v49  ;;  %6374 = vmatpush3.msra.mxu0 %v8749_v1  ;;  %v10773_v49 = vld [vmem:[#allocation18_spill] sm:$0xff]  ;;  %v10774_v1 = vld [vmem:[#allocation25_spill] sm:$0xff] }
 0x49f   :  { %6409 = vmatpush3.msra.mxu1 %v8755_v50  ;;  %6375 = vmatprep.subr.mxu0 %v8761_v13  ;;  %v10775_v50 = vld [vmem:[#allocation26_spill] sm:$0xff]  ;;  %v10776_v13 = vld [vmem:[#allocation27_spill] sm:$0xff] }
 0x4a0   :  { %6410 = vmatprep.subr.mxu1 %v8767_v24  ;;  %6376 = vmatpush3.msra.mxu0 %v8773_v39  ;;  %v10777_v24 = vld [vmem:[#allocation28_spill] sm:$0xff]  ;;  %v10778_v39 = vld [vmem:[#allocation29_spill] sm:$0xff] }
 0x4a1   :  { %6411 = vmatpush3.msra.mxu1 %v8779_v62  ;;  %6377 = vmatprep.subr.mxu0 %v8785_v47  ;;  %v10779_v62 = vld [vmem:[#allocation30_spill] sm:$0xff]  ;;  %v10780_v47 = vld [vmem:[#allocation31_spill] sm:$0xff] }
 0x4a2   :  { %6412 = vmatprep.subr.mxu1 %v8791_v2  ;;  %6378 = vmatpush3.msra.mxu0 %v8797_v8  ;;  %v10781_v2 = vld [vmem:[#allocation32_spill] sm:$0xff]  ;;  %v10782_v8 = vld [vmem:[#allocation33_spill] sm:$0xff] }
 0x4a3   :  { %6413 = vmatpush3.msra.mxu1 %v8803_v19  ;;  %6379 = vmatprep.subr.mxu0 %v8809_v18  ;;  %v10783_v19 = vld [vmem:[#allocation34_spill] sm:$0xff]  ;;  %v10784_v18 = vld [vmem:[#allocation35_spill] sm:$0xff] }
 0x4a4   :  { %6414 = vmatprep.subr.mxu1 %v8815_v30  ;;  %6380 = vmatpush3.msra.mxu0 %v8821_v34  ;;  %v10785_v30 = vld [vmem:[#allocation36_spill] sm:$0xff]  ;;  %v10786_v34 = vld [vmem:[#allocation37_spill] sm:$0xff] }
 0x4a5   :  { %6415 = vmatpush3.msra.mxu1 %v8827_v16  ;;  %6381 = vmatprep.subr.mxu0 %v8833_v31  ;;  %v10787_v16 = vld [vmem:[#allocation38_spill] sm:$0xff]  ;;  %v10788_v31 = vld [vmem:[#allocation39_spill] sm:$0xff] }
 0x4a6   :  { %6416 = vmatprep.subr.mxu1 %v8839_v25  ;;  %6382 = vmatpush3.msra.mxu0 %v8845_v26  ;;  %v10789_v25 = vld [vmem:[#allocation40_spill] sm:$0xff]  ;;  %v10790_v26 = vld [vmem:[#allocation41_spill] sm:$0xff] }
 0x4a7   :  { %6417 = vmatpush3.msra.mxu1 %v8851_v52  ;;  %6383 = vmatprep.subr.mxu0 %v8857_v55  ;;  %v10791_v52 = vld [vmem:[#allocation42_spill] sm:$0xff]  ;;  %v10792_v55 = vld [vmem:[#allocation43_spill] sm:$0xff] }
 0x4a8   :  { %6418 = vmatprep.subr.mxu1 %v8863_v48  ;;  %6384 = vmatpush3.msra.mxu0 %v8869_v33  ;;  %v10793_v48 = vld [vmem:[#allocation44_spill] sm:$0xff]  ;;  %v10794_v33 = vld [vmem:[#allocation45_spill] sm:$0xff] }
 0x4a9   :  { %6419 = vmatpush3.msra.mxu1 %v8875_v38  ;;  %6385 = vmatprep.subr.mxu0 %v8881_v0  ;;  %v10795_v38 = vld [vmem:[#allocation46_spill] sm:$0xff]  ;;  %v10796_v0 = vld [vmem:[#allocation47_spill] sm:$0xff] }
 0x4aa   :  { %6420 = vmatprep.subr.mxu1 %v8887_v20  ;;  %6386 = vmatpush3.msra.mxu0 %v8893_v41  ;;  %v10797_v20 = vld [vmem:[#allocation48_spill] sm:$0xff]  ;;  %v10798_v41 = vld [vmem:[#allocation49_spill] sm:$0xff] }
 0x4ab   :  { %6421 = vmatpush3.msra.mxu1 %v8899_v61  ;;  %6387 = vmatprep.subr.mxu0 %v8905_v40  ;;  %v10799_v61 = vld [vmem:[#allocation50_spill] sm:$0xff]  ;;  %v10800_v40 = vld [vmem:[#allocation51_spill] sm:$0xff] }
 0x4ac   :  { %6422 = vmatprep.subr.mxu1 %v8911_v5  ;;  %6388 = vmatpush3.msra.mxu0 %v8917_v17  ;;  %v10801_v5 = vld [vmem:[#allocation52_spill] sm:$0xff]  ;;  %v10802_v17 = vld [vmem:[#allocation53_spill] sm:$0xff] }
 0x4ad   :  { %6423 = vmatpush3.msra.mxu1 %v8923_v3  ;;  %6389 = vmatprep.subr.mxu0 %v8929_v56  ;;  %v10803_v3 = vld [vmem:[#allocation54_spill] sm:$0xff]  ;;  %v10804_v56 = vld [vmem:[#allocation55_spill] sm:$0xff] }
 0x4ae   :  { %6424 = vmatprep.subr.mxu1 %v8935_v12  ;;  %6390 = vmatpush3.msra.mxu0 %v8941_v29  ;;  %v10805_v12 = vld [vmem:[#allocation56_spill] sm:$0xff]  ;;  %v10806_v29 = vld [vmem:[#allocation57_spill] sm:$0xff] }
 0x4af   :  { %6425 = vmatpush3.msra.mxu1 %v10756_v57  ;;  %6391 = vmatprep.subr.mxu0 %v10757_v14  ;;  %v10809_v57 = vld [vmem:[#allocation60_spill] sm:$0xff]  ;;  %v10810_v14 = vld [vmem:[#allocation61_spill] sm:$0xff] }
 0x4b0   :  { %6426 = vmatprep.subr.mxu1 %v10758_v53  ;;  %6392 = vmatpush3.msra.mxu0 %v10759_v58  ;;  %v10811_v53 = vld [vmem:[#allocation62_spill] sm:$0xff]  ;;  %v10812_v58 = vld [vmem:[#allocation63_spill] sm:$0xff] }
 0x4b1   :  { %6427 = vmatpush3.msra.mxu1 %v10761_v9  ;;  %6393 = vmatprep.subr.mxu0 %v10762_v27  ;;  %v10814_v9 = vld [vmem:[#allocation65_spill] sm:$0xff]  ;;  %v10815_v27 = vld [vmem:[#allocation66_spill] sm:$0xff] }
 0x4b2   :  { %6428 = vmatprep.subr.mxu1 %v10764_v6  ;;  %6394 = vmatpush3.msra.mxu0 %v10765_v36  ;;  %v10817_v6 = vld [vmem:[#allocation68_spill] sm:$0xff]  ;;  %v10818_v36 = vld [vmem:[#allocation69_spill] sm:$0xff] }
 0x4b3   :  { %6429 = vmatpush3.msra.mxu1 %v10766_v37  ;;  %3449 = vmatmul.mubr.f32.vlgmr.msra.gmra.mxu0 %v3376_v32  ;;  %v10813_v32 = vld [vmem:[#allocation64_spill] sm:$0xff]  ;;  %v10819_v37 = vld [vmem:[#allocation70_spill] sm:$0xff] }
 0x4b4   :  { %3519 = vmatmul.mubr.f32.vlgmr.msra.gmra.mxu1 %v3378_v15  ;;  %6433 = vmatprep.subr.mxu0 %v10767_v28  ;;  %v10816_v15 = vld [vmem:[#allocation67_spill] sm:$0xff]  ;;  %v10821_v28 = vld [vmem:[#allocation72_spill] sm:$0xff] }
 0x4b5   :  { %6468 = vmatprep.subr.mxu1 %v10768_v44  ;;  %6434 = vmatpush3.msra.mxu0 %v10769_v23  ;;  %v10823_v44 = vld [vmem:[#allocation74_spill] sm:$0xff]  ;;  %v10824_v23 = vld [vmem:[#allocation75_spill] sm:$0xff] }
 0x4b6   :  { %3588 = vmatprep.mubr.f32.mxu0 %v3381_v42  ;;  %6469 = vmatpush3.msra.mxu1 %v10770_v21  ;;  %v10820_v42 = vld [vmem:[#allocation71_spill] sm:$0xff]  ;;  %v10825_v21 = vld [vmem:[#allocation76_spill] sm:$0xff] }
 0x4b7   :  { %3658 = vmatprep.mubr.f32.mxu1 %v3383_v43  ;;  %6435 = vmatprep.subr.mxu0 %v10771_v45  ;;  %v10822_v43 = vld [vmem:[#allocation73_spill] sm:$0xff]  ;;  %v3380_v45 = vmul.f32 %v9360_v60, %v9360_v60 }
 0x4b8   :  { %6470 = vmatprep.subr.mxu1 %v10772_v22  ;;  %6436 = vmatpush3.msra.mxu0 %v10773_v49  ;;  %v10826_v22 = vld [vmem:[#allocation77_spill] sm:$0xff]  ;;  %v10827_v49 = vld [vmem:[#allocation78_spill] sm:$0xff] }
 0x4b9   :  { %6471 = vmatpush3.msra.mxu1 %v10774_v1  ;;  %6437 = vmatprep.subr.mxu0 %v10775_v50  ;;  %v3382_v1 = vmul.f32 %v9346_v51, %v9346_v51  ;;  %v10828_v50 = vld [vmem:[#allocation79_spill] sm:$0xff] }
 0x4ba   :  { %6472 = vmatprep.subr.mxu1 %v10776_v13  ;;  %6438 = vmatpush3.msra.mxu0 %v10777_v24  ;;  %v10829_v13 = vld [vmem:[#allocation80_spill] sm:$0xff] }
 0x4bb   :  { %6473 = vmatpush3.msra.mxu1 %v10778_v39  ;;  %6439 = vmatprep.subr.mxu0 %v10779_v62  ;;  %v9553_v24 = vld [vmem:[%s10356_s10 + $0x18] sm:$0xff]  ;;  %v9559_v39 = vld [vmem:[%s10356_s10 + $0x10] sm:$0xff]  ;;  %v9571_v62 = vld [vmem:[%s10356_s10] sm:$0xff] }
 0x4bc   :  { %6474 = vmatprep.subr.mxu1 %v10780_v47  ;;  %6440 = vmatpush3.msra.mxu0 %v10781_v2  ;;  %v10830_v47 = vmov 0.0   ;;  %v9579_v2 = vld [vmem:[%s10356_s10 + $0x38] sm:$0xff] }
 0x4bd   :  { %6475 = vmatpush3.msra.mxu1 %v10782_v8  ;;  %6441 = vmatprep.subr.mxu0 %v10783_v19  ;;  %v9585_v8 = vld [vmem:[%s10356_s10 + $0x28] sm:$0xff] }
 0x4be   :  { %6476 = vmatprep.subr.mxu1 %v10784_v18  ;;  %6442 = vmatpush3.msra.mxu0 %v10785_v30  ;;  %v5912_v19 = vld [vmem:[%s10361_s8 + $0x6] ss:$8 sm:$0x3]  ;;  %v5909_v18 = vld [vmem:[%s10361_s8 + $0x3] ss:$8 sm:$0x3] }
 0x4bf   :  { %6477 = vmatpush3.msra.mxu1 %v10786_v34  ;;  %6443 = vmatprep.subr.mxu0 %v10787_v16  ;;  %v10831_v30 = vld [vmem:[#allocation5_spill] sm:$0xff]  ;;  %v10832_v16 = vld [vmem:[#allocation6_spill] sm:$0xff] }
 0x4c0   :  { %6478 = vmatprep.subr.mxu1 %v10788_v31  ;;  %6444 = vmatpush3.msra.mxu0 %v10789_v25  ;;  %v4479_v34 = vrot.slane %v5912_v19, %v10831_v30  ;;  %v4483_v31 = vrot.slane %v5912_v19, %v10832_v16  ;;  %v4408_v25 = vrot.slane %v5909_v18, %v10831_v30 }
 0x4c1   :  { %6479 = vmatpush3.msra.mxu1 %v10790_v26  ;;  %6445 = vmatprep.subr.mxu0 %v10791_v52  ;;  %v4412_v26 = vrot.slane %v5909_v18, %v10832_v16  ;;  %v5908_v52 = vld [vmem:[%s10361_s8 + $0x2] ss:$8 sm:$0x3] }
 0x4c2   :  { %6480 = vmatprep.subr.mxu1 %v10792_v55  ;;  %6446 = vmatpush3.msra.mxu0 %v10793_v48  ;;  %v4371_v55 = vrot.slane %v5908_v52, %v10831_v30  ;;  %v4375_v48 = vrot.slane %v5908_v52, %v10832_v16 }
 0x4c3   :  { %6481 = vmatpush3.msra.mxu1 %v10794_v33  ;;  %6447 = vmatprep.subr.mxu0 %v10795_v38  ;;  %v5907_v33 = vld [vmem:[%s10361_s8 + $0x1] ss:$8 sm:$0x3] }
 0x4c4   :  { %6482 = vmatprep.subr.mxu1 %v10796_v0  ;;  %6448 = vmatpush3.msra.mxu0 %v10797_v20  ;;  %v4334_v38 = vrot.slane %v5907_v33, %v10831_v30  ;;  %v4338_v0 = vrot.slane %v5907_v33, %v10832_v16  ;;  %v4292_v20 = vld [vmem:[%s10361_s8] ss:$8 sm:$0x3] }
 0x4c5   :  { %6483 = vmatpush3.msra.mxu1 %v10798_v41  ;;  %6449 = vmatprep.subr.mxu0 %v10799_v61  ;;  %v4297_v41 = vrot.slane %v4292_v20, %v10831_v30  ;;  %v4301_v61 = vrot.slane %v4292_v20, %v10832_v16 }
 0x4c6   :  { %6484 = vmatprep.subr.mxu1 %v10800_v40  ;;  %6450 = vmatpush3.msra.mxu0 %v10801_v5 }
 0x4c7   :  { %6485 = vmatpush3.msra.mxu1 %v10802_v17  ;;  %6451 = vmatprep.subr.mxu0 %v10803_v3 }
 0x4c8   :  { %6486 = vmatprep.subr.mxu1 %v10804_v56  ;;  %6452 = vmatpush3.msra.mxu0 %v10805_v12 }
 0x4c9   :  { %6487 = vmatpush3.msra.mxu1 %v10806_v29  ;;  %6453 = vmatprep.subr.mxu0 %v10807_v59 }
 0x4ca   :  { %6488 = vmatprep.subr.mxu1 %v10808_v7  ;;  %6454 = vmatpush3.msra.mxu0 %v10809_v57 }
 0x4cb   :  { %6489 = vmatpush3.msra.mxu1 %v10810_v14  ;;  %6455 = vmatprep.subr.mxu0 %v10811_v53 }
 0x4cc   :  { %6490 = vmatprep.subr.mxu1 %v10812_v58  ;;  %6456 = vmatpush3.msra.mxu0 %v10813_v32 }
 0x4cd   :  { %6491 = vmatpush3.msra.mxu1 %v10814_v9  ;;  %6457 = vmatprep.subr.mxu0 %v10815_v27 }
 0x4ce   :  { %6492 = vmatprep.subr.mxu1 %v10816_v15  ;;  %6458 = vmatpush3.msra.mxu0 %v10817_v6 }
 0x4cf   :  { %6493 = vmatpush3.msra.mxu1 %v10818_v36  ;;  %6459 = vmatprep.subr.mxu0 %v10819_v37 }
 0x4d0   :  { %6494 = vmatprep.subr.mxu1 %v10820_v42  ;;  %6460 = vmatpush3.msra.mxu0 %v10821_v28 }
 0x4d1   :  { %6495 = vmatpush3.msra.mxu1 %v10822_v43  ;;  %6461 = vmatprep.subr.mxu0 %v10823_v44 }
 0x4d2   :  { %6496 = vmatprep.subr.mxu1 %v10824_v23  ;;  %6462 = vmatpush3.msra.mxu0 %v10825_v21 }
 0x4d3   :  { %6497 = vmatpush3.msra.mxu1 %v10826_v22  ;;  %6463 = vmatprep.subr.mxu0 %v10827_v49 }
 0x4d4   :  { %6498 = vmatprep.subr.mxu1 %v10828_v50  ;;  %6464 = vmatpush3.msra.mxu0 %v10829_v13 }
 0x4d5   :  { %6499 = vmatpush3.msra.mxu1 %v9399_v54  ;;  %3589 = vmatmul.mubr.f32.vlgmr.msra.gmra.mxu0 %v3380_v45  ;;  %v9565_v54 = vld [vmem:[%s10356_s10 + $0x8] sm:$0xff] }
 0x4d6   :  { %3659 = vmatmul.mubr.f32.vlgmr.msra.gmra.mxu1 %v3382_v1  ;;  %3782 = vmatprep.subr.mxu1 %v9553_v24 }
 0x4d7   :  { %3783 = vmatpush1.msra.mxu1 %v9559_v39  ;;  %3711 = vmatprep.subr.mxu0 %v9565_v54 }
 0x4d8   :  { %3712 = vmatpush1.msra.mxu0 %v9571_v62  ;;  %3745 = vmatprep.mubr.f32.mxu0 %v10830_v47 }
 0x4d9   :  { %3816 = vmatprep.mubr.f32.mxu1 %v10830_v47  ;;  %3924 = vmatprep.subr.mxu1 %v9579_v2 }
 0x4da   :  { %3853 = vmatprep.subr.mxu0 %v9585_v8  ;;  %4484 = vrot.lane.b32.xlu0 %v4479_v34, %s6814_s16 }
 0x4db   :  { %4486 = vrot.lane.b32.xlu1 %v4483_v31, %s6814_s16 }
 0x4de   :  { %4413 = vrot.lane.b32.xlu0 %v4408_v25, %s6814_s16  ;;  %v5897_v25 = vld [vmem:[%s10358_s5 + $0x10] sm:$0xff] }
 0x4df   :  { %4415 = vrot.lane.b32.xlu1 %v4412_v26, %s6814_s16 }
 0x4e2   :  { %4376 = vrot.lane.b32.xlu0 %v4371_v55, %s6815_s25  ;;  %v6810_v55 = vld [vmem:[%s10356_s10 + $0x30] sm:$0xff] }
 0x4e3   :  { %4378 = vrot.lane.b32.xlu1 %v4375_v48, %s6815_s25  ;;  %v6811_v48 = vld [vmem:[%s10356_s10 + $0x20] sm:$0xff] }
 0x4e6   :  { %4339 = vrot.lane.b32.xlu0 %v4334_v38, %s6815_s25  ;;  %v5898_v38 = vld [vmem:[%s10359_s6 + $0x10] sm:$0xff] }
 0x4e7   :  { %4341 = vrot.lane.b32.xlu1 %v4338_v0, %s6815_s25 }
 0x4ea   :  { %4302 = vrot.lane.b32.xlu0 %v4297_v41, %s6817_s17 }
 0x4eb   :  { %4304 = vrot.lane.b32.xlu1 %v4301_v61, %s6817_s17 }
 0x52f   :  { %v6255_v40 = vpop.f32.mrf.mxu0 }
 0x531   :  { %v6290_v5 = vpop.f32.mrf.mxu1  ;;  %v6256_v17 = vpop.f32.mrf.mxu0 }
 0x532   :  { %v6257_v7 = vadd.f32 %v6256_v17, %v6255_v40 }
 0x533   :  { %v6291_v3 = vpop.f32.mrf.mxu1 }
 0x534   :  { %v6292_v57 = vadd.f32 %v6291_v3, %v6290_v5 }
 0x536   :  { %v3233_v32 = vadd.f32 %v6292_v57, %v6257_v7 }
 0x552   :  { %v6360_v56 = vpop.f32.mrf.mxu1 }
 0x553   :  { %v6325_v12 = vpop.f32.mrf.mxu0 }
 0x554   :  { %v6361_v29 = vpop.f32.mrf.mxu1 }
 0x555   :  { %v6326_v59 = vpop.f32.mrf.mxu0  ;;  %v6362_v6 = vadd.f32 %v6361_v29, %v6360_v56 }
 0x556   :  { %v6327_v58 = vadd.f32 %v6326_v59, %v6325_v12 }
 0x558   :  { %v3303_v15 = vadd.f32 %v6327_v58, %v3233_v32 }
 0x55a   :  { %v3373_v28 = vadd.f32 %v6362_v6, %v3303_v15 }
 0x55c   :  { %v3664_v22 = vmul.f32 0.00390625, %v3373_v28 }
 0x55e   :  { %v3666_v19 = vmul.f32 %v3664_v22, %v3664_v22 }
 0x573   :  { %v6395_v14 = vpop.f32.mrf.mxu0 }
 0x574   :  { %v6430_v53 = vpop.f32.mrf.mxu1 }
 0x575   :  { %v6396_v9 = vpop.f32.mrf.mxu0 }
 0x576   :  { %v6431_v27 = vpop.f32.mrf.mxu1  ;;  %v6397_v36 = vadd.f32 %v6396_v9, %v6395_v14 }
 0x577   :  { %v6432_v37 = vadd.f32 %v6431_v27, %v6430_v53 }
 0x579   :  { %v3521_v23 = vadd.f32 %v6432_v37, %v6397_v36 }
 0x595   :  { %v6465_v42 = vpop.f32.mrf.mxu0 }
 0x596   :  { %v6500_v43 = vpop.f32.mrf.mxu1 }
 0x597   :  { %v6466_v44 = vpop.f32.mrf.mxu0 }
 0x598   :  { %v6467_v21 = vadd.f32 %v6466_v44, %v6465_v42  ;;  %v6501_v45 = vpop.f32.mrf.mxu1 }
 0x599   :  { %v6502_v1 = vadd.f32 %v6501_v45, %v6500_v43 }
 0x59a   :  { %v3591_v49 = vadd.f32 %v6467_v21, %v3521_v23 }
 0x59c   :  { %v3661_v50 = vadd.f32 %v6502_v1, %v3591_v49 }
 0x59e   :  { %v3665_v13 = vmul.f32 0.00390625, %v3661_v50 }
 0x5a0   :  { %v3667_v18 = vsub.f32 %v3665_v13, %v3666_v19 }
 0x5a2   :  { %v3668_v34 = vmax.f32 %v3667_v18, 0.0 }
 0x5a4   :  { %v3673_v31 = vadd.f32 1e-05, %v3668_v34  ;;  %v5914_v34 = vld [vmem:[%s10361_s8 + $0x10] ss:$8 sm:$0x3] }
 0x5a6   :  { %6666 = vrsqrt.f32 %v3673_v31 }
 0x5b3   :  { %v6667_v26 = vpop.eup %6666 }
 0x5b4   :  { %v3675_v52 = vmul.f32 %v6667_v26, %v5897_v25 }
 0x5b6   :  { %5899 = vmatmul.mubr.msk.f32.vlgmr.msra.gmra.mxu0 %vm1102_vm1, %v3675_v52  ;;  %5900 = vmatmul.mubr.msk.f32.vlgmr.msra.gmra.mxu1 %vm1102_vm1, %v3675_v52  ;;  %v3676_v33 = vmul.f32 %v3675_v52, %v3664_v22 }
 0x5b7   :  { %3925 = vmatpush1.msra.mxu1 %v6810_v55  ;;  %3854 = vmatpush1.msra.mxu0 %v6811_v48 }
 0x5b8   :  { %3887 = vmatprep.mubr.f32.mxu0 %v10830_v47  ;;  %3958 = vmatprep.mubr.f32.mxu1 %v10830_v47  ;;  %v3677_v0 = vsub.f32 %v5898_v38, %v3676_v33 }
 0x5b9   :  { %4077 = vmatprep.subr.mxu1 %v9553_v24  ;;  %4006 = vmatprep.subr.mxu0 %v9565_v54  ;;  %v9656_v24 = vpop.permute.xlu0 %4484 }
 0x5ba   :  { %5901 = vmatmul.mubr.msk.f32.vlgmr.msra.gmra.mxu0 %vm1102_vm1, %v3675_v52  ;;  %5902 = vmatmul.mubr.msk.f32.vlgmr.msra.gmra.mxu1 %vm1102_vm1, %v3675_v52  ;;  %v5913_v52 = vld [vmem:[%s10361_s8 + $0x7] ss:$8 sm:$0x3] }
 0x5bb   :  { %4078 = vmatpush1.msra.mxu1 %v9559_v39  ;;  %4007 = vmatpush1.msra.mxu0 %v9571_v62  ;;  %v9658_v39 = vpop.permute.xlu1 %4486 }
 0x5bc   :  { %4040 = vmatprep.mubr.f32.mxu0 %v10830_v47  ;;  %4111 = vmatprep.mubr.f32.mxu1 %v10830_v47 }
 0x5bd   :  { %4148 = vmatprep.subr.mxu0 %v9585_v8  ;;  %4219 = vmatprep.subr.mxu1 %v9579_v2  ;;  %v4414_v20 = vpop.permute.xlu0 %4413 }
 0x5be   :  { %5903 = vmatmul.mubr.msk.f32.vlgmr.msra.gmra.mxu0 %vm1102_vm1, %v3677_v0  ;;  %5904 = vmatmul.mubr.msk.f32.vlgmr.msra.gmra.mxu1 %vm1102_vm1, %v3677_v0 }
 0x5bf   :  { %4149 = vmatpush1.msra.mxu0 %v6811_v48  ;;  %4182 = vmatprep.mubr.f32.mxu0 %v10830_v47  ;;  %v4416_v41 = vpop.permute.xlu1 %4415 }
 0x5c0   :  { %4220 = vmatpush1.msra.mxu1 %v6810_v55  ;;  %4253 = vmatprep.mubr.f32.mxu1 %v10830_v47  ;;  %v4417_v32 = vsel %vm1808_vm8, %v4414_v20, %v4416_v41  ;;  %v4537_v55 = vrot.slane %v5914_v34, %v10832_v16 }
 0x5c1   :  { %v9662_v59 = vpop.permute.xlu0 %4376 }
 0x5c2   :  { %5905 = vmatmul.mubr.msk.f32.vlgmr.msra.gmra.mxu0 %vm1102_vm1, %v3677_v0  ;;  %5906 = vmatmul.mubr.msk.f32.vlgmr.msra.gmra.mxu1 %vm1102_vm1, %v3677_v0  ;;  %v4533_v0 = vrot.slane %v5914_v34, %v10831_v30  ;;  %v9856_v34 = vld [vmem:[%s10362_s13 + $0xa0] sm:$0xff] }
 0x5c3   :  { %4634 = vmatprep.mubr.f32.mxu0 %v10830_v47  ;;  %v9666_v14 = vpop.permute.xlu1 %4378 }
 0x5c5   :  { %v4340_v22 = vpop.permute.xlu0 %4339 }
 0x5c7   :  { %v4342_v50 = vpop.permute.xlu1 %4341 }
 0x5c8   :  { %v4343_v19 = vsel %vm1770_vm14, %v4340_v22, %v4342_v50 }
 0x676   :  { %v3747_v54 = vpop.f32.mrf.mxu0  ;;  %v3818_v62 = vpop.f32.mrf.mxu1 }
 0x677   :  { %v3965_v3 = vmul.f32 %v3747_v54, %v10760_v10  ;;  %v3967_v56 = vmul.f32 %v3818_v62, %v10763_v35  ;;  %v4488_v54 = vsel %vm1808_vm8, %v9656_v24, %v9658_v39  ;;  %v4516_v62 = vrot.slane %v5913_v52, %v10831_v30 }
 0x678   :  { %v3749_v2 = vpop.f32.mrf.mxu0  ;;  %v3820_v8 = vpop.f32.mrf.mxu1 }
 0x679   :  { %v3966_v53 = vmul.f32 %v3749_v2, %v9014_v4  ;;  %v3968_v58 = vmul.f32 %v3820_v8, %v9016_v46  ;;  %v4520_v2 = vrot.slane %v5913_v52, %v10832_v16  ;;  %v9880_v52 = vld [vmem:[%s10362_s13 + $0x90] sm:$0xff] }
 0x67a   :  { %v3889_v61 = vpop.f32.mrf.mxu0  ;;  %v3960_v40 = vpop.f32.mrf.mxu1  ;;  %10834 = vst [vmem:[#allocation8_spill] sm:$0xff] %v9880_v52 }
 0x67b   :  { %v3969_v10 = vmul.f32 %v3889_v61, %v9360_v60  ;;  %v3971_v35 = vmul.f32 %v3960_v40, %v9346_v51  ;;  %v4380_v40 = vsel %vm1770_vm14, %v9662_v59, %v9666_v14 }
 0x67c   :  { %v3891_v5 = vpop.f32.mrf.mxu0  ;;  %v3962_v17 = vpop.f32.mrf.mxu1 }
 0x67d   :  { %v3970_v46 = vmul.f32 %v3891_v5, %v9388_v63  ;;  %v3972_v44 = vmul.f32 %v3962_v17, %v9374_v11  ;;  %v4303_v17 = vpop.permute.xlu0 %4302 }
 0x67e   :  { %v4042_v12 = vpop.f32.mrf.mxu0  ;;  %v4113_v29 = vpop.f32.mrf.mxu1 }
 0x67f   :  { %v9664_v7 = vadd.f32 %v4042_v12, %v3965_v3  ;;  %v4262_v57 = vadd.f32 %v4113_v29, %v3967_v56  ;;  %v4305_v3 = vpop.permute.xlu1 %4304 }
 0x680   :  { %v4044_v9 = vpop.f32.mrf.mxu0  ;;  %v4115_v27 = vpop.f32.mrf.mxu1 }
 0x681   :  { %vm4270_vm4 = vcmp.ge.f32.partialorder %v4262_v57, 0.0  ;;  %v4278_v15 = vmul.f32 0.01, %v4262_v57  ;;  %v4261_v6 = vadd.f32 %v4044_v9, %v3966_v53  ;;  %v4263_v36 = vadd.f32 %v4115_v27, %v3968_v58 }
 0x682   :  { %v4184_v37 = vpop.f32.mrf.mxu0  ;;  %v4255_v42 = vpop.f32.mrf.mxu1  ;;  %v4306_v53 = vsel %vm1731_vm2, %v4303_v17, %v4305_v3 }
 0x683   :  { %v9673_v28 = vsel %vm4270_vm4, %v4262_v57, %v4278_v15  ;;  %v4264_v43 = vadd.f32 %v4184_v37, %v3969_v10  ;;  %v4266_v4 = vadd.f32 %v4255_v42, %v3971_v35  ;;  %vm4269_vm5 = vcmp.ge.f32.partialorder %v4261_v6, 0.0  ;;  %v9753_v37 = vld [vmem:[%s10362_s13 + $0x68] sm:$0xff] }
 0x684   :  { %v4422_v23 = vmul.f32 %v4417_v32, %v9673_v28  ;;  %v4186_v60 = vpop.f32.mrf.mxu0  ;;  %v4257_v21 = vpop.f32.mrf.mxu1  ;;  %v4277_v51 = vmul.f32 0.01, %v4261_v6  ;;  %vm4271_vm6 = vcmp.ge.f32.partialorder %v4263_v36, 0.0  ;;  %v4279_v45 = vmul.f32 0.01, %v4263_v36 }
 0x685   :  { %vm4272_vm7 = vcmp.ge.f32.partialorder %v4264_v43, 0.0  ;;  %v4280_v49 = vmul.f32 0.01, %v4264_v43  ;;  %vm4274_vm9 = vcmp.ge.f32.partialorder %v4266_v4, 0.0  ;;  %v4282_v1 = vmul.f32 0.01, %v4266_v4 }
 0x686   :  { %v4265_v13 = vadd.f32 %v4186_v60, %v3970_v46  ;;  %4429 = vrot.lane.b32.xlu1 %v4422_v23, %s6813_s15  ;;  %v9679_v63 = vsel %vm4269_vm5, %v4261_v6, %v4277_v51  ;;  %v9681_v11 = vsel %vm4271_vm6, %v4263_v36, %v4279_v45  ;;  %v4267_v18 = vadd.f32 %v4257_v21, %v3972_v44  ;;  %v9724_v6 = vld [vmem:[%s10362_s13 + $0xf8] sm:$0xff]  ;;  %v9747_v36 = vld [vmem:[%s10362_s13 + $0xe8] sm:$0xff]  ;;  %v9784_v23 = vld [vmem:[%s10362_s13 + $0xd0] sm:$0xff] }
 0x687   :  { %v4421_v31 = vmul.f32 %v4414_v20, %v9679_v63  ;;  %v4423_v25 = vmul.f32 %v4416_v41, %v9681_v11  ;;  %v4290_v26 = vsel %vm4274_vm9, %v4266_v4, %v4282_v1  ;;  %v4288_v48 = vsel %vm4272_vm7, %v4264_v43, %v4280_v49  ;;  %6503 = vmatprep.subr.mxu1 %v9724_v6  ;;  %v9759_v43 = vld [vmem:[%s10362_s13 + $0xe0] sm:$0xff]  ;;  %v9772_v46 = vld [vmem:[%s10362_s13 + $0xd8] sm:$0xff]  ;;  %v9790_v60 = vld [vmem:[%s10362_s13 + $0x50] sm:$0xff] }
 0x688   :  { %vm4273_vm10 = vcmp.ge.f32.partialorder %v4265_v13, 0.0  ;;  %v4281_v33 = vmul.f32 0.01, %v4265_v13  ;;  %vm4275_vm4 = vcmp.ge.f32.partialorder %v4267_v18, 0.0  ;;  %v4283_v38 = vmul.f32 0.01, %v4267_v18 }
 0x689   :  { %4431 = vrot.lane.b32.xlu0 %v4423_v25, %s6813_s15  ;;  %v4348_v8 = vmul.f32 %v4343_v19, %v4288_v48  ;;  %v4493_v61 = vmul.f32 %v4488_v54, %v4290_v26  ;;  %v4540_v56 = vmul.f32 %v4533_v0, %v4290_v26  ;;  %v4523_v29 = vmul.f32 %v4516_v62, %v4288_v48  ;;  %v9765_v4 = vld [vmem:[%s10362_s13 + $0x60] sm:$0xff]  ;;  %v9778_v44 = vld [vmem:[%s10362_s13 + $0x58] sm:$0xff]  ;;  %v9796_v21 = vld [vmem:[%s10362_s13 + $0xc8] sm:$0xff] }
 0x68a   :  { %4427 = vrot.lane.b32.xlu1 %v4421_v31, %s6813_s15  ;;  %v4289_v20 = vsel %vm4273_vm10, %v4265_v13, %v4281_v33  ;;  %v4291_v41 = vsel %vm4275_vm4, %v4267_v18, %v4283_v38  ;;  %v4385_v57 = vmul.f32 %v4380_v40, %v4290_v26  ;;  %v4311_v32 = vmul.f32 %v4306_v53, %v4290_v26  ;;  %v9802_v51 = vld [vmem:[%s10362_s13 + $0x48] sm:$0xff]  ;;  %v9808_v45 = vld [vmem:[%s10362_s13 + $0xc0] sm:$0xff]  ;;  %v9820_v49 = vld [vmem:[%s10362_s13 + $0xb8] sm:$0xff] }
 0x68b   :  { %v4541_v5 = vmul.f32 %v4537_v55, %v4291_v41  ;;  %v4524_v12 = vmul.f32 %v4520_v2, %v4289_v20  ;;  %v4494_v58 = vmul.f32 %v9658_v39, %v4291_v41  ;;  %v4347_v9 = vmul.f32 %v4340_v22, %v9681_v11  ;;  %v9814_v22 = vld [vmem:[%s10362_s13 + $0x40] sm:$0xff]  ;;  %v9826_v1 = vld [vmem:[%s10362_s13 + $0x38] sm:$0xff]  ;;  %v9838_v13 = vld [vmem:[%s10362_s13 + $0x30] sm:$0xff] }
 0x68c   :  { %v4492_v27 = vmul.f32 %v9656_v24, %v4289_v20  ;;  %v4386_v10 = vmul.f32 %v9666_v14, %v4291_v41  ;;  %v4384_v39 = vmul.f32 %v9662_v59, %v4289_v20  ;;  %v4312_v35 = vmul.f32 %v4305_v3, %v4291_v41  ;;  %v9729_v24 = vld [vmem:[%s10362_s13 + $0x78] sm:$0xff]  ;;  %v9734_v59 = vld [vmem:[%s10362_s13 + $0xf0] sm:$0xff]  ;;  %v9844_v19 = vld [vmem:[%s10362_s13 + $0xa8] sm:$0xff] }
 0x68d   :  { %4500 = vrot.lane.b32.xlu0 %v4493_v61, %s6813_s15  ;;  %4584 = vmatprep.subr.mxu0 %v4541_v5  ;;  %v4349_v15 = vmul.f32 %v4342_v50, %v4289_v20  ;;  %v9740_v14 = vld [vmem:[%s10362_s13 + $0x70] sm:$0xff]  ;;  %v4310_v42 = vmul.f32 %v4303_v17, %v4289_v20  ;;  %v9850_v18 = vld [vmem:[%s10362_s13 + $0x28] sm:$0xff]  ;;  %v9862_v31 = vld [vmem:[%s10362_s13 + $0x20] sm:$0xff]  ;;  %v4276_v61 = vmul.f32 0.01, %v9664_v7  ;;  %vm4268_vm5 = vcmp.ge.f32.partialorder %v9664_v7, 0.0 }
 0x68e   :  { %4355 = vrot.lane.b32.xlu1 %v4348_v8, %s6818_s24  ;;  %4585 = vmatpush1.msra.mxu0 %v4540_v56  ;;  %v9832_v50 = vld [vmem:[%s10362_s13 + $0xb0] sm:$0xff]  ;;  %v9868_v25 = vld [vmem:[%s10362_s13 + $0x98] sm:$0xff]  ;;  %v5911_v20 = vld [vmem:[%s10361_s8 + $0x5] ss:$8 sm:$0x3] }
 0x68f   :  { %4586 = vmatprep.subr.mxu0 %v4524_v12  ;;  %6504 = vmatpush3.msra.mxu1 %v9729_v24  ;;  %v9874_v26 = vld [vmem:[%s10362_s13 + $0x18] sm:$0xff]  ;;  %v9886_v55 = vld [vmem:[%s10362_s13 + $0x10] sm:$0xff]  ;;  %v5910_v40 = vld [vmem:[%s10361_s8 + $0x4] ss:$8 sm:$0x3]  ;;  %v4466_v17 = vrot.slane %v5911_v20, %v10832_v16  ;;  %v4462_v3 = vrot.slane %v5911_v20, %v10831_v30 }
 0x690   :  { %4587 = vmatpush1.msra.mxu0 %v4523_v29  ;;  %6505 = vmatprep.subr.mxu1 %v9734_v59  ;;  %10833 = vst [vmem:[#allocation7_spill] sm:$0xff] %v9874_v26  ;;  %10835 = vst [vmem:[#allocation19_spill] sm:$0xff] %v9886_v55  ;;  %v4449_v56 = vrot.slane %v5910_v40, %v10832_v16  ;;  %v4445_v12 = vrot.slane %v5910_v40, %v10831_v30  ;;  %v9970_v20 = vld [vmem:[%s10362_s13 + $0x80] sm:$0xff] }
 0x691   :  { %4392 = vrot.lane.b32.xlu0 %v4385_v57, %s6818_s24  ;;  %6506 = vmatpush3.msra.mxu1 %v9740_v14  ;;  %v4284_v57 = vsel %vm4268_vm5, %v9664_v7, %v4276_v61  ;;  %10838 = vst [vmem:[#allocation10_spill] sm:$0xff] %v9970_v20 }
 0x692   :  { %4502 = vrot.lane.b32.xlu1 %v4494_v58, %s6813_s15  ;;  %6507 = vmatprep.subr.mxu1 %v9747_v36  ;;  %v4470_v58 = vmul.f32 %v4466_v17, %v9681_v11 }
 0x693   :  { %6508 = vmatpush3.msra.mxu1 %v9753_v37 }
 0x694   :  { %6509 = vmatprep.subr.mxu1 %v9759_v43 }
 0x695   :  { %4318 = vrot.lane.b32.xlu0 %v4311_v32, %s6819_s1  ;;  %6510 = vmatpush3.msra.mxu1 %v9765_v4  ;;  %v4469_v32 = vmul.f32 %v4462_v3, %v9673_v28 }
 0x696   :  { %4353 = vrot.lane.b32.xlu1 %v4347_v9, %s6818_s24  ;;  %6511 = vmatprep.subr.mxu1 %v9772_v46 }
 0x697   :  { %6512 = vmatpush3.msra.mxu1 %v9778_v44 }
 0x698   :  { %6513 = vmatprep.subr.mxu1 %v9784_v23 }
 0x699   :  { %4498 = vrot.lane.b32.xlu0 %v4492_v27, %s6813_s15  ;;  %6514 = vmatpush3.msra.mxu1 %v9790_v60  ;;  %v4453_v27 = vmul.f32 %v4449_v56, %v9679_v63 }
 0x69a   :  { %4394 = vrot.lane.b32.xlu1 %v4386_v10, %s6818_s24  ;;  %6515 = vmatprep.subr.mxu1 %v9796_v21  ;;  %v4452_v10 = vmul.f32 %v4445_v12, %v4284_v57  ;;  %v10039_v57 = vld [vmem:[%s10364_s12 + $0x8] sm:$0xff] }
 0x69b   :  { %6516 = vmatpush3.msra.mxu1 %v9802_v51 }
 0x69c   :  { %6517 = vmatprep.subr.mxu1 %v9808_v45 }
 0x69d   :  { %4390 = vrot.lane.b32.xlu0 %v4384_v39, %s6818_s24  ;;  %6518 = vmatpush3.msra.mxu1 %v9814_v22 }
 0x69e   :  { %4320 = vrot.lane.b32.xlu1 %v4312_v35, %s6819_s1  ;;  %6519 = vmatprep.subr.mxu1 %v9820_v49 }
 0x69f   :  { %6520 = vmatpush3.msra.mxu1 %v9826_v1 }
 0x6a0   :  { %6521 = vmatprep.subr.mxu1 %v9832_v50 }
 0x6a1   :  { %4357 = vrot.lane.b32.xlu0 %v4349_v15, %s6818_s24  ;;  %6522 = vmatpush3.msra.mxu1 %v9838_v13 }
 0x6a2   :  { %6523 = vmatprep.subr.mxu1 %v9844_v19 }
 0x6a3   :  { %6524 = vmatpush3.msra.mxu1 %v9850_v18 }
 0x6a4   :  { %6525 = vmatprep.subr.mxu1 %v9856_v34 }
 0x6a5   :  { %4316 = vrot.lane.b32.xlu0 %v4310_v42, %s6819_s1  ;;  %6526 = vmatpush3.msra.mxu1 %v9862_v31 }
 0x6a6   :  { %6527 = vmatprep.subr.mxu1 %v9868_v25 }
 0x6a7   :  { %6528 = vmatpush3.msra.mxu1 %v9874_v26 }
 0x6a8   :  { %6529 = vmatprep.subr.mxu1 %v9880_v52 }
 0x6a9   :  { %6530 = vmatpush3.msra.mxu1 %v9886_v55 }
 0x6f8   :  { %v4430_v48 = vpop.permute.xlu1 %4429 }
 0x6fb   :  { %v4432_v33 = vpop.permute.xlu0 %4431 }
 0x6fc   :  { %v4428_v38 = vpop.permute.xlu1 %4427  ;;  %v4434_v35 = vsel %vm1825_vm11, %v4430_v48, %v4432_v33 }
 0x6fd   :  { %v4433_v7 = vsel %vm1825_vm11, %v4428_v38, %v4430_v48  ;;  %v4544_v48 = vld [vmem:[%s10363_s3] sm:$0xff] }
 0x6ff   :  { %v4501_v0 = vpop.permute.xlu0 %4500 }
 0x700   :  { %v4356_v54 = vpop.permute.xlu1 %4355 }
 0x703   :  { %v4393_v62 = vpop.permute.xlu0 %4392 }
 0x704   :  { %v4503_v2 = vpop.permute.xlu1 %4502 }
 0x705   :  { %v4505_v8 = vsel %vm1825_vm11, %v4501_v0, %v4503_v2 }
 0x706   :  { %4588 = vmatprep.subr.mxu0 %v4505_v8  ;;  %v9962_v8 = vld [vmem:[%s10362_s13 + $0x8] sm:$0xff] }
 0x707   :  { %v4319_v41 = vpop.permute.xlu0 %4318  ;;  %10837 = vst [vmem:[#allocation22_spill] sm:$0xff] %v9962_v8 }
 0x708   :  { %v4354_v5 = vpop.permute.xlu1 %4353 }
 0x70b   :  { %v4499_v29 = vpop.permute.xlu0 %4498 }
 0x70c   :  { %v4504_v53 = vsel %vm1825_vm11, %v4499_v29, %v4501_v0  ;;  %v4395_v9 = vpop.permute.xlu1 %4394  ;;  %v4359_v0 = vsel %vm1102_vm1, %v4354_v5, %v4356_v54 }
 0x70d   :  { %4589 = vmatpush1.msra.mxu0 %v4504_v53  ;;  %v4397_v11 = vsel %vm1102_vm1, %v4393_v62, %v4395_v9  ;;  %v10044_v53 = vld [vmem:[%s10364_s12] sm:$0xff] }
 0x70e   :  { %4590 = vmatprep.subr.mxu0 %v4470_v58 }
 0x70f   :  { %v4391_v39 = vpop.permute.xlu0 %4390  ;;  %4591 = vmatpush1.msra.mxu0 %v4469_v32 }
 0x710   :  { %4592 = vmatprep.subr.mxu0 %v4453_v27  ;;  %v4396_v28 = vsel %vm1102_vm1, %v4391_v39, %v4393_v62  ;;  %v4321_v42 = vpop.permute.xlu1 %4320  ;;  %v9957_v62 = vld [vmem:[%s10362_s13 + $0x88] sm:$0xff] }
 0x711   :  { %4593 = vmatpush1.msra.mxu0 %v4452_v10  ;;  %v4323_v33 = vsel %vm1748_vm12, %v4319_v41, %v4321_v42  ;;  %10836 = vst [vmem:[#allocation9_spill] sm:$0xff] %v9957_v62  ;;  %6531 = vmatprep.subr.mxu1 %v9957_v62 }
 0x712   :  { %4594 = vmatprep.subr.mxu0 %v4434_v35  ;;  %6532 = vmatpush3.msra.mxu1 %v9962_v8 }
 0x713   :  { %v4358_v15 = vpop.permute.xlu0 %4357  ;;  %4595 = vmatpush1.msra.mxu0 %v4433_v7  ;;  %6533 = vmatprep.subr.mxu1 %v9970_v20 }
 0x714   :  { %4596 = vmatprep.subr.mxu0 %v4397_v11  ;;  %v4360_v63 = vsel %vm1102_vm1, %v4356_v54, %v4358_v15  ;;  %v4545_v54 = vld [vmem:[%s10363_s3 + $0x8] sm:$0xff] }
 0x715   :  { %4597 = vmatpush1.msra.mxu0 %v4396_v28 }
 0x716   :  { %4598 = vmatprep.subr.mxu0 %v4360_v63 }
 0x717   :  { %v4317_v2 = vpop.permute.xlu0 %4316  ;;  %4599 = vmatpush1.msra.mxu0 %v4359_v0 }
 0x718   :  { %v4322_v38 = vsel %vm1748_vm12, %v4317_v2, %v4319_v41  ;;  %4600 = vmatprep.subr.mxu0 %v4323_v33  ;;  %v9975_v41 = vld [vmem:[%s10362_s13] sm:$0xff] }
 0x719   :  { %4601 = vmatpush1.msra.mxu0 %v4322_v38  ;;  %10839 = vst [vmem:[#allocation11_spill] sm:$0xff] %v9975_v41  ;;  %6534 = vmatpush3.msra.mxu1 %v9975_v41 }
 0x71a   :  { %5915 = vmatmul.mubr.msk.f32.vlgmr.msra.gmra.mxu0 %vm2808_vm3, %v4544_v48  ;;  %6541 = vmatprep.subr.mxu0 %v9724_v6 }
 0x71b   :  { %4640 = vmatprep.mubr.f32.mxu0 %v10830_v47  ;;  %6542 = vmatpush3.msra.mxu0 %v9729_v24 }
 0x71c   :  { %6543 = vmatprep.subr.mxu0 %v9734_v59  ;;  %4863 = vmatprep.subr.mxu1 %v10039_v57 }
 0x71d   :  { %6544 = vmatpush3.msra.mxu0 %v9740_v14 }
 0x71e   :  { %5916 = vmatmul.mubr.msk.f32.gmra.mxu0 %vm2808_vm3, %v4545_v54  ;;  %6545 = vmatprep.subr.mxu0 %v9747_v36 }
 0x71f   :  { %6546 = vmatpush3.msra.mxu0 %v9753_v37 }
 0x720   :  { %6547 = vmatprep.subr.mxu0 %v9759_v43 }
 0x721   :  { %6548 = vmatpush3.msra.mxu0 %v9765_v4 }
 0x722   :  { %6549 = vmatprep.subr.mxu0 %v9772_v46 }
 0x723   :  { %6550 = vmatpush3.msra.mxu0 %v9778_v44 }
 0x724   :  { %6551 = vmatprep.subr.mxu0 %v9784_v23 }
 0x725   :  { %6552 = vmatpush3.msra.mxu0 %v9790_v60 }
 0x726   :  { %6553 = vmatprep.subr.mxu0 %v9796_v21 }
 0x727   :  { %6554 = vmatpush3.msra.mxu0 %v9802_v51 }
 0x728   :  { %6555 = vmatprep.subr.mxu0 %v9808_v45 }
 0x729   :  { %6556 = vmatpush3.msra.mxu0 %v9814_v22 }
 0x72a   :  { %6557 = vmatprep.subr.mxu0 %v9820_v49 }
 0x72b   :  { %6558 = vmatpush3.msra.mxu0 %v9826_v1 }
 0x72c   :  { %6559 = vmatprep.subr.mxu0 %v9832_v50 }
 0x72d   :  { %6560 = vmatpush3.msra.mxu0 %v9838_v13 }
 0x72e   :  { %6561 = vmatprep.subr.mxu0 %v9844_v19 }
 0x72f   :  { %6562 = vmatpush3.msra.mxu0 %v9850_v18 }
 0x730   :  { %6563 = vmatprep.subr.mxu0 %v9856_v34 }
 0x731   :  { %6564 = vmatpush3.msra.mxu0 %v9862_v31 }
 0x732   :  { %6565 = vmatprep.subr.mxu0 %v9868_v25 }
 0x733   :  { %6566 = vmatpush3.msra.mxu0 %v9874_v26 }
 0x734   :  { %6567 = vmatprep.subr.mxu0 %v9880_v52 }
 0x735   :  { %6568 = vmatpush3.msra.mxu0 %v9886_v55 }
 0x736   :  { %6569 = vmatprep.subr.mxu0 %v9957_v62 }
 0x737   :  { %6570 = vmatpush3.msra.mxu0 %v9962_v8 }
 0x738   :  { %6571 = vmatprep.subr.mxu0 %v9970_v20 }
 0x739   :  { %6572 = vmatpush3.msra.mxu0 %v9975_v41 }
 0x73a   :  { %6579 = vmatprep.subr.mxu0 %v9724_v6 }
 0x7da   :  { %v9983_v61 = vpop.f32.mrf.mxu0 }
 0x7db   :  { %v4722_v17 = vmul.f32 %v9983_v61, %v9983_v61 }
 0x7dc   :  { %v9985_v40 = vpop.f32.mrf.mxu0 }
 0x7dd   :  { %v4723_v5 = vmul.f32 %v9985_v40, %v9985_v40  ;;  %4711 = vmatprep.mubr.f32.mxu1 %v9985_v40 }
 0x7de   :  { %v9992_v3 = vpop.f32.mrf.mxu0  ;;  %4712 = vmatmul.mubr.f32.vlgmr.msra.gmra.mxu1 %v9983_v61 }
 0x7df   :  { %4790 = vmatprep.mubr.f32.mxu0 %v4723_v5  ;;  %v4724_v29 = vmul.f32 %v9992_v3, %v9992_v3  ;;  %4864 = vmatpush1.msra.mxu1 %v10044_v53 }
 0x7e0   :  { %v9995_v56 = vpop.f32.mrf.mxu0  ;;  %4791 = vmatmul.mubr.f32.vlgmr.msra.gmra.mxu0 %v4722_v17  ;;  %4950 = vmatprep.subr.mxu1 %v10039_v57 }
 0x7e1   :  { %v4725_v12 = vmul.f32 %v9995_v56, %v9995_v56  ;;  %4716 = vmatprep.mubr.f32.mxu1 %v9995_v56  ;;  %6580 = vmatpush3.msra.mxu0 %v9729_v24 }
 0x7e2   :  { %4717 = vmatmul.mubr.f32.gmra.mxu1 %v9992_v3  ;;  %6581 = vmatprep.subr.mxu0 %v9734_v59 }
 0x7e3   :  { %4795 = vmatprep.mubr.f32.mxu0 %v4725_v12  ;;  %4897 = vmatprep.mubr.f32.mxu1 %v10830_v47 }
 0x7e4   :  { %4796 = vmatmul.mubr.f32.gmra.mxu0 %v4724_v29 }
 0x7e5   :  { %6582 = vmatpush3.msra.mxu0 %v9740_v14 }
 0x7e6   :  { %6583 = vmatprep.subr.mxu0 %v9747_v36 }
 0x7e7   :  { %6584 = vmatpush3.msra.mxu0 %v9753_v37 }
 0x7e8   :  { %6585 = vmatprep.subr.mxu0 %v9759_v43 }
 0x7e9   :  { %6586 = vmatpush3.msra.mxu0 %v9765_v4 }
 0x7ea   :  { %6587 = vmatprep.subr.mxu0 %v9772_v46 }
 0x7eb   :  { %6588 = vmatpush3.msra.mxu0 %v9778_v44 }
 0x7ec   :  { %6589 = vmatprep.subr.mxu0 %v9784_v23 }
 0x7ed   :  { %6590 = vmatpush3.msra.mxu0 %v9790_v60 }
 0x7ee   :  { %6591 = vmatprep.subr.mxu0 %v9796_v21 }
 0x7ef   :  { %6592 = vmatpush3.msra.mxu0 %v9802_v51 }
 0x7f0   :  { %6593 = vmatprep.subr.mxu0 %v9808_v45 }
 0x7f1   :  { %6594 = vmatpush3.msra.mxu0 %v9814_v22 }
 0x7f2   :  { %6595 = vmatprep.subr.mxu0 %v9820_v49 }
 0x7f3   :  { %6596 = vmatpush3.msra.mxu0 %v9826_v1 }
 0x7f4   :  { %6597 = vmatprep.subr.mxu0 %v9832_v50 }
 0x7f5   :  { %6598 = vmatpush3.msra.mxu0 %v9838_v13 }
 0x7f6   :  { %6599 = vmatprep.subr.mxu0 %v9844_v19 }
 0x7f7   :  { %6600 = vmatpush3.msra.mxu0 %v9850_v18 }
 0x7f8   :  { %6601 = vmatprep.subr.mxu0 %v9856_v34 }
 0x7f9   :  { %6602 = vmatpush3.msra.mxu0 %v9862_v31 }
 0x7fa   :  { %6603 = vmatprep.subr.mxu0 %v9868_v25 }
 0x7fb   :  { %6604 = vmatpush3.msra.mxu0 %v9874_v26  ;;  %v5929_v26 = vld [vmem:[%s10366_s9 + $0x5] ss:$8 sm:$0x3] }
 0x7fc   :  { %6605 = vmatprep.subr.mxu0 %v9880_v52 }
 0x7fd   :  { %6606 = vmatpush3.msra.mxu0 %v9886_v55 }
 0x7fe   :  { %6607 = vmatprep.subr.mxu0 %v9957_v62 }
 0x7ff   :  { %6608 = vmatpush3.msra.mxu0 %v9962_v8 }
 0x800   :  { %6609 = vmatprep.subr.mxu0 %v9970_v20 }
 0x801   :  { %6610 = vmatpush3.msra.mxu0 %v9975_v41 }
 0x802   :  { %6617 = vmatprep.subr.mxu0 %v9724_v6 }
 0x89e   :  { %v6535_v58 = vpop.f32.mrf.mxu1 }
 0x8a0   :  { %v6536_v32 = vpop.f32.mrf.mxu1  ;;  %v6573_v9 = vpop.f32.mrf.mxu0 }
 0x8a1   :  { %v6537_v6 = vadd.f32 %v6536_v32, %v6535_v58  ;;  %v5917_v58 = vld [vmem:[%s10358_s5 + $0x20] sm:$0xff] }
 0x8a2   :  { %v6538_v27 = vpop.f32.mrf.mxu1  ;;  %v6574_v10 = vpop.f32.mrf.mxu0 }
 0x8a3   :  { %v4801_v39 = vmul.f32 0.015625, %v6537_v6  ;;  %v6575_v35 = vadd.f32 %v6574_v10, %v6573_v9  ;;  %v5918_v6 = vld [vmem:[%s10358_s5 + $0x28] sm:$0xff] }
 0x8a4   :  { %v6539_v7 = vpop.f32.mrf.mxu1  ;;  %v6576_v15 = vpop.f32.mrf.mxu0 }
 0x8a5   :  { %v4805_v11 = vmul.f32 %v4801_v39, %v4801_v39  ;;  %v4803_v28 = vmul.f32 0.015625, %v6575_v35  ;;  %v6540_v42 = vadd.f32 %v6539_v7, %v6538_v27  ;;  %v5919_v7 = vld [vmem:[%s10359_s6 + $0x20] sm:$0xff] }
 0x8a6   :  { %v6577_v63 = vpop.f32.mrf.mxu0 }
 0x8a7   :  { %v4807_v0 = vsub.f32 %v4803_v28, %v4805_v11  ;;  %v4802_v2 = vmul.f32 0.015625, %v6540_v42  ;;  %v6578_v33 = vadd.f32 %v6577_v63, %v6576_v15  ;;  %v5920_v28 = vld [vmem:[%s10359_s6 + $0x28] sm:$0xff] }
 0x8a9   :  { %v4809_v48 = vmax.f32 %v4807_v0, 0.0  ;;  %v4806_v38 = vmul.f32 %v4802_v2, %v4802_v2  ;;  %v4804_v54 = vmul.f32 0.015625, %v6578_v33 }
 0x8ab   :  { %v4817_v5 = vadd.f32 1e-05, %v4809_v48  ;;  %v4808_v17 = vsub.f32 %v4804_v54, %v4806_v38 }
 0x8ad   :  { %6668 = vrsqrt.f32 %v4817_v5  ;;  %v4810_v12 = vmax.f32 %v4808_v17, 0.0 }
 0x8af   :  { %v4818_v29 = vadd.f32 1e-05, %v4810_v12 }
 0x8b1   :  { %6670 = vrsqrt.f32 %v4818_v29 }
 0x8ba   :  { %v6669_v32 = vpop.eup %6668 }
 0x8bb   :  { %v4821_v9 = vmul.f32 %v6669_v32, %v5917_v58 }
 0x8bd   :  { %5921 = vmatmul.mubr.msk.f32.vlgmr.msra.gmra.mxu1 %vm1102_vm1, %v4821_v9  ;;  %v4823_v35 = vmul.f32 %v4821_v9, %v4801_v39 }
 0x8be   :  { %v6671_v27 = vpop.eup %6670  ;;  %4951 = vmatpush1.msra.mxu1 %v10044_v53  ;;  %4903 = vmatprep.mubr.f32.mxu1 %v10830_v47 }
 0x8bf   :  { %v4822_v10 = vmul.f32 %v6671_v27, %v5918_v6  ;;  %v4825_v15 = vsub.f32 %v5919_v7, %v4823_v35 }
 0x8c1   :  { %5922 = vmatmul.mubr.msk.f32.gmra.mxu1 %vm1102_vm1, %v4822_v10  ;;  %v4824_v11 = vmul.f32 %v4822_v10, %v4802_v2 }
 0x8c2   :  { %4984 = vmatprep.mubr.f32.mxu1 %v10830_v47 }
 0x8c3   :  { %v4826_v42 = vsub.f32 %v5920_v28, %v4824_v11 }
 0x8c5   :  { %5923 = vmatmul.mubr.msk.f32.vlgmr.msra.gmra.mxu1 %vm1102_vm1, %v4825_v15 }
 0x8c6   :  { %4990 = vmatprep.mubr.f32.mxu1 %v10830_v47 }
 0x8c9   :  { %5924 = vmatmul.mubr.msk.f32.gmra.mxu1 %vm1102_vm1, %v4826_v42 }
 0x97d   :  { %v4899_v39 = vpop.f32.mrf.mxu1 }
 0x97e   :  { %v4910_v48 = vmul.f32 %v4899_v39, %v9983_v61 }
 0x97f   :  { %v4901_v63 = vpop.f32.mrf.mxu1 }
 0x980   :  { %v4911_v2 = vmul.f32 %v4901_v63, %v9985_v40 }
 0x981   :  { %v4905_v0 = vpop.f32.mrf.mxu1 }
 0x982   :  { %v4912_v40 = vmul.f32 %v4905_v0, %v9992_v3 }
 0x983   :  { %v4907_v33 = vpop.f32.mrf.mxu1 }
 0x984   :  { %v4913_v10 = vmul.f32 %v4907_v33, %v9995_v56  ;;  %v5350_v56 = vld [vmem:[%s10365_s4 + $0x8] sm:$0xff] }
 0x985   :  { %v4986_v38 = vpop.f32.mrf.mxu1  ;;  %5933 = vmatprep.mubr.msk.f32.mxu1 %vm234_vm0, %v5350_v56 }
 0x986   :  { %v4997_v54 = vadd.f32 %v4986_v38, %v4910_v48 }
 0x987   :  { %v4988_v5 = vpop.f32.mrf.mxu1 }
 0x988   :  { %vm5001_vm3 = vcmp.ge.f32.partialorder %v4997_v54, 0.0  ;;  %v5005_v17 = vmul.f32 0.01, %v4997_v54  ;;  %v4998_v12 = vadd.f32 %v4988_v5, %v4911_v2 }
 0x989   :  { %v4992_v61 = vpop.f32.mrf.mxu1 }
 0x98a   :  { %v10071_v29 = vsel %vm5001_vm3, %v4997_v54, %v5005_v17  ;;  %v5006_v58 = vmul.f32 0.01, %v4998_v12  ;;  %vm5002_vm6 = vcmp.ge.f32.partialorder %v4998_v12, 0.0  ;;  %v4999_v9 = vadd.f32 %v4992_v61, %v4912_v40  ;;  %v5931_v17 = vld [vmem:[%s10366_s9 + $0x7] ss:$8 sm:$0x3] }
 0x98b   :  { %5139 = vrot.lane.b32.xlu0 %v10071_v29, %s6813_s15  ;;  %5271 = vrot.lane.b32.xlu1 %v10071_v29, %s6815_s25  ;;  %v4994_v27 = vpop.f32.mrf.mxu1 }
 0x98c   :  { %v10077_v32 = vsel %vm5002_vm6, %v4998_v12, %v5006_v58  ;;  %v5007_v6 = vmul.f32 0.01, %v4999_v9  ;;  %vm5003_vm7 = vcmp.ge.f32.partialorder %v4999_v9, 0.0  ;;  %v5000_v3 = vadd.f32 %v4994_v27, %v4913_v10 }
 0x98d   :  { %v5295_v12 = vrot.slane %v5931_v17, %v10831_v30  ;;  %v5299_v58 = vrot.slane %v5931_v17, %v10832_v16 }
 0x98e   :  { %v10093_v35 = vsel %vm5003_vm7, %v4999_v9, %v5007_v6  ;;  %v5008_v7 = vmul.f32 0.01, %v5000_v3  ;;  %vm5004_vm9 = vcmp.ge.f32.partialorder %v5000_v3, 0.0  ;;  %v5930_v6 = vld [vmem:[%s10366_s9 + $0x6] ss:$8 sm:$0x3] }
 0x98f   :  { %5232 = vrot.lane.b32.xlu1 %v10071_v29, %s6816_s29  ;;  %5273 = vrot.lane.b32.xlu0 %v10077_v32, %s6815_s25  ;;  %v5256_v20 = vrot.slane %v5930_v6, %v10831_v30  ;;  %v5260_v17 = vrot.slane %v5930_v6, %v10832_v16  ;;  %v5221_v6 = vrot.slane %v5929_v26, %v10832_v16 }
 0x990   :  { %v10103_v15 = vsel %vm5004_vm9, %v5000_v3, %v5008_v7 }
 0x993   :  { %5193 = vrot.lane.b32.xlu1 %v10071_v29, %s6814_s16  ;;  %5234 = vrot.lane.b32.xlu0 %v10077_v32, %s6816_s29 }
 0x997   :  { %5133 = vrot.lane.b32.xlu1 %v10077_v32, %s6813_s15  ;;  %5195 = vrot.lane.b32.xlu0 %v10077_v32, %s6814_s16 }
 0x99b   :  { %5094 = vrot.lane.b32.xlu1 %v10077_v32, %s6820_s19  ;;  %5141 = vrot.lane.b32.xlu0 %v10093_v35, %s6813_s15 }
 0x99f   :  { %5102 = vrot.lane.b32.xlu0 %v10093_v35, %s6820_s19  ;;  %5275 = vrot.lane.b32.xlu1 %v10093_v35, %s6815_s25 }
 0x9a3   :  { %5236 = vrot.lane.b32.xlu1 %v10093_v35, %s6816_s29  ;;  %5277 = vrot.lane.b32.xlu0 %v10103_v15, %s6815_s25 }
 0x9a7   :  { %5197 = vrot.lane.b32.xlu1 %v10093_v35, %s6814_s16  ;;  %5238 = vrot.lane.b32.xlu0 %v10103_v15, %s6816_s29 }
 0x9ab   :  { %5055 = vrot.lane.b32.xlu1 %v10077_v32, %s6818_s24  ;;  %5199 = vrot.lane.b32.xlu0 %v10103_v15, %s6814_s16 }
 0x9af   :  { %5015 = vrot.lane.b32.xlu1 %v10077_v32, %s6819_s1  ;;  %5100 = vrot.lane.b32.xlu0 %v10071_v29, %s6820_s19 }
 0x9b3   :  { %5135 = vrot.lane.b32.xlu1 %v10103_v15, %s6813_s15  ;;  %5063 = vrot.lane.b32.xlu0 %v10093_v35, %s6818_s24 }
 0x9b7   :  { %5096 = vrot.lane.b32.xlu1 %v10103_v15, %s6820_s19  ;;  %5061 = vrot.lane.b32.xlu0 %v10071_v29, %s6818_s24 }
 0x9bb   :  { %5057 = vrot.lane.b32.xlu1 %v10103_v15, %s6818_s24  ;;  %5025 = vrot.lane.b32.xlu0 %v10093_v35, %s6819_s1 }
 0x9bf   :  { %5017 = vrot.lane.b32.xlu1 %v10103_v15, %s6819_s1  ;;  %5023 = vrot.lane.b32.xlu0 %v10071_v29, %s6819_s1 }
 0x9c3   :  { %5314 = vrot.lane.b32.xlu1 %v10093_v35, %s6817_s17  ;;  %5316 = vrot.lane.b32.xlu0 %v10103_v15, %s6817_s17 }
 0x9c7   :  { %5310 = vrot.lane.b32.xlu1 %v10071_v29, %s6817_s17  ;;  %5312 = vrot.lane.b32.xlu0 %v10077_v32, %s6817_s17 }
 0x9fd   :  { %v10149_v11 = vpop.permute.xlu0 %5139  ;;  %v5272_v28 = vpop.permute.xlu1 %5271 }
 0xa01   :  { %v5233_v42 = vpop.permute.xlu1 %5232  ;;  %v5274_v39 = vpop.permute.xlu0 %5273 }
 0xa02   :  { %v5287_v9 = vsel %vm1770_vm14, %v5274_v39, %v5272_v28  ;;  %v5279_v3 = vsel %vm1770_vm14, %v5272_v28, %v5274_v39 }
 0xa03   :  { %v5303_v41 = vmul.f32 %v5299_v58, %v5287_v9  ;;  %v5302_v55 = vmul.f32 %v5295_v12, %v5279_v3 }
 0xa05   :  { %v5194_v63 = vpop.permute.xlu1 %5193  ;;  %v5235_v0 = vpop.permute.xlu0 %5234 }
 0xa06   :  { %v5248_v52 = vsel %vm2009_vm15, %v5235_v0, %v5233_v42  ;;  %v5240_v39 = vsel %vm2009_vm15, %v5233_v42, %v5235_v0 }
 0xa07   :  { %v5264_v9 = vmul.f32 %v5260_v17, %v5248_v52  ;;  %v5263_v3 = vmul.f32 %v5256_v20, %v5240_v39 }
 0xa09   :  { %v10151_v33 = vpop.permute.xlu1 %5133  ;;  %v5196_v48 = vpop.permute.xlu0 %5195 }
 0xa0d   :  { %v10153_v38 = vpop.permute.xlu1 %5094  ;;  %v10155_v2 = vpop.permute.xlu0 %5141 }
 0xa11   :  { %v10157_v54 = vpop.permute.xlu0 %5102  ;;  %v5276_v5 = vpop.permute.xlu1 %5275 }
 0xa15   :  { %v5237_v61 = vpop.permute.xlu1 %5236  ;;  %v5278_v40 = vpop.permute.xlu0 %5277 }
 0xa16   :  { %v5280_v27 = vsel %vm1770_vm14, %v5276_v5, %v5278_v40  ;;  %v5288_v10 = vsel %vm1770_vm14, %v5278_v40, %v5276_v5 }
 0xa17   :  { %v5304_v7 = vmul.f32 %v5295_v12, %v5280_v27  ;;  %v5305_v56 = vmul.f32 %v5299_v58, %v5288_v10  ;;  %v5217_v12 = vrot.slane %v5929_v26, %v10831_v30  ;;  %v5928_v26 = vld [vmem:[%s10366_s9 + $0x4] ss:$8 sm:$0x3] }
 0xa19   :  { %v5198_v8 = vpop.permute.xlu1 %5197  ;;  %5395 = vmatprep.subr.mxu1 %v5305_v56  ;;  %v5239_v62 = vpop.permute.xlu0 %5238  ;;  %v5209_v56 = vsel %vm1808_vm8, %v5196_v48, %v5194_v63 }
 0xa1a   :  { %v5241_v5 = vsel %vm2009_vm15, %v5237_v61, %v5239_v62  ;;  %v5249_v28 = vsel %vm2009_vm15, %v5239_v62, %v5237_v61  ;;  %5396 = vmatpush1.msra.mxu1 %v5304_v7  ;;  %v5225_v0 = vmul.f32 %v5221_v6, %v5209_v56  ;;  %v5182_v7 = vrot.slane %v5928_v26, %v10832_v16 }
 0xa1b   :  { %v5265_v58 = vmul.f32 %v5256_v20, %v5241_v5  ;;  %v5266_v40 = vmul.f32 %v5260_v17, %v5249_v28  ;;  %5397 = vmatprep.subr.mxu1 %v5303_v41  ;;  %v5201_v41 = vsel %vm1808_vm8, %v5194_v63, %v5196_v48  ;;  %v5178_v48 = vrot.slane %v5928_v26, %v10831_v30 }
 0xa1c   :  { %5398 = vmatpush1.msra.mxu1 %v5302_v55  ;;  %v5224_v63 = vmul.f32 %v5217_v12, %v5201_v41  ;;  %v5188_v17 = vmul.f32 %v5182_v7, %v10103_v15  ;;  %v5926_v15 = vld [vmem:[%s10366_s9 + $0x2] ss:$8 sm:$0x3] }
 0xa1d   :  { %v10182_v27 = vpop.permute.xlu1 %5055  ;;  %5399 = vmatprep.subr.mxu1 %v5266_v40  ;;  %v5200_v10 = vpop.permute.xlu0 %5199  ;;  %v5187_v5 = vmul.f32 %v5178_v48, %v10093_v35  ;;  %v5122_v41 = vrot.slane %v5926_v15, %v10832_v16 }
 0xa1e   :  { %v5202_v62 = vsel %vm1808_vm8, %v5198_v8, %v5200_v10  ;;  %v5210_v42 = vsel %vm1808_vm8, %v5200_v10, %v5198_v8  ;;  %5400 = vmatpush1.msra.mxu1 %v5265_v58  ;;  %v5927_v8 = vld [vmem:[%s10366_s9 + $0x3] ss:$8 sm:$0x3]  ;;  %v5185_v10 = vmul.f32 %v5178_v48, %v10071_v29 }
 0xa1f   :  { %v5226_v55 = vmul.f32 %v5217_v12, %v5202_v62  ;;  %v5227_v52 = vmul.f32 %v5221_v6, %v5210_v42  ;;  %5401 = vmatprep.subr.mxu1 %v5264_v9  ;;  %v5157_v28 = vrot.slane %v5927_v8, %v10831_v30  ;;  %v5161_v39 = vrot.slane %v5927_v8, %v10832_v16 }
 0xa20   :  { %5402 = vmatpush1.msra.mxu1 %v5263_v3  ;;  %v5186_v9 = vmul.f32 %v5182_v7, %v10077_v32  ;;  %v5143_v12 = vsel %vm1825_vm11, %v10149_v11, %v10151_v33  ;;  %v5149_v32 = vsel %vm1825_vm11, %v10151_v33, %v10149_v11  ;;  %v5118_v42 = vrot.slane %v5926_v15, %v10831_v30  ;;  %v5925_v33 = vld [vmem:[%s10366_s9 + $0x1] ss:$8 sm:$0x3] }
 0xa21   :  { %v10191_v61 = vpop.permute.xlu1 %5015  ;;  %5403 = vmatprep.subr.mxu1 %v5227_v52  ;;  %v5101_v20 = vpop.permute.xlu0 %5100  ;;  %v5165_v62 = vmul.f32 %v5161_v39, %v5143_v12  ;;  %v5932_v12 = vld [vmem:[%s10366_s9 + $0x10] ss:$8 sm:$0x3] }
 0xa22   :  { %5404 = vmatpush1.msra.mxu1 %v5226_v55  ;;  %v5104_v29 = vsel %vm2026_vm13, %v5101_v20, %v10153_v38  ;;  %v5110_v7 = vsel %vm2026_vm13, %v10153_v38, %v5101_v20 }
 0xa23   :  { %5405 = vmatprep.subr.mxu1 %v5225_v0  ;;  %v5035_v0 = vld [vmem:[%s10366_s9] ss:$8 sm:$0x3]  ;;  %v5126_v48 = vmul.f32 %v5122_v41, %v5104_v29  ;;  %v5338_v29 = vrot.slane %v5932_v12, %v10832_v16 }
 0xa24   :  { %5406 = vmatpush1.msra.mxu1 %v5224_v63 }
 0xa25   :  { %v5136_v58 = vpop.permute.xlu1 %5135  ;;  %v5064_v40 = vpop.permute.xlu0 %5063  ;;  %5407 = vmatprep.subr.mxu1 %v5188_v17  ;;  %v5079_v17 = vrot.slane %v5925_v33, %v10831_v30 }
 0xa26   :  { %v5144_v35 = vsel %vm1825_vm11, %v10155_v2, %v5136_v58  ;;  %v5150_v6 = vsel %vm1825_vm11, %v5136_v58, %v10155_v2  ;;  %5408 = vmatpush1.msra.mxu1 %v5187_v5  ;;  %v5164_v2 = vmul.f32 %v5157_v28, %v5149_v32  ;;  %v5125_v58 = vmul.f32 %v5118_v42, %v5110_v7 }
 0xa27   :  { %v5166_v3 = vmul.f32 %v5157_v28, %v5150_v6  ;;  %v5167_v56 = vmul.f32 %v5161_v39, %v5144_v35  ;;  %5409 = vmatprep.subr.mxu1 %v5186_v9  ;;  %v5040_v39 = vrot.slane %v5035_v0, %v10831_v30 }
 0xa28   :  { %5410 = vmatpush1.msra.mxu1 %v5185_v10  ;;  %v5044_v10 = vrot.slane %v5035_v0, %v10832_v16 }
 0xa29   :  { %v5097_v55 = vpop.permute.xlu1 %5096  ;;  %v5062_v52 = vpop.permute.xlu0 %5061  ;;  %5411 = vmatprep.subr.mxu1 %v5167_v56 }
 0xa2a   :  { %v5105_v26 = vsel %vm2026_vm13, %v10157_v54, %v5097_v55  ;;  %v5111_v11 = vsel %vm2026_vm13, %v5097_v55, %v10157_v54  ;;  %5412 = vmatpush1.msra.mxu1 %v5166_v3  ;;  %v5083_v54 = vrot.slane %v5925_v33, %v10832_v16  ;;  %v5065_v9 = vsel %vm1102_vm1, %v5062_v52, %v10182_v27 }
 0xa2b   :  { %v5127_v8 = vmul.f32 %v5118_v42, %v5111_v11  ;;  %v5128_v63 = vmul.f32 %v5122_v41, %v5105_v26  ;;  %5413 = vmatprep.subr.mxu1 %v5165_v62  ;;  %v5071_v15 = vsel %vm1102_vm1, %v10182_v27, %v5062_v52 }
 0xa2c   :  { %5414 = vmatpush1.msra.mxu1 %v5164_v2  ;;  %v5087_v32 = vmul.f32 %v5083_v54, %v5065_v9  ;;  %v5086_v62 = vmul.f32 %v5079_v17, %v5071_v15 }
 0xa2d   :  { %v5058_v5 = vpop.permute.xlu1 %5057  ;;  %v5026_v28 = vpop.permute.xlu0 %5025  ;;  %5415 = vmatprep.subr.mxu1 %v5128_v63 }
 0xa2e   :  { %v5066_v38 = vsel %vm1102_vm1, %v5064_v40, %v5058_v5  ;;  %v5072_v20 = vsel %vm1102_vm1, %v5058_v5, %v5064_v40  ;;  %5416 = vmatpush1.msra.mxu1 %v5127_v8  ;;  %v5334_v40 = vrot.slane %v5932_v12, %v10831_v30 }
 0xa2f   :  { %v5088_v35 = vmul.f32 %v5079_v17, %v5072_v20  ;;  %v5089_v6 = vmul.f32 %v5083_v54, %v5066_v38  ;;  %5417 = vmatprep.subr.mxu1 %v5126_v48 }
 0xa30   :  { %5418 = vmatpush1.msra.mxu1 %v5125_v58  ;;  %v5351_v58 = vld [vmem:[%s10365_s4 + $0x10] sm:$0xff] }
 0xa31   :  { %v5018_v3 = vpop.permute.xlu1 %5017  ;;  %v5024_v56 = vpop.permute.xlu0 %5023  ;;  %5419 = vmatprep.subr.mxu1 %v5089_v6 }
 0xa32   :  { %v5028_v42 = vsel %vm1748_vm12, %v5026_v28, %v5018_v3  ;;  %v5034_v41 = vsel %vm1748_vm12, %v5018_v3, %v5026_v28  ;;  %v5027_v27 = vsel %vm1748_vm12, %v5024_v56, %v10191_v61  ;;  %5420 = vmatpush1.msra.mxu1 %v5088_v35  ;;  %v5033_v2 = vsel %vm1748_vm12, %v10191_v61, %v5024_v56  ;;  %v5349_v28 = vld [vmem:[%s10365_s4] sm:$0xff] }
 0xa33   :  { %v5049_v55 = vmul.f32 %v5040_v39, %v5034_v41  ;;  %v5050_v52 = vmul.f32 %v5044_v10, %v5028_v42  ;;  %5421 = vmatprep.subr.mxu1 %v5087_v32  ;;  %v5048_v26 = vmul.f32 %v5044_v10, %v5027_v27  ;;  %v5047_v33 = vmul.f32 %v5040_v39, %v5033_v2  ;;  %v5352_v39 = vld [vmem:[%s10365_s4 + $0x18] sm:$0xff]  ;;  %v5935_v41 = vld [vmem:[%s10358_s5 + $0x30] sm:$0xff] }
 0xa34   :  { %5422 = vmatpush1.msra.mxu1 %v5086_v62 }
 0xa35   :  { %v5315_v30 = vpop.permute.xlu1 %5314  ;;  %v5317_v11 = vpop.permute.xlu0 %5316  ;;  %5423 = vmatprep.subr.mxu1 %v5050_v52  ;;  %v5936_v52 = vld [vmem:[%s10358_s5 + $0x38] sm:$0xff] }
 0xa36   :  { %v5319_v0 = vsel %vm1731_vm2, %v5315_v30, %v5317_v11  ;;  %v5327_v7 = vsel %vm1731_vm2, %v5317_v11, %v5315_v30  ;;  %5424 = vmatpush1.msra.mxu1 %v5049_v55  ;;  %v5937_v30 = vld [vmem:[%s10359_s6 + $0x30] sm:$0xff] }
 0xa37   :  { %v5343_v8 = vmul.f32 %v5334_v40, %v5319_v0  ;;  %v5344_v63 = vmul.f32 %v5338_v29, %v5327_v7  ;;  %5425 = vmatprep.subr.mxu1 %v5048_v26  ;;  %v5938_v0 = vld [vmem:[%s10359_s6 + $0x38] sm:$0xff] }
 0xa38   :  { %5426 = vmatpush1.msra.mxu1 %v5047_v33 }
 0xa39   :  { %v5311_v48 = vpop.permute.xlu1 %5310  ;;  %v5313_v61 = vpop.permute.xlu0 %5312  ;;  %5455 = vmatprep.subr.mxu1 %v5344_v63 }
 0xa3a   :  { %v5318_v16 = vsel %vm1731_vm2, %v5311_v48, %v5313_v61  ;;  %v5326_v17 = vsel %vm1731_vm2, %v5313_v61, %v5311_v48  ;;  %5456 = vmatpush2.msra.mxu1 %v5343_v8 }
 0xa3b   :  { %v5341_v54 = vmul.f32 %v5334_v40, %v5318_v16  ;;  %v5342_v5 = vmul.f32 %v5338_v29, %v5326_v17 }
 0xa3d   :  { %5457 = vmatprep.subr.mxu1 %v5342_v5 }
 0xa3e   :  { %5458 = vmatpush2.msra.mxu1 %v5341_v54 }
 0xa3f   :  { %5460 = vmatmul.mubr.f32.vlgmr.msra.gmra.mxu1 %v5349_v28  ;;  %5688 = vmatprep.subr.mxu1 %v10039_v57 }
 0xa40   :  { %5934 = vmatprep.mubr.msk.f32.mxu1 %vm234_vm0, %v5352_v39  ;;  %5689 = vmatpush1.msra.mxu1 %v10044_v53 }
 0xa41   :  { %5775 = vmatprep.subr.mxu1 %v10039_v57 }
 0xa43   :  { %5466 = vmatmul.mubr.f32.gmra.mxu1 %v5351_v58 }
 0xa44   :  { %5722 = vmatprep.mubr.f32.mxu1 %v10830_v47 }
 0xaff   :  { %v10272_v9 = vpop.f32.mrf.mxu1 }
 0xb01   :  { %v10274_v38 = vpop.f32.mrf.mxu1 }
 0xb02   :  { %5536 = vmatprep.mubr.f32.mxu0 %v10274_v38  ;;  %v5548_v57 = vmul.f32 %v10274_v38, %v10274_v38 }
 0xb03   :  { %v10277_v20 = vpop.f32.mrf.mxu1  ;;  %5537 = vmatmul.mubr.f32.vlgmr.msra.gmra.mxu0 %v10272_v9 }
 0xb04   :  { %6618 = vmatpush3.msra.mxu0 %v9729_v24  ;;  %v10840_v24 = vld [vmem:[#allocation7_spill] sm:$0xff] }
 0xb05   :  { %6619 = vmatprep.subr.mxu0 %v9734_v59  ;;  %v10282_v12 = vpop.f32.mrf.mxu1  ;;  %v10841_v59 = vld [vmem:[#allocation8_spill] sm:$0xff] }
 0xb06   :  { %6620 = vmatpush3.msra.mxu0 %v9740_v14  ;;  %5541 = vmatprep.mubr.f32.mxu0 %v10282_v12  ;;  %v10842_v14 = vld [vmem:[#allocation19_spill] sm:$0xff] }
 0xb07   :  { %6621 = vmatprep.subr.mxu0 %v9747_v36  ;;  %5542 = vmatmul.mubr.f32.gmra.mxu0 %v10277_v20  ;;  %v10843_v36 = vld [vmem:[#allocation9_spill] sm:$0xff] }
 0xb08   :  { %6622 = vmatpush3.msra.mxu0 %v9753_v37  ;;  %5615 = vmatprep.mubr.f32.mxu0 %v5548_v57  ;;  %v10844_v37 = vld [vmem:[#allocation22_spill] sm:$0xff] }
 0xb09   :  { %6623 = vmatprep.subr.mxu0 %v9759_v43  ;;  %v5547_v43 = vmul.f32 %v10272_v9, %v10272_v9 }
 0xb0a   :  { %6624 = vmatpush3.msra.mxu0 %v9765_v4  ;;  %v10845_v4 = vld [vmem:[#allocation10_spill] sm:$0xff] }
 0xb0b   :  { %6625 = vmatprep.subr.mxu0 %v9772_v46  ;;  %v5550_v46 = vmul.f32 %v10282_v12, %v10282_v12 }
 0xb0c   :  { %6626 = vmatpush3.msra.mxu0 %v9778_v44  ;;  %v10846_v44 = vld [vmem:[#allocation11_spill] sm:$0xff] }
 0xb0d   :  { %6627 = vmatprep.subr.mxu0 %v9784_v23  ;;  %v5549_v23 = vmul.f32 %v10277_v20, %v10277_v20 }
 0xb0e   :  { %6628 = vmatpush3.msra.mxu0 %v9790_v60 }
 0xb0f   :  { %6629 = vmatprep.subr.mxu0 %v9796_v21 }
 0xb10   :  { %6630 = vmatpush3.msra.mxu0 %v9802_v51 }
 0xb11   :  { %6631 = vmatprep.subr.mxu0 %v9808_v45 }
 0xb12   :  { %6632 = vmatpush3.msra.mxu0 %v9814_v22 }
 0xb13   :  { %6633 = vmatprep.subr.mxu0 %v9820_v49 }
 0xb14   :  { %6634 = vmatpush3.msra.mxu0 %v9826_v1 }
 0xb15   :  { %6635 = vmatprep.subr.mxu0 %v9832_v50 }
 0xb16   :  { %6636 = vmatpush3.msra.mxu0 %v9838_v13 }
 0xb17   :  { %6637 = vmatprep.subr.mxu0 %v9844_v19 }
 0xb18   :  { %6638 = vmatpush3.msra.mxu0 %v9850_v18 }
 0xb19   :  { %6639 = vmatprep.subr.mxu0 %v9856_v34 }
 0xb1a   :  { %6640 = vmatpush3.msra.mxu0 %v9862_v31 }
 0xb1b   :  { %6641 = vmatprep.subr.mxu0 %v9868_v25 }
 0xb1c   :  { %6642 = vmatpush3.msra.mxu0 %v10840_v24 }
 0xb1d   :  { %6643 = vmatprep.subr.mxu0 %v10841_v59 }
 0xb1e   :  { %6644 = vmatpush3.msra.mxu0 %v10842_v14 }
 0xb1f   :  { %6645 = vmatprep.subr.mxu0 %v10843_v36 }
 0xb20   :  { %6646 = vmatpush3.msra.mxu0 %v10844_v37 }
 0xb21   :  { %6647 = vmatprep.subr.mxu0 %v10845_v4 }
 0xb22   :  { %6648 = vmatpush3.msra.mxu0 %v10846_v44 }
 0xb23   :  { %5616 = vmatmul.mubr.f32.vlgmr.msra.gmra.mxu0 %v5547_v43 }
 0xb24   :  { %5620 = vmatprep.mubr.f32.mxu0 %v5550_v46 }
 0xb27   :  { %5621 = vmatmul.mubr.f32.gmra.mxu0 %v5549_v23 }
 0xbc3   :  { %v6611_v60 = vpop.f32.mrf.mxu0 }
 0xbc5   :  { %v6612_v21 = vpop.f32.mrf.mxu0 }
 0xbc6   :  { %v6613_v45 = vadd.f32 %v6612_v21, %v6611_v60 }
 0xbc7   :  { %v6614_v51 = vpop.f32.mrf.mxu0 }
 0xbc8   :  { %v5626_v1 = vmul.f32 0.015625, %v6613_v45 }
 0xbc9   :  { %v6615_v22 = vpop.f32.mrf.mxu0 }
 0xbca   :  { %v6616_v50 = vadd.f32 %v6615_v22, %v6614_v51  ;;  %v5630_v34 = vmul.f32 %v5626_v1, %v5626_v1 }
 0xbcc   :  { %v5627_v31 = vmul.f32 0.015625, %v6616_v50 }
 0xbce   :  { %v5631_v10 = vmul.f32 %v5627_v31, %v5627_v31 }
 0xbe3   :  { %v6649_v49 = vpop.f32.mrf.mxu0 }
 0xbe5   :  { %v6650_v13 = vpop.f32.mrf.mxu0 }
 0xbe6   :  { %v6651_v19 = vadd.f32 %v6650_v13, %v6649_v49 }
 0xbe7   :  { %v6652_v18 = vpop.f32.mrf.mxu0 }
 0xbe8   :  { %v5628_v25 = vmul.f32 0.015625, %v6651_v19 }
 0xbe9   :  { %v6653_v15 = vpop.f32.mrf.mxu0 }
 0xbea   :  { %v5632_v35 = vsub.f32 %v5628_v25, %v5630_v34  ;;  %v6654_v6 = vadd.f32 %v6653_v15, %v6652_v18 }
 0xbec   :  { %v5634_v32 = vmax.f32 %v5632_v35, 0.0  ;;  %v5629_v3 = vmul.f32 0.015625, %v6654_v6 }
 0xbee   :  { %v5642_v56 = vadd.f32 1e-05, %v5634_v32  ;;  %v5633_v40 = vsub.f32 %v5629_v3, %v5631_v10 }
 0xbf0   :  { %6672 = vrsqrt.f32 %v5642_v56  ;;  %v5635_v62 = vmax.f32 %v5633_v40, 0.0 }
 0xbf2   :  { %v5643_v42 = vadd.f32 1e-05, %v5635_v62 }
 0xbf4   :  { %6674 = vrsqrt.f32 %v5643_v42 }
 0xbfd   :  { %v6673_v27 = vpop.eup %6672 }
 0xbfe   :  { %v5646_v55 = vmul.f32 %v6673_v27, %v5935_v41 }
 0xc00   :  { %5939 = vmatmul.mubr.msk.f32.vlgmr.msra.gmra.mxu1 %vm1102_vm1, %v5646_v55  ;;  %v5648_v26 = vmul.f32 %v5646_v55, %v5626_v1 }
 0xc01   :  { %v6675_v2 = vpop.eup %6674  ;;  %5776 = vmatpush1.msra.mxu1 %v10044_v53  ;;  %5728 = vmatprep.mubr.f32.mxu1 %v10830_v47 }
 0xc02   :  { %v5647_v29 = vmul.f32 %v6675_v2, %v5936_v52  ;;  %v5650_v11 = vsub.f32 %v5937_v30, %v5648_v26 }
 0xc04   :  { %5940 = vmatmul.mubr.msk.f32.gmra.mxu1 %vm1102_vm1, %v5647_v29  ;;  %v5649_v33 = vmul.f32 %v5647_v29, %v5627_v31 }
 0xc05   :  { %5809 = vmatprep.mubr.f32.mxu1 %v10830_v47 }
 0xc06   :  { %v5651_v53 = vsub.f32 %v5938_v0, %v5649_v33 }
 0xc08   :  { %5941 = vmatmul.mubr.msk.f32.vlgmr.msra.gmra.mxu1 %vm1102_vm1, %v5650_v11 }
 0xc09   :  { %5815 = vmatprep.mubr.f32.mxu1 %v10830_v47 }
 0xc0c   :  { %5942 = vmatmul.mubr.msk.f32.gmra.mxu1 %vm1102_vm1, %v5651_v53 }
 0xcc0   :  { %v5724_v7 = vpop.f32.mrf.mxu1 }
 0xcc1   :  { %v5735_v61 = vmul.f32 %v5724_v7, %v10272_v9 }
 0xcc2   :  { %v5726_v8 = vpop.f32.mrf.mxu1 }
 0xcc3   :  { %v5736_v17 = vmul.f32 %v5726_v8, %v10274_v38 }
 0xcc4   :  { %v5730_v63 = vpop.f32.mrf.mxu1 }
 0xcc5   :  { %v5737_v28 = vmul.f32 %v5730_v63, %v10277_v20 }
 0xcc6   :  { %v5732_v48 = vpop.f32.mrf.mxu1 }
 0xcc7   :  { %v5738_v57 = vmul.f32 %v5732_v48, %v10282_v12 }
 0xcc8   :  { %v5811_v16 = vpop.f32.mrf.mxu1 }
 0xcc9   :  { %v5822_v54 = vadd.f32 %v5811_v16, %v5735_v61 }
 0xcca   :  { %v5813_v5 = vpop.f32.mrf.mxu1 }
 0xccb   :  { %v5830_v39 = vmul.f32 0.01, %v5822_v54  ;;  %v5823_v58 = vadd.f32 %v5813_v5, %v5736_v17  ;;  %vm5826_vm0 = vcmp.ge.f32.partialorder %v5822_v54, 0.0 }
 0xccc   :  { %v5817_v47 = vpop.f32.mrf.mxu1 }
 0xccd   :  { %vm5827_vm1 = vcmp.ge.f32.partialorder %v5823_v58, 0.0  ;;  %v5831_v24 = vmul.f32 0.01, %v5823_v58  ;;  %v5824_v59 = vadd.f32 %v5817_v47, %v5737_v28  ;;  %v5834_v36 = vsel %vm5826_vm0, %v5822_v54, %v5830_v39 }
 0xcce   :  { %v5819_v14 = vpop.f32.mrf.mxu1 }
 0xccf   :  { %v5835_v37 = vsel %vm5827_vm1, %v5823_v58, %v5831_v24  ;;  %v5832_v9 = vmul.f32 0.01, %v5824_v59  ;;  %v5825_v43 = vadd.f32 %v5819_v14, %v5738_v57  ;;  %vm5828_vm8 = vcmp.ge.f32.partialorder %v5824_v59, 0.0 }
 0xcd0   :  { %v5838_v4 = vadd.f32 %v5835_v37, %v5834_v36 }
 0xcd1   :  { %vm5829_vm11 = vcmp.ge.f32.partialorder %v5825_v43, 0.0  ;;  %v5833_v38 = vmul.f32 0.01, %v5825_v43  ;;  %v5836_v20 = vsel %vm5828_vm8, %v5824_v59, %v5832_v9 }
 0xcd2   :  { %5840 = vst [vmem:[%s10367_s14] sm:$0xff] %v5838_v4 }
 0xcd3   :  { %v5837_v46 = vsel %vm5829_vm11, %v5825_v43, %v5833_v38 }
 0xcd4   :  { %v5839_v44 = vadd.f32 %v5837_v46, %v5836_v20 }
 0xcd6   :  { %5841 = vst [vmem:[%s10367_s14 + $0x8] sm:$0xff] %v5839_v44 }

</bundles_post_ra>
